<compile_context>
chip_gen: v7x
topology: tpu7x:2x2x1
jax: 0.10.0
libtpu: 0.0.40
codegen_flags: <defaults>
</compile_context>

<pallas_src>
import functools

import jax
import jax.numpy as jnp
from jax.experimental import pallas as pl
from jax.experimental.pallas import tpu as pltpu

_PADL = 128                                   # lane offset of the image interior
_TAPS = tuple((dy, dx) for dy in range(3) for dx in range(3))


# ----------------------------- fused EDSR kernel ---------------------------- #

def _edsr_kernel(x_ref, head_w, head_b, body_w, body_b, t0_w, t0_b, t1_w, t1_b,
                 sub_scale, sub_bias, col_masks,          # inputs
                 o_ref,                                   # output
                 rows_ref, planes_ref, patches_ref,       # VMEM scratch
                 *, H, W, n_feats, n_resblocks, res_scale, r):
    C = n_feats
    HW = H * W
    LANES = rows_ref.shape[-1]

    # Zero once per image: rows_ref fully (its interior also provides the zero
    # "extra" input channels 3..C of the padded head conv), planes_ref only the
    # border columns (its interior is fully written before it is read).
    rows_ref[...] = jnp.zeros_like(rows_ref)
    planes_ref[:, 0:_PADL] = jnp.zeros((r * r * C, _PADL), jnp.float32)
    planes_ref[:, _PADL + HW:] = jnp.zeros((r * r * C, LANES - _PADL - HW),
                                           jnp.float32)

    cmask = col_masks[...]            # (3, HW): row m is 1 iff 0 <= w + (m-1) < W

    def build_patches(src_ref, taps):
        # taps: 9 x (row_base, lane_offset, mask_row); each tap is written as a
        # full (C, HW) lane-dense slab of the (9C, HW) im2col matrix.
        for t, (rb, off, m) in enumerate(taps):
            v = src_ref[rb:rb + C, off:off + HW]
            if m != 1:                              # column-boundary zero padding
                v = v * cmask[m:m + 1, :]
            patches_ref[t * C:(t + 1) * C, :] = v

    def conv3x3(a, w, b, relu=False):
        # a: (rows<=C, HW).  3x3 same-conv as ONE (Cout,9C) @ (9C,HW) MXU matmul;
        # row-boundary zero padding comes from the zeroed borders of rows_ref.
        rows_ref[0:a.shape[0], _PADL:_PADL + HW] = a
        build_patches(
            rows_ref,
            [(0, _PADL + (dy - 1) * W + (dx - 1), dx) for dy, dx in _TAPS])
        out = jnp.dot(w, patches_ref[...], preferred_element_type=jnp.float32) + b
        return jnp.maximum(out, 0.0) if relu else out

    # ---- sub_mean (MeanShift, sign=-1) + head conv -------------------------- #
    x = x_ref[...].astype(jnp.float32)                     # (n_colors, HW)
    x = x * sub_scale[...] + sub_bias[...]
    h0 = conv3x3(x, head_w[...], head_b[...])              # (C, HW)

    # ---- residual body ------------------------------------------------------ #
    h = h0
    for i in range(n_resblocks):
        z = conv3x3(h, body_w[2 * i], body_b[2 * i], relu=True)
        h = h + res_scale * conv3x3(z, body_w[2 * i + 1], body_b[2 * i + 1])
    res = conv3x3(h, body_w[2 * n_resblocks], body_b[2 * n_resblocks]) + h0

    # ---- tail: upsampler conv, all r*r sub-pixel phases in ONE matmul -------- #
    planes = conv3x3(res, t0_w[...], t0_b[...])            # (r*r*C, HW), row g*C+c
    planes_ref[:, _PADL:_PADL + HW] = planes

    # ---- tail: final 3x3 conv on the pixel-shuffled grid (polyphase form) ---- #
    # Output phase (i,j), tap (dy,dx) reads upsampled pixel (2h+i+dy-1, 2w+j+dx-1)
    # = sub-pixel plane (py,px) at (h+qy, w+qx) with (q, p) = divmod(phase+d-1, r).
    # add_mean is folded into t1_w / t1_b at pack time.
    w1 = t1_w[...]
    b1 = t1_b[...]
    for i in range(r):
        for j in range(r):
            taps = []
            for dy, dx in _TAPS:
                qy, py = divmod(i + dy - 1, r)             # floor divmod
                qx, px = divmod(j + dx - 1, r)
                g = py * r + px
                taps.append((g * C, _PADL + qy * W + qx, qx + 1))
            build_patches(planes_ref, taps)
            y = jnp.dot(w1, patches_ref[...], preferred_element_type=jnp.float32) + b1
            o_ref[i * r + j] = y.astype(o_ref.dtype)


# ------------------------------ pallas wrapper ------------------------------- #

def _full_spec(a):
    zeros = (0,) * a.ndim
    return pl.BlockSpec(a.shape, lambda n, _z=zeros: _z)


def edsr_forward(x_nchw, params, *, n_resblocks, res_scale, scale):
    r = scale
    N, Cc, H, W = x_nchw.shape
    HW = H * W
    assert W + 1 <= _PADL, "padded-row layout needs image width < 128"
    nf = params["body_w"].shape[1]
    lanes = HW + 2 * _PADL

    x = x_nchw.astype(jnp.float32).reshape(N, Cc, HW)     # channels-major, HW on lanes

    weight_names = ("head_w", "head_b", "body_w", "body_b", "t0_w", "t0_b",
                    "t1_w", "t1_b", "sub_scale", "sub_bias", "col_masks")
    weights = [params[k] for k in weight_names]

    kern = functools.partial(_edsr_kernel, H=H, W=W, n_feats=nf,
                             n_resblocks=n_resblocks, res_scale=res_scale, r=r)

    out = pl.pallas_call(
        kern,
        out_shape=jax.ShapeDtypeStruct((N, r * r, Cc, HW), jnp.float32),
        grid=(N,),
        in_specs=[pl.BlockSpec((None, Cc, HW), lambda n: (n, 0, 0))]
                 + [_full_spec(w) for w in weights],
        out_specs=pl.BlockSpec((None, r * r, Cc, HW), lambda n: (n, 0, 0, 0)),
        scratch_shapes=[
            pltpu.VMEM((nf, lanes), jnp.float32),           # padded activation rows
            pltpu.VMEM((r * r * nf, lanes), jnp.float32),   # padded sub-pixel planes
            pltpu.VMEM((9 * nf, HW), jnp.float32),          # im2col patch matrix
        ],
        compiler_params=pltpu.CompilerParams(dimension_semantics=("parallel",)),
    )(x, *weights)

    # Tiny XLA epilogue: PixelShuffle interleave of the r*r phase outputs + NCHW.
    t = out.reshape(N, r, r, Cc, H, W)                      # [n, i, j, c, h, w]
    return jnp.transpose(t, (0, 3, 4, 1, 5, 2)).reshape(N, Cc, H * r, W * r)


# ------------------------------- parameters --------------------------------- #

def init_raw_params(key, n_colors, n_feats, n_resblocks, scale, rgb_range):
    assert scale == 2, "synthetic config uses scale=2 (single PixelShuffle stage)"
    r = scale

    def conv_p(k, cin, cout, std=0.05):
        k1, k2 = jax.random.split(k)
        w = jax.random.normal(k1, (3, 3, cin, cout), jnp.float32) * std   # HWIO
        b = jax.random.normal(k2, (cout,), jnp.float32) * 0.01
        return w, b

    keys = jax.random.split(key, 4 + 2 * n_resblocks)
    raw = {}
    raw["head"] = conv_p(keys[0], n_colors, n_feats)
    raw["body"] = []
    for i in range(n_resblocks):
        w1, b1 = conv_p(keys[1 + 2 * i], n_feats, n_feats)
        w2, b2 = conv_p(keys[2 + 2 * i], n_feats, n_feats)
        raw["body"].append((w1, b1, w2, b2))
    raw["body_tail"] = conv_p(keys[1 + 2 * n_resblocks], n_feats, n_feats)
    raw["tail0"] = conv_p(keys[2 + 2 * n_resblocks], n_feats, r * r * n_feats)
    raw["tail1"] = conv_p(keys[3 + 2 * n_resblocks], n_feats, n_colors)

    # MeanShift: weight = eye(3)/std (std = 1), bias = sign * rgb_range * mean / std
    rgb_mean = jnp.array([0.4488, 0.4371, 0.4040], jnp.float32)
    raw["ms_scale"] = jnp.ones((n_colors,), jnp.float32)
    raw["sub_bias"] = -rgb_range * rgb_mean
    raw["add_bias"] = rgb_range * rgb_mean
    return raw


def pack_params(raw, n_colors, n_feats, scale, H, W):
    """Convert HWIO conv weights into the kernel's (Cout, 9*Cin) im2col layout."""
    r = scale
    C = n_feats

    def flat(w):   # (3,3,cin,cout) -> (cout, 9*cin), cols ordered (dy, dx, cin)
        return jnp.transpose(w, (3, 0, 1, 2)).reshape(w.shape[3], 9 * w.shape[2])

    def col(b):
        return b.reshape(-1, 1)

    # Head conv: pad the input-channel dim to C so the kernel uses one uniform
    # (9C, HW) patch layout; the extra weight columns are zero.
    head_w = flat(jnp.pad(raw["head"][0],
                          ((0, 0), (0, 0), (0, C - n_colors), (0, 0))))

    body_ws, body_bs = [], []
    for (w1, b1, w2, b2) in raw["body"]:
        body_ws += [flat(w1), flat(w2)]
        body_bs += [col(b1), col(b2)]
    body_ws.append(flat(raw["body_tail"][0]))
    body_bs.append(col(raw["body_tail"][1]))

    # Upsampler conv merged over sub-pixel phases: packed row (g*C + c) is conv
    # output channel c*r*r + g  (nn.PixelShuffle ordering, g = i*r + j).
    t0w_f = flat(raw["tail0"][0])                                  # (r*r*C, 9C)
    t0_w = jnp.transpose(t0w_f.reshape(C, r * r, 9 * C),
                         (1, 0, 2)).reshape(r * r * C, 9 * C)
    t0_b = jnp.transpose(raw["tail0"][1].reshape(C, r * r),
                         (1, 0)).reshape(r * r * C, 1)

    # Final conv with add_mean (MeanShift, sign=+1) folded in (exact post-conv affine).
    ms = raw["ms_scale"].reshape(-1, 1)
    t1_w = flat(raw["tail1"][0]) * ms
    t1_b = col(raw["tail1"][1]) * ms + raw["add_bias"].reshape(-1, 1)

    # Column-shift validity masks: row m is 1 where 0 <= w + (m-1) < W.
    w_idx = jnp.arange(H * W, dtype=jnp.int32) % W
    col_masks = jnp.stack(
        [((w_idx + d >= 0) & (w_idx + d < W)).astype(jnp.float32)
         for d in (-1, 0, 1)])

    return dict(
        head_w=head_w, head_b=col(raw["head"][1]),
        body_w=jnp.stack(body_ws), body_b=jnp.stack(body_bs),
        t0_w=t0_w, t0_b=t0_b, t1_w=t1_w, t1_b=t1_b,
        sub_scale=raw["ms_scale"].reshape(-1, 1),
        sub_bias=raw["sub_bias"].reshape(-1, 1),
        col_masks=col_masks,
    )


# ---------------------------- pure-JAX reference ----------------------------- #

def _conv_ref(x, w, b):
    y = jax.lax.conv_general_dilated(
        x, w, (1, 1), "SAME",
        dimension_numbers=("NHWC", "HWIO", "NHWC"),
        precision=jax.lax.Precision.HIGHEST)
    return y + b.reshape(1, 1, 1, -1)


def edsr_reference(x_nchw, raw, *, res_scale, scale):
    r = scale
    x = jnp.transpose(x_nchw, (0, 2, 3, 1)).astype(jnp.float32)
    x = x * raw["ms_scale"].reshape(1, 1, 1, -1) + raw["sub_bias"].reshape(1, 1, 1, -1)
    x = _conv_ref(x, *raw["head"])
    h = x
    for (w1, b1, w2, b2) in raw["body"]:
        t = jax.nn.relu(_conv_ref(h, w1, b1))
        h = h + res_scale * _conv_ref(t, w2, b2)
    res = _conv_ref(h, *raw["body_tail"]) + x
    t = _conv_ref(res, *raw["tail0"])
    N, H, W, C4 = t.shape
    C = C4 // (r * r)
    t = t.reshape(N, H, W, C, r, r)
    t = jnp.transpose(t, (0, 1, 4, 2, 5, 3)).reshape(N, H * r, W * r, C)
    t = _conv_ref(t, *raw["tail1"])
    t = t * raw["ms_scale"].reshape(1, 1, 1, -1) + raw["add_bias"].reshape(1, 1, 1, -1)
    return jnp.transpose(t, (0, 3, 1, 2))


# ------------------------------------ main ----------------------------------- #

if __name__ == "__main__":
    n_colors = 3
    n_feats = 16
    n_resblocks = 2
    scale = 2
    res_scale = 0.1
    rgb_range = 255.0
    H = W = 16

    key = jax.random.PRNGKey(0)
    k_par, k_in = jax.random.split(key)
    raw = init_raw_params(k_par, n_colors, n_feats, n_resblocks, scale, rgb_range)
    params = pack_params(raw, n_colors, n_feats, scale, H, W)

    # input: NCHW, like the PyTorch module
    x = jax.random.uniform(k_in, (2, n_colors, H, W), jnp.float32) * rgb_range

    fwd = jax.jit(functools.partial(edsr_forward, n_resblocks=n_resblocks,
                                    res_scale=res_scale, scale=scale))
    y = fwd(x, params)
    jax.block_until_ready(y)

    assert y.shape == (2, n_colors, H * scale, W * scale), y.shape
    assert y.dtype == jnp.float32

    # Correctness check against a pure-JAX (lax.conv) reference.
    y_ref = edsr_reference(x, raw, res_scale=res_scale, scale=scale)
    if not jnp.allclose(y, y_ref, atol=1.0, rtol=1e-2):
        err = float(jnp.max(jnp.abs(y - y_ref)))
        raise AssertionError(f"kernel/reference mismatch, max abs err = {err}")

    print("KERNEL_OK")
</pallas_src>

<mosaic_0001>
module attributes {stable_mosaic.version = 11 : i64} {
  func.func @_edsr_kernel(%arg0: i32, %arg1: memref<1x3x256xf32, #tpu.memory_space<vmem>>, %arg2: memref<16x144xf32, #tpu.memory_space<vmem>>, %arg3: memref<16x1xf32, #tpu.memory_space<vmem>>, %arg4: memref<5x16x144xf32, #tpu.memory_space<vmem>>, %arg5: memref<5x16x1xf32, #tpu.memory_space<vmem>>, %arg6: memref<64x144xf32, #tpu.memory_space<vmem>>, %arg7: memref<64x1xf32, #tpu.memory_space<vmem>>, %arg8: memref<3x144xf32, #tpu.memory_space<vmem>>, %arg9: memref<3x1xf32, #tpu.memory_space<vmem>>, %arg10: memref<3x1xf32, #tpu.memory_space<vmem>>, %arg11: memref<3x1xf32, #tpu.memory_space<vmem>>, %arg12: memref<3x256xf32, #tpu.memory_space<vmem>>, %arg13: memref<1x4x3x256xf32, #tpu.memory_space<vmem>>, %arg14: memref<16x512xf32, #tpu.memory_space<vmem>>, %arg15: memref<64x512xf32, #tpu.memory_space<vmem>>, %arg16: memref<144x256xf32, #tpu.memory_space<vmem>>) attributes {dimension_semantics = [#tpu.dimension_semantics<parallel>], iteration_bounds = array<i64: 2>, scalar_prefetch = 0 : i64, scratch_operands = 3 : i64, tpu.core_type = #tpu.core_type<tc>, window_params = [{transform_indices = @transform_0, window_bounds = array<i64: 1, 3, 256>}, {pipeline_mode = #tpu.pipeline_mode<synchronous>, transform_indices = @transform_1, window_bounds = array<i64: 16, 144>}, {pipeline_mode = #tpu.pipeline_mode<synchronous>, transform_indices = @transform_2, window_bounds = array<i64: 16, 1>}, {pipeline_mode = #tpu.pipeline_mode<synchronous>, transform_indices = @transform_3, window_bounds = array<i64: 5, 16, 144>}, {pipeline_mode = #tpu.pipeline_mode<synchronous>, transform_indices = @transform_4, window_bounds = array<i64: 5, 16, 1>}, {pipeline_mode = #tpu.pipeline_mode<synchronous>, transform_indices = @transform_5, window_bounds = array<i64: 64, 144>}, {pipeline_mode = #tpu.pipeline_mode<synchronous>, transform_indices = @transform_6, window_bounds = array<i64: 64, 1>}, {pipeline_mode = #tpu.pipeline_mode<synchronous>, transform_indices = @transform_7, window_bounds = array<i64: 3, 144>}, {pipeline_mode = #tpu.pipeline_mode<synchronous>, transform_indices = @transform_8, window_bounds = array<i64: 3, 1>}, {pipeline_mode = #tpu.pipeline_mode<synchronous>, transform_indices = @transform_9, window_bounds = array<i64: 3, 1>}, {pipeline_mode = #tpu.pipeline_mode<synchronous>, transform_indices = @transform_10, window_bounds = array<i64: 3, 1>}, {pipeline_mode = #tpu.pipeline_mode<synchronous>, transform_indices = @transform_11, window_bounds = array<i64: 3, 256>}, {transform_indices = @transform_12, window_bounds = array<i64: 1, 4, 3, 256>}]} {
    %cst = arith.constant 0.000000e+00 : f32
    %0 = vector.broadcast %cst : f32 to vector<16x512xf32>
    %c0 = arith.constant 0 : index
    %c0_0 = arith.constant 0 : index
    %1 = vector.load %arg14[%c0, %c0_0] : memref<16x512xf32, #tpu.memory_space<vmem>>, vector<16x512xf32>
    tpu.vector_store %arg14[%c0, %c0_0], %0 {strides = array<i32>} : memref<16x512xf32, #tpu.memory_space<vmem>>, vector<16x512xf32>,
    %cst_1 = arith.constant 0.000000e+00 : f32
    %2 = vector.broadcast %cst_1 : f32 to vector<64x128xf32>
    %c0_2 = arith.constant 0 : index
    %c0_3 = arith.constant 0 : index
    %3 = vector.load %arg15[%c0_2, %c0_3] : memref<64x512xf32, #tpu.memory_space<vmem>>, vector<64x128xf32>
    tpu.vector_store %arg15[%c0_2, %c0_3], %2 {strides = array<i32>} : memref<64x512xf32, #tpu.memory_space<vmem>>, vector<64x128xf32>,
    %cst_4 = arith.constant 0.000000e+00 : f32
    %4 = vector.broadcast %cst_4 : f32 to vector<64x128xf32>
    %c0_5 = arith.constant 0 : index
    %c384 = arith.constant 384 : index
    %5 = vector.load %arg15[%c0_5, %c384] : memref<64x512xf32, #tpu.memory_space<vmem>>, vector<64x128xf32>
    tpu.vector_store %arg15[%c0_5, %c384], %4 {strides = array<i32>} : memref<64x512xf32, #tpu.memory_space<vmem>>, vector<64x128xf32>,
    %c0_6 = arith.constant 0 : index
    %c0_7 = arith.constant 0 : index
    %6 = vector.load %arg12[%c0_6, %c0_7] : memref<3x256xf32, #tpu.memory_space<vmem>>, vector<3x256xf32>
    %c0_8 = arith.constant 0 : index
    %c0_9 = arith.constant 0 : index
    %c0_10 = arith.constant 0 : index
    %7 = vector.load %arg1[%c0_8, %c0_9, %c0_10] : memref<1x3x256xf32, #tpu.memory_space<vmem>>, vector<1x3x256xf32>
    %8 = vector.shape_cast %7 : vector<1x3x256xf32> to vector<3x256xf32>
    %c0_11 = arith.constant 0 : index
    %c0_12 = arith.constant 0 : index
    %9 = vector.load %arg10[%c0_11, %c0_12] : memref<3x1xf32, #tpu.memory_space<vmem>>, vector<3x1xf32>
    %10 = vector.broadcast %9 : vector<3x1xf32> to vector<3x256xf32>
    %11 = arith.mulf %8, %10 : vector<3x256xf32>
    %c0_13 = arith.constant 0 : index
    %c0_14 = arith.constant 0 : index
    %12 = vector.load %arg11[%c0_13, %c0_14] : memref<3x1xf32, #tpu.memory_space<vmem>>, vector<3x1xf32>
    %13 = vector.broadcast %12 : vector<3x1xf32> to vector<3x256xf32>
    %14 = arith.addf %11, %13 : vector<3x256xf32>
    %c0_15 = arith.constant 0 : index
    %c0_16 = arith.constant 0 : index
    %15 = vector.load %arg2[%c0_15, %c0_16] : memref<16x144xf32, #tpu.memory_space<vmem>>, vector<16x144xf32>
    %c0_17 = arith.constant 0 : index
    %c0_18 = arith.constant 0 : index
    %16 = vector.load %arg3[%c0_17, %c0_18] : memref<16x1xf32, #tpu.memory_space<vmem>>, vector<16x1xf32>
    %c0_19 = arith.constant 0 : index
    %c128 = arith.constant 128 : index
    %17 = vector.load %arg14[%c0_19, %c128] : memref<16x512xf32, #tpu.memory_space<vmem>>, vector<3x256xf32>
    tpu.vector_store %arg14[%c0_19, %c128], %14 {strides = array<i32>} : memref<16x512xf32, #tpu.memory_space<vmem>>, vector<3x256xf32>,
    %c0_20 = arith.constant 0 : index
    %c111 = arith.constant 111 : index
    %18 = vector.load %arg14[%c0_20, %c111] : memref<16x512xf32, #tpu.memory_space<vmem>>, vector<16x256xf32>
    %19 = vector.extract_strided_slice %6 {offsets = [0, 0], sizes = [1, 256], strides = [1, 1]} : vector<3x256xf32> to vector<1x256xf32>
    %20 = vector.broadcast %19 : vector<1x256xf32> to vector<16x256xf32>
    %21 = arith.mulf %18, %20 : vector<16x256xf32>
    %c0_21 = arith.constant 0 : index
    %c0_22 = arith.constant 0 : index
    %22 = vector.load %arg16[%c0_21, %c0_22] : memref<144x256xf32, #tpu.memory_space<vmem>>, vector<16x256xf32>
    tpu.vector_store %arg16[%c0_21, %c0_22], %21 {strides = array<i32>} : memref<144x256xf32, #tpu.memory_space<vmem>>, vector<16x256xf32>,
    %c0_23 = arith.constant 0 : index
    %c112 = arith.constant 112 : index
    %23 = vector.load %arg14[%c0_23, %c112] : memref<16x512xf32, #tpu.memory_space<vmem>>, vector<16x256xf32>
    %c16 = arith.constant 16 : index
    %c0_24 = arith.constant 0 : index
    %24 = vector.load %arg16[%c16, %c0_24] : memref<144x256xf32, #tpu.memory_space<vmem>>, vector<16x256xf32>
    tpu.vector_store %arg16[%c16, %c0_24], %23 {strides = array<i32>} : memref<144x256xf32, #tpu.memory_space<vmem>>, vector<16x256xf32>,
    %c0_25 = arith.constant 0 : index
    %c113 = arith.constant 113 : index
    %25 = vector.load %arg14[%c0_25, %c113] : memref<16x512xf32, #tpu.memory_space<vmem>>, vector<16x256xf32>
    %26 = vector.extract_strided_slice %6 {offsets = [2, 0], sizes = [1, 256], strides = [1, 1]} : vector<3x256xf32> to vector<1x256xf32>
    %27 = vector.broadcast %26 : vector<1x256xf32> to vector<16x256xf32>
    %28 = arith.mulf %25, %27 : vector<16x256xf32>
    %c32 = arith.constant 32 : index
    %c0_26 = arith.constant 0 : index
    %29 = vector.load %arg16[%c32, %c0_26] : memref<144x256xf32, #tpu.memory_space<vmem>>, vector<16x256xf32>
    tpu.vector_store %arg16[%c32, %c0_26], %28 {strides = array<i32>} : memref<144x256xf32, #tpu.memory_space<vmem>>, vector<16x256xf32>,
    %c0_27 = arith.constant 0 : index
    %c127 = arith.constant 127 : index
    %30 = vector.load %arg14[%c0_27, %c127] : memref<16x512xf32, #tpu.memory_space<vmem>>, vector<16x256xf32>
    %31 = vector.extract_strided_slice %6 {offsets = [0, 0], sizes = [1, 256], strides = [1, 1]} : vector<3x256xf32> to vector<1x256xf32>
    %32 = vector.broadcast %31 : vector<1x256xf32> to vector<16x256xf32>
    %33 = arith.mulf %30, %32 : vector<16x256xf32>
    %c48 = arith.constant 48 : index
    %c0_28 = arith.constant 0 : index
    %34 = vector.load %arg16[%c48, %c0_28] : memref<144x256xf32, #tpu.memory_space<vmem>>, vector<16x256xf32>
    tpu.vector_store %arg16[%c48, %c0_28], %33 {strides = array<i32>} : memref<144x256xf32, #tpu.memory_space<vmem>>, vector<16x256xf32>,
    %c0_29 = arith.constant 0 : index
    %c128_30 = arith.constant 128 : index
    %35 = vector.load %arg14[%c0_29, %c128_30] : memref<16x512xf32, #tpu.memory_space<vmem>>, vector<16x256xf32>
    %c64 = arith.constant 64 : index
    %c0_31 = arith.constant 0 : index
    %36 = vector.load %arg16[%c64, %c0_31] : memref<144x256xf32, #tpu.memory_space<vmem>>, vector<16x256xf32>
    tpu.vector_store %arg16[%c64, %c0_31], %35 {strides = array<i32>} : memref<144x256xf32, #tpu.memory_space<vmem>>, vector<16x256xf32>,
    %c0_32 = arith.constant 0 : index
    %c129 = arith.constant 129 : index
    %37 = vector.load %arg14[%c0_32, %c129] : memref<16x512xf32, #tpu.memory_space<vmem>>, vector<16x256xf32>
    %38 = vector.extract_strided_slice %6 {offsets = [2, 0], sizes = [1, 256], strides = [1, 1]} : vector<3x256xf32> to vector<1x256xf32>
    %39 = vector.broadcast %38 : vector<1x256xf32> to vector<16x256xf32>
    %40 = arith.mulf %37, %39 : vector<16x256xf32>
    %c80 = arith.constant 80 : index
    %c0_33 = arith.constant 0 : index
    %41 = vector.load %arg16[%c80, %c0_33] : memref<144x256xf32, #tpu.memory_space<vmem>>, vector<16x256xf32>
    tpu.vector_store %arg16[%c80, %c0_33], %40 {strides = array<i32>} : memref<144x256xf32, #tpu.memory_space<vmem>>, vector<16x256xf32>,
    %c0_34 = arith.constant 0 : index
    %c143 = arith.constant 143 : index
    %42 = vector.load %arg14[%c0_34, %c143] : memref<16x512xf32, #tpu.memory_space<vmem>>, vector<16x256xf32>
    %43 = vector.extract_strided_slice %6 {offsets = [0, 0], sizes = [1, 256], strides = [1, 1]} : vector<3x256xf32> to vector<1x256xf32>
    %44 = vector.broadcast %43 : vector<1x256xf32> to vector<16x256xf32>
    %45 = arith.mulf %42, %44 : vector<16x256xf32>
    %c96 = arith.constant 96 : index
    %c0_35 = arith.constant 0 : index
    %46 = vector.load %arg16[%c96, %c0_35] : memref<144x256xf32, #tpu.memory_space<vmem>>, vector<16x256xf32>
    tpu.vector_store %arg16[%c96, %c0_35], %45 {strides = array<i32>} : memref<144x256xf32, #tpu.memory_space<vmem>>, vector<16x256xf32>,
    %c0_36 = arith.constant 0 : index
    %c144 = arith.constant 144 : index
    %47 = vector.load %arg14[%c0_36, %c144] : memref<16x512xf32, #tpu.memory_space<vmem>>, vector<16x256xf32>
    %c112_37 = arith.constant 112 : index
    %c0_38 = arith.constant 0 : index
    %48 = vector.load %arg16[%c112_37, %c0_38] : memref<144x256xf32, #tpu.memory_space<vmem>>, vector<16x256xf32>
    tpu.vector_store %arg16[%c112_37, %c0_38], %47 {strides = array<i32>} : memref<144x256xf32, #tpu.memory_space<vmem>>, vector<16x256xf32>,
    %c0_39 = arith.constant 0 : index
    %c145 = arith.constant 145 : index
    %49 = vector.load %arg14[%c0_39, %c145] : memref<16x512xf32, #tpu.memory_space<vmem>>, vector<16x256xf32>
    %50 = vector.extract_strided_slice %6 {offsets = [2, 0], sizes = [1, 256], strides = [1, 1]} : vector<3x256xf32> to vector<1x256xf32>
    %51 = vector.broadcast %50 : vector<1x256xf32> to vector<16x256xf32>
    %52 = arith.mulf %49, %51 : vector<16x256xf32>
    %c128_40 = arith.constant 128 : index
    %c0_41 = arith.constant 0 : index
    %53 = vector.load %arg16[%c128_40, %c0_41] : memref<144x256xf32, #tpu.memory_space<vmem>>, vector<16x256xf32>
    tpu.vector_store %arg16[%c128_40, %c0_41], %52 {strides = array<i32>} : memref<144x256xf32, #tpu.memory_space<vmem>>, vector<16x256xf32>,
    %c0_42 = arith.constant 0 : index
    %c0_43 = arith.constant 0 : index
    %54 = vector.load %arg16[%c0_42, %c0_43] : memref<144x256xf32, #tpu.memory_space<vmem>>, vector<144x256xf32>
    %cst_44 = arith.constant dense<0.000000e+00> : vector<16x256xf32>
    %55 = tpu.matmul %15, %54, %cst_44 {dimension_numbers = #tpu.dot_dimension_numbers<[1], [0], [0], [1], [0, 0, 1, 1], [], []>} : vector<16x144xf32>, vector<144x256xf32>, vector<16x256xf32> -> vector<16x256xf32>
    %56 = vector.broadcast %16 : vector<16x1xf32> to vector<16x256xf32>
    %57 = arith.addf %55, %56 : vector<16x256xf32>
    %c0_45 = arith.constant 0 : index
    %c0_46 = arith.constant 0 : index
    %c0_47 = arith.constant 0 : index
    %58 = vector.load %arg4[%c0_45, %c0_46, %c0_47] : memref<5x16x144xf32, #tpu.memory_space<vmem>>, vector<1x16x144xf32>
    %59 = vector.shape_cast %58 : vector<1x16x144xf32> to vector<16x144xf32>
    %c0_48 = arith.constant 0 : index
    %c0_49 = arith.constant 0 : index
    %c0_50 = arith.constant 0 : index
    %60 = vector.load %arg5[%c0_48, %c0_49, %c0_50] : memref<5x16x1xf32, #tpu.memory_space<vmem>>, vector<1x16x1xf32>
    %61 = vector.shape_cast %60 : vector<1x16x1xf32> to vector<16x1xf32>
    %c0_51 = arith.constant 0 : index
    %c128_52 = arith.constant 128 : index
    %62 = vector.load %arg14[%c0_51, %c128_52] : memref<16x512xf32, #tpu.memory_space<vmem>>, vector<16x256xf32>
    tpu.vector_store %arg14[%c0_51, %c128_52], %57 {strides = array<i32>} : memref<16x512xf32, #tpu.memory_space<vmem>>, vector<16x256xf32>,
    %c0_53 = arith.constant 0 : index
    %c111_54 = arith.constant 111 : index
    %63 = vector.load %arg14[%c0_53, %c111_54] : memref<16x512xf32, #tpu.memory_space<vmem>>, vector<16x256xf32>
    %64 = vector.extract_strided_slice %6 {offsets = [0, 0], sizes = [1, 256], strides = [1, 1]} : vector<3x256xf32> to vector<1x256xf32>
    %65 = vector.broadcast %64 : vector<1x256xf32> to vector<16x256xf32>
    %66 = arith.mulf %63, %65 : vector<16x256xf32>
    %c0_55 = arith.constant 0 : index
    %c0_56 = arith.constant 0 : index
    %67 = vector.load %arg16[%c0_55, %c0_56] : memref<144x256xf32, #tpu.memory_space<vmem>>, vector<16x256xf32>
    tpu.vector_store %arg16[%c0_55, %c0_56], %66 {strides = array<i32>} : memref<144x256xf32, #tpu.memory_space<vmem>>, vector<16x256xf32>,
    %c0_57 = arith.constant 0 : index
    %c112_58 = arith.constant 112 : index
    %68 = vector.load %arg14[%c0_57, %c112_58] : memref<16x512xf32, #tpu.memory_space<vmem>>, vector<16x256xf32>
    %c16_59 = arith.constant 16 : index
    %c0_60 = arith.constant 0 : index
    %69 = vector.load %arg16[%c16_59, %c0_60] : memref<144x256xf32, #tpu.memory_space<vmem>>, vector<16x256xf32>
    tpu.vector_store %arg16[%c16_59, %c0_60], %68 {strides = array<i32>} : memref<144x256xf32, #tpu.memory_space<vmem>>, vector<16x256xf32>,
    %c0_61 = arith.constant 0 : index
    %c113_62 = arith.constant 113 : index
    %70 = vector.load %arg14[%c0_61, %c113_62] : memref<16x512xf32, #tpu.memory_space<vmem>>, vector<16x256xf32>
    %71 = vector.extract_strided_slice %6 {offsets = [2, 0], sizes = [1, 256], strides = [1, 1]} : vector<3x256xf32> to vector<1x256xf32>
    %72 = vector.broadcast %71 : vector<1x256xf32> to vector<16x256xf32>
    %73 = arith.mulf %70, %72 : vector<16x256xf32>
    %c32_63 = arith.constant 32 : index
    %c0_64 = arith.constant 0 : index
    %74 = vector.load %arg16[%c32_63, %c0_64] : memref<144x256xf32, #tpu.memory_space<vmem>>, vector<16x256xf32>
    tpu.vector_store %arg16[%c32_63, %c0_64], %73 {strides = array<i32>} : memref<144x256xf32, #tpu.memory_space<vmem>>, vector<16x256xf32>,
    %c0_65 = arith.constant 0 : index
    %c127_66 = arith.constant 127 : index
    %75 = vector.load %arg14[%c0_65, %c127_66] : memref<16x512xf32, #tpu.memory_space<vmem>>, vector<16x256xf32>
    %76 = vector.extract_strided_slice %6 {offsets = [0, 0], sizes = [1, 256], strides = [1, 1]} : vector<3x256xf32> to vector<1x256xf32>
    %77 = vector.broadcast %76 : vector<1x256xf32> to vector<16x256xf32>
    %78 = arith.mulf %75, %77 : vector<16x256xf32>
    %c48_67 = arith.constant 48 : index
    %c0_68 = arith.constant 0 : index
    %79 = vector.load %arg16[%c48_67, %c0_68] : memref<144x256xf32, #tpu.memory_space<vmem>>, vector<16x256xf32>
    tpu.vector_store %arg16[%c48_67, %c0_68], %78 {strides = array<i32>} : memref<144x256xf32, #tpu.memory_space<vmem>>, vector<16x256xf32>,
    %c0_69 = arith.constant 0 : index
    %c128_70 = arith.constant 128 : index
    %80 = vector.load %arg14[%c0_69, %c128_70] : memref<16x512xf32, #tpu.memory_space<vmem>>, vector<16x256xf32>
    %c64_71 = arith.constant 64 : index
    %c0_72 = arith.constant 0 : index
    %81 = vector.load %arg16[%c64_71, %c0_72] : memref<144x256xf32, #tpu.memory_space<vmem>>, vector<16x256xf32>
    tpu.vector_store %arg16[%c64_71, %c0_72], %80 {strides = array<i32>} : memref<144x256xf32, #tpu.memory_space<vmem>>, vector<16x256xf32>,
    %c0_73 = arith.constant 0 : index
    %c129_74 = arith.constant 129 : index
    %82 = vector.load %arg14[%c0_73, %c129_74] : memref<16x512xf32, #tpu.memory_space<vmem>>, vector<16x256xf32>
    %83 = vector.extract_strided_slice %6 {offsets = [2, 0], sizes = [1, 256], strides = [1, 1]} : vector<3x256xf32> to vector<1x256xf32>
    %84 = vector.broadcast %83 : vector<1x256xf32> to vector<16x256xf32>
    %85 = arith.mulf %82, %84 : vector<16x256xf32>
    %c80_75 = arith.constant 80 : index
    %c0_76 = arith.constant 0 : index
    %86 = vector.load %arg16[%c80_75, %c0_76] : memref<144x256xf32, #tpu.memory_space<vmem>>, vector<16x256xf32>
    tpu.vector_store %arg16[%c80_75, %c0_76], %85 {strides = array<i32>} : memref<144x256xf32, #tpu.memory_space<vmem>>, vector<16x256xf32>,
    %c0_77 = arith.constant 0 : index
    %c143_78 = arith.constant 143 : index
    %87 = vector.load %arg14[%c0_77, %c143_78] : memref<16x512xf32, #tpu.memory_space<vmem>>, vector<16x256xf32>
    %88 = vector.extract_strided_slice %6 {offsets = [0, 0], sizes = [1, 256], strides = [1, 1]} : vector<3x256xf32> to vector<1x256xf32>
    %89 = vector.broadcast %88 : vector<1x256xf32> to vector<16x256xf32>
    %90 = arith.mulf %87, %89 : vector<16x256xf32>
    %c96_79 = arith.constant 96 : index
    %c0_80 = arith.constant 0 : index
    %91 = vector.load %arg16[%c96_79, %c0_80] : memref<144x256xf32, #tpu.memory_space<vmem>>, vector<16x256xf32>
    tpu.vector_store %arg16[%c96_79, %c0_80], %90 {strides = array<i32>} : memref<144x256xf32, #tpu.memory_space<vmem>>, vector<16x256xf32>,
    %c0_81 = arith.constant 0 : index
    %c144_82 = arith.constant 144 : index
    %92 = vector.load %arg14[%c0_81, %c144_82] : memref<16x512xf32, #tpu.memory_space<vmem>>, vector<16x256xf32>
    %c112_83 = arith.constant 112 : index
    %c0_84 = arith.constant 0 : index
    %93 = vector.load %arg16[%c112_83, %c0_84] : memref<144x256xf32, #tpu.memory_space<vmem>>, vector<16x256xf32>
    tpu.vector_store %arg16[%c112_83, %c0_84], %92 {strides = array<i32>} : memref<144x256xf32, #tpu.memory_space<vmem>>, vector<16x256xf32>,
    %c0_85 = arith.constant 0 : index
    %c145_86 = arith.constant 145 : index
    %94 = vector.load %arg14[%c0_85, %c145_86] : memref<16x512xf32, #tpu.memory_space<vmem>>, vector<16x256xf32>
    %95 = vector.extract_strided_slice %6 {offsets = [2, 0], sizes = [1, 256], strides = [1, 1]} : vector<3x256xf32> to vector<1x256xf32>
    %96 = vector.broadcast %95 : vector<1x256xf32> to vector<16x256xf32>
    %97 = arith.mulf %94, %96 : vector<16x256xf32>
    %c128_87 = arith.constant 128 : index
    %c0_88 = arith.constant 0 : index
    %98 = vector.load %arg16[%c128_87, %c0_88] : memref<144x256xf32, #tpu.memory_space<vmem>>, vector<16x256xf32>
    tpu.vector_store %arg16[%c128_87, %c0_88], %97 {strides = array<i32>} : memref<144x256xf32, #tpu.memory_space<vmem>>, vector<16x256xf32>,
    %c0_89 = arith.constant 0 : index
    %c0_90 = arith.constant 0 : index
    %99 = vector.load %arg16[%c0_89, %c0_90] : memref<144x256xf32, #tpu.memory_space<vmem>>, vector<144x256xf32>
    %cst_91 = arith.constant dense<0.000000e+00> : vector<16x256xf32>
    %100 = tpu.matmul %59, %99, %cst_91 {dimension_numbers = #tpu.dot_dimension_numbers<[1], [0], [0], [1], [0, 0, 1, 1], [], []>} : vector<16x144xf32>, vector<144x256xf32>, vector<16x256xf32> -> vector<16x256xf32>
    %101 = vector.broadcast %61 : vector<16x1xf32> to vector<16x256xf32>
    %102 = arith.addf %100, %101 : vector<16x256xf32>
    %cst_92 = arith.constant 0.000000e+00 : f32
    %103 = vector.broadcast %cst_92 : f32 to vector<16x256xf32>
    %104 = arith.maximumf %102, %103 : vector<16x256xf32>
    %c1 = arith.constant 1 : index
    %c0_93 = arith.constant 0 : index
    %c0_94 = arith.constant 0 : index
    %105 = vector.load %arg4[%c1, %c0_93, %c0_94] : memref<5x16x144xf32, #tpu.memory_space<vmem>>, vector<1x16x144xf32>
    %106 = vector.shape_cast %105 : vector<1x16x144xf32> to vector<16x144xf32>
    %c1_95 = arith.constant 1 : index
    %c0_96 = arith.constant 0 : index
    %c0_97 = arith.constant 0 : index
    %107 = vector.load %arg5[%c1_95, %c0_96, %c0_97] : memref<5x16x1xf32, #tpu.memory_space<vmem>>, vector<1x16x1xf32>
    %108 = vector.shape_cast %107 : vector<1x16x1xf32> to vector<16x1xf32>
    %c0_98 = arith.constant 0 : index
    %c128_99 = arith.constant 128 : index
    %109 = vector.load %arg14[%c0_98, %c128_99] : memref<16x512xf32, #tpu.memory_space<vmem>>, vector<16x256xf32>
    tpu.vector_store %arg14[%c0_98, %c128_99], %104 {strides = array<i32>} : memref<16x512xf32, #tpu.memory_space<vmem>>, vector<16x256xf32>,
    %c0_100 = arith.constant 0 : index
    %c111_101 = arith.constant 111 : index
    %110 = vector.load %arg14[%c0_100, %c111_101] : memref<16x512xf32, #tpu.memory_space<vmem>>, vector<16x256xf32>
    %111 = vector.extract_strided_slice %6 {offsets = [0, 0], sizes = [1, 256], strides = [1, 1]} : vector<3x256xf32> to vector<1x256xf32>
    %112 = vector.broadcast %111 : vector<1x256xf32> to vector<16x256xf32>
    %113 = arith.mulf %110, %112 : vector<16x256xf32>
    %c0_102 = arith.constant 0 : index
    %c0_103 = arith.constant 0 : index
    %114 = vector.load %arg16[%c0_102, %c0_103] : memref<144x256xf32, #tpu.memory_space<vmem>>, vector<16x256xf32>
    tpu.vector_store %arg16[%c0_102, %c0_103], %113 {strides = array<i32>} : memref<144x256xf32, #tpu.memory_space<vmem>>, vector<16x256xf32>,
    %c0_104 = arith.constant 0 : index
    %c112_105 = arith.constant 112 : index
    %115 = vector.load %arg14[%c0_104, %c112_105] : memref<16x512xf32, #tpu.memory_space<vmem>>, vector<16x256xf32>
    %c16_106 = arith.constant 16 : index
    %c0_107 = arith.constant 0 : index
    %116 = vector.load %arg16[%c16_106, %c0_107] : memref<144x256xf32, #tpu.memory_space<vmem>>, vector<16x256xf32>
    tpu.vector_store %arg16[%c16_106, %c0_107], %115 {strides = array<i32>} : memref<144x256xf32, #tpu.memory_space<vmem>>, vector<16x256xf32>,
    %c0_108 = arith.constant 0 : index
    %c113_109 = arith.constant 113 : index
    %117 = vector.load %arg14[%c0_108, %c113_109] : memref<16x512xf32, #tpu.memory_space<vmem>>, vector<16x256xf32>
    %118 = vector.extract_strided_slice %6 {offsets = [2, 0], sizes = [1, 256], strides = [1, 1]} : vector<3x256xf32> to vector<1x256xf32>
    %119 = vector.broadcast %118 : vector<1x256xf32> to vector<16x256xf32>
    %120 = arith.mulf %117, %119 : vector<16x256xf32>
    %c32_110 = arith.constant 32 : index
    %c0_111 = arith.constant 0 : index
    %121 = vector.load %arg16[%c32_110, %c0_111] : memref<144x256xf32, #tpu.memory_space<vmem>>, vector<16x256xf32>
    tpu.vector_store %arg16[%c32_110, %c0_111], %120 {strides = array<i32>} : memref<144x256xf32, #tpu.memory_space<vmem>>, vector<16x256xf32>,
    %c0_112 = arith.constant 0 : index
    %c127_113 = arith.constant 127 : index
    %122 = vector.load %arg14[%c0_112, %c127_113] : memref<16x512xf32, #tpu.memory_space<vmem>>, vector<16x256xf32>
    %123 = vector.extract_strided_slice %6 {offsets = [0, 0], sizes = [1, 256], strides = [1, 1]} : vector<3x256xf32> to vector<1x256xf32>
    %124 = vector.broadcast %123 : vector<1x256xf32> to vector<16x256xf32>
    %125 = arith.mulf %122, %124 : vector<16x256xf32>
    %c48_114 = arith.constant 48 : index
    %c0_115 = arith.constant 0 : index
    %126 = vector.load %arg16[%c48_114, %c0_115] : memref<144x256xf32, #tpu.memory_space<vmem>>, vector<16x256xf32>
    tpu.vector_store %arg16[%c48_114, %c0_115], %125 {strides = array<i32>} : memref<144x256xf32, #tpu.memory_space<vmem>>, vector<16x256xf32>,
    %c0_116 = arith.constant 0 : index
    %c128_117 = arith.constant 128 : index
    %127 = vector.load %arg14[%c0_116, %c128_117] : memref<16x512xf32, #tpu.memory_space<vmem>>, vector<16x256xf32>
    %c64_118 = arith.constant 64 : index
    %c0_119 = arith.constant 0 : index
    %128 = vector.load %arg16[%c64_118, %c0_119] : memref<144x256xf32, #tpu.memory_space<vmem>>, vector<16x256xf32>
    tpu.vector_store %arg16[%c64_118, %c0_119], %127 {strides = array<i32>} : memref<144x256xf32, #tpu.memory_space<vmem>>, vector<16x256xf32>,
    %c0_120 = arith.constant 0 : index
    %c129_121 = arith.constant 129 : index
    %129 = vector.load %arg14[%c0_120, %c129_121] : memref<16x512xf32, #tpu.memory_space<vmem>>, vector<16x256xf32>
    %130 = vector.extract_strided_slice %6 {offsets = [2, 0], sizes = [1, 256], strides = [1, 1]} : vector<3x256xf32> to vector<1x256xf32>
    %131 = vector.broadcast %130 : vector<1x256xf32> to vector<16x256xf32>
    %132 = arith.mulf %129, %131 : vector<16x256xf32>
    %c80_122 = arith.constant 80 : index
    %c0_123 = arith.constant 0 : index
    %133 = vector.load %arg16[%c80_122, %c0_123] : memref<144x256xf32, #tpu.memory_space<vmem>>, vector<16x256xf32>
    tpu.vector_store %arg16[%c80_122, %c0_123], %132 {strides = array<i32>} : memref<144x256xf32, #tpu.memory_space<vmem>>, vector<16x256xf32>,
    %c0_124 = arith.constant 0 : index
    %c143_125 = arith.constant 143 : index
    %134 = vector.load %arg14[%c0_124, %c143_125] : memref<16x512xf32, #tpu.memory_space<vmem>>, vector<16x256xf32>
    %135 = vector.extract_strided_slice %6 {offsets = [0, 0], sizes = [1, 256], strides = [1, 1]} : vector<3x256xf32> to vector<1x256xf32>
    %136 = vector.broadcast %135 : vector<1x256xf32> to vector<16x256xf32>
    %137 = arith.mulf %134, %136 : vector<16x256xf32>
    %c96_126 = arith.constant 96 : index
    %c0_127 = arith.constant 0 : index
    %138 = vector.load %arg16[%c96_126, %c0_127] : memref<144x256xf32, #tpu.memory_space<vmem>>, vector<16x256xf32>
    tpu.vector_store %arg16[%c96_126, %c0_127], %137 {strides = array<i32>} : memref<144x256xf32, #tpu.memory_space<vmem>>, vector<16x256xf32>,
    %c0_128 = arith.constant 0 : index
    %c144_129 = arith.constant 144 : index
    %139 = vector.load %arg14[%c0_128, %c144_129] : memref<16x512xf32, #tpu.memory_space<vmem>>, vector<16x256xf32>
    %c112_130 = arith.constant 112 : index
    %c0_131 = arith.constant 0 : index
    %140 = vector.load %arg16[%c112_130, %c0_131] : memref<144x256xf32, #tpu.memory_space<vmem>>, vector<16x256xf32>
    tpu.vector_store %arg16[%c112_130, %c0_131], %139 {strides = array<i32>} : memref<144x256xf32, #tpu.memory_space<vmem>>, vector<16x256xf32>,
    %c0_132 = arith.constant 0 : index
    %c145_133 = arith.constant 145 : index
    %141 = vector.load %arg14[%c0_132, %c145_133] : memref<16x512xf32, #tpu.memory_space<vmem>>, vector<16x256xf32>
    %142 = vector.extract_strided_slice %6 {offsets = [2, 0], sizes = [1, 256], strides = [1, 1]} : vector<3x256xf32> to vector<1x256xf32>
    %143 = vector.broadcast %142 : vector<1x256xf32> to vector<16x256xf32>
    %144 = arith.mulf %141, %143 : vector<16x256xf32>
    %c128_134 = arith.constant 128 : index
    %c0_135 = arith.constant 0 : index
    %145 = vector.load %arg16[%c128_134, %c0_135] : memref<144x256xf32, #tpu.memory_space<vmem>>, vector<16x256xf32>
    tpu.vector_store %arg16[%c128_134, %c0_135], %144 {strides = array<i32>} : memref<144x256xf32, #tpu.memory_space<vmem>>, vector<16x256xf32>,
    %c0_136 = arith.constant 0 : index
    %c0_137 = arith.constant 0 : index
    %146 = vector.load %arg16[%c0_136, %c0_137] : memref<144x256xf32, #tpu.memory_space<vmem>>, vector<144x256xf32>
    %cst_138 = arith.constant dense<0.000000e+00> : vector<16x256xf32>
    %147 = tpu.matmul %106, %146, %cst_138 {dimension_numbers = #tpu.dot_dimension_numbers<[1], [0], [0], [1], [0, 0, 1, 1], [], []>} : vector<16x144xf32>, vector<144x256xf32>, vector<16x256xf32> -> vector<16x256xf32>
    %148 = vector.broadcast %108 : vector<16x1xf32> to vector<16x256xf32>
    %149 = arith.addf %147, %148 : vector<16x256xf32>
    %cst_139 = arith.constant 1.000000e-01 : f32
    %150 = vector.broadcast %cst_139 : f32 to vector<16x256xf32>
    %151 = arith.mulf %150, %149 : vector<16x256xf32>
    %152 = arith.addf %57, %151 : vector<16x256xf32>
    %c2 = arith.constant 2 : index
    %c0_140 = arith.constant 0 : index
    %c0_141 = arith.constant 0 : index
    %153 = vector.load %arg4[%c2, %c0_140, %c0_141] : memref<5x16x144xf32, #tpu.memory_space<vmem>>, vector<1x16x144xf32>
    %154 = vector.shape_cast %153 : vector<1x16x144xf32> to vector<16x144xf32>
    %c2_142 = arith.constant 2 : index
    %c0_143 = arith.constant 0 : index
    %c0_144 = arith.constant 0 : index
    %155 = vector.load %arg5[%c2_142, %c0_143, %c0_144] : memref<5x16x1xf32, #tpu.memory_space<vmem>>, vector<1x16x1xf32>
    %156 = vector.shape_cast %155 : vector<1x16x1xf32> to vector<16x1xf32>
    %c0_145 = arith.constant 0 : index
    %c128_146 = arith.constant 128 : index
    %157 = vector.load %arg14[%c0_145, %c128_146] : memref<16x512xf32, #tpu.memory_space<vmem>>, vector<16x256xf32>
    tpu.vector_store %arg14[%c0_145, %c128_146], %152 {strides = array<i32>} : memref<16x512xf32, #tpu.memory_space<vmem>>, vector<16x256xf32>,
    %c0_147 = arith.constant 0 : index
    %c111_148 = arith.constant 111 : index
    %158 = vector.load %arg14[%c0_147, %c111_148] : memref<16x512xf32, #tpu.memory_space<vmem>>, vector<16x256xf32>
    %159 = vector.extract_strided_slice %6 {offsets = [0, 0], sizes = [1, 256], strides = [1, 1]} : vector<3x256xf32> to vector<1x256xf32>
    %160 = vector.broadcast %159 : vector<1x256xf32> to vector<16x256xf32>
    %161 = arith.mulf %158, %160 : vector<16x256xf32>
    %c0_149 = arith.constant 0 : index
    %c0_150 = arith.constant 0 : index
    %162 = vector.load %arg16[%c0_149, %c0_150] : memref<144x256xf32, #tpu.memory_space<vmem>>, vector<16x256xf32>
    tpu.vector_store %arg16[%c0_149, %c0_150], %161 {strides = array<i32>} : memref<144x256xf32, #tpu.memory_space<vmem>>, vector<16x256xf32>,
    %c0_151 = arith.constant 0 : index
    %c112_152 = arith.constant 112 : index
    %163 = vector.load %arg14[%c0_151, %c112_152] : memref<16x512xf32, #tpu.memory_space<vmem>>, vector<16x256xf32>
    %c16_153 = arith.constant 16 : index
    %c0_154 = arith.constant 0 : index
    %164 = vector.load %arg16[%c16_153, %c0_154] : memref<144x256xf32, #tpu.memory_space<vmem>>, vector<16x256xf32>
    tpu.vector_store %arg16[%c16_153, %c0_154], %163 {strides = array<i32>} : memref<144x256xf32, #tpu.memory_space<vmem>>, vector<16x256xf32>,
    %c0_155 = arith.constant 0 : index
    %c113_156 = arith.constant 113 : index
    %165 = vector.load %arg14[%c0_155, %c113_156] : memref<16x512xf32, #tpu.memory_space<vmem>>, vector<16x256xf32>
    %166 = vector.extract_strided_slice %6 {offsets = [2, 0], sizes = [1, 256], strides = [1, 1]} : vector<3x256xf32> to vector<1x256xf32>
    %167 = vector.broadcast %166 : vector<1x256xf32> to vector<16x256xf32>
    %168 = arith.mulf %165, %167 : vector<16x256xf32>
    %c32_157 = arith.constant 32 : index
    %c0_158 = arith.constant 0 : index
    %169 = vector.load %arg16[%c32_157, %c0_158] : memref<144x256xf32, #tpu.memory_space<vmem>>, vector<16x256xf32>
    tpu.vector_store %arg16[%c32_157, %c0_158], %168 {strides = array<i32>} : memref<144x256xf32, #tpu.memory_space<vmem>>, vector<16x256xf32>,
    %c0_159 = arith.constant 0 : index
    %c127_160 = arith.constant 127 : index
    %170 = vector.load %arg14[%c0_159, %c127_160] : memref<16x512xf32, #tpu.memory_space<vmem>>, vector<16x256xf32>
    %171 = vector.extract_strided_slice %6 {offsets = [0, 0], sizes = [1, 256], strides = [1, 1]} : vector<3x256xf32> to vector<1x256xf32>
    %172 = vector.broadcast %171 : vector<1x256xf32> to vector<16x256xf32>
    %173 = arith.mulf %170, %172 : vector<16x256xf32>
    %c48_161 = arith.constant 48 : index
    %c0_162 = arith.constant 0 : index
    %174 = vector.load %arg16[%c48_161, %c0_162] : memref<144x256xf32, #tpu.memory_space<vmem>>, vector<16x256xf32>
    tpu.vector_store %arg16[%c48_161, %c0_162], %173 {strides = array<i32>} : memref<144x256xf32, #tpu.memory_space<vmem>>, vector<16x256xf32>,
    %c0_163 = arith.constant 0 : index
    %c128_164 = arith.constant 128 : index
    %175 = vector.load %arg14[%c0_163, %c128_164] : memref<16x512xf32, #tpu.memory_space<vmem>>, vector<16x256xf32>
    %c64_165 = arith.constant 64 : index
    %c0_166 = arith.constant 0 : index
    %176 = vector.load %arg16[%c64_165, %c0_166] : memref<144x256xf32, #tpu.memory_space<vmem>>, vector<16x256xf32>
    tpu.vector_store %arg16[%c64_165, %c0_166], %175 {strides = array<i32>} : memref<144x256xf32, #tpu.memory_space<vmem>>, vector<16x256xf32>,
    %c0_167 = arith.constant 0 : index
    %c129_168 = arith.constant 129 : index
    %177 = vector.load %arg14[%c0_167, %c129_168] : memref<16x512xf32, #tpu.memory_space<vmem>>, vector<16x256xf32>
    %178 = vector.extract_strided_slice %6 {offsets = [2, 0], sizes = [1, 256], strides = [1, 1]} : vector<3x256xf32> to vector<1x256xf32>
    %179 = vector.broadcast %178 : vector<1x256xf32> to vector<16x256xf32>
    %180 = arith.mulf %177, %179 : vector<16x256xf32>
    %c80_169 = arith.constant 80 : index
    %c0_170 = arith.constant 0 : index
    %181 = vector.load %arg16[%c80_169, %c0_170] : memref<144x256xf32, #tpu.memory_space<vmem>>, vector<16x256xf32>
    tpu.vector_store %arg16[%c80_169, %c0_170], %180 {strides = array<i32>} : memref<144x256xf32, #tpu.memory_space<vmem>>, vector<16x256xf32>,
    %c0_171 = arith.constant 0 : index
    %c143_172 = arith.constant 143 : index
    %182 = vector.load %arg14[%c0_171, %c143_172] : memref<16x512xf32, #tpu.memory_space<vmem>>, vector<16x256xf32>
    %183 = vector.extract_strided_slice %6 {offsets = [0, 0], sizes = [1, 256], strides = [1, 1]} : vector<3x256xf32> to vector<1x256xf32>
    %184 = vector.broadcast %183 : vector<1x256xf32> to vector<16x256xf32>
    %185 = arith.mulf %182, %184 : vector<16x256xf32>
    %c96_173 = arith.constant 96 : index
    %c0_174 = arith.constant 0 : index
    %186 = vector.load %arg16[%c96_173, %c0_174] : memref<144x256xf32, #tpu.memory_space<vmem>>, vector<16x256xf32>
    tpu.vector_store %arg16[%c96_173, %c0_174], %185 {strides = array<i32>} : memref<144x256xf32, #tpu.memory_space<vmem>>, vector<16x256xf32>,
    %c0_175 = arith.constant 0 : index
    %c144_176 = arith.constant 144 : index
    %187 = vector.load %arg14[%c0_175, %c144_176] : memref<16x512xf32, #tpu.memory_space<vmem>>, vector<16x256xf32>
    %c112_177 = arith.constant 112 : index
    %c0_178 = arith.constant 0 : index
    %188 = vector.load %arg16[%c112_177, %c0_178] : memref<144x256xf32, #tpu.memory_space<vmem>>, vector<16x256xf32>
    tpu.vector_store %arg16[%c112_177, %c0_178], %187 {strides = array<i32>} : memref<144x256xf32, #tpu.memory_space<vmem>>, vector<16x256xf32>,
    %c0_179 = arith.constant 0 : index
    %c145_180 = arith.constant 145 : index
    %189 = vector.load %arg14[%c0_179, %c145_180] : memref<16x512xf32, #tpu.memory_space<vmem>>, vector<16x256xf32>
    %190 = vector.extract_strided_slice %6 {offsets = [2, 0], sizes = [1, 256], strides = [1, 1]} : vector<3x256xf32> to vector<1x256xf32>
    %191 = vector.broadcast %190 : vector<1x256xf32> to vector<16x256xf32>
    %192 = arith.mulf %189, %191 : vector<16x256xf32>
    %c128_181 = arith.constant 128 : index
    %c0_182 = arith.constant 0 : index
    %193 = vector.load %arg16[%c128_181, %c0_182] : memref<144x256xf32, #tpu.memory_space<vmem>>, vector<16x256xf32>
    tpu.vector_store %arg16[%c128_181, %c0_182], %192 {strides = array<i32>} : memref<144x256xf32, #tpu.memory_space<vmem>>, vector<16x256xf32>,
    %c0_183 = arith.constant 0 : index
    %c0_184 = arith.constant 0 : index
    %194 = vector.load %arg16[%c0_183, %c0_184] : memref<144x256xf32, #tpu.memory_space<vmem>>, vector<144x256xf32>
    %cst_185 = arith.constant dense<0.000000e+00> : vector<16x256xf32>
    %195 = tpu.matmul %154, %194, %cst_185 {dimension_numbers = #tpu.dot_dimension_numbers<[1], [0], [0], [1], [0, 0, 1, 1], [], []>} : vector<16x144xf32>, vector<144x256xf32>, vector<16x256xf32> -> vector<16x256xf32>
    %196 = vector.broadcast %156 : vector<16x1xf32> to vector<16x256xf32>
    %197 = arith.addf %195, %196 : vector<16x256xf32>
    %cst_186 = arith.constant 0.000000e+00 : f32
    %198 = vector.broadcast %cst_186 : f32 to vector<16x256xf32>
    %199 = arith.maximumf %197, %198 : vector<16x256xf32>
    %c3 = arith.constant 3 : index
    %c0_187 = arith.constant 0 : index
    %c0_188 = arith.constant 0 : index
    %200 = vector.load %arg4[%c3, %c0_187, %c0_188] : memref<5x16x144xf32, #tpu.memory_space<vmem>>, vector<1x16x144xf32>
    %201 = vector.shape_cast %200 : vector<1x16x144xf32> to vector<16x144xf32>
    %c3_189 = arith.constant 3 : index
    %c0_190 = arith.constant 0 : index
    %c0_191 = arith.constant 0 : index
    %202 = vector.load %arg5[%c3_189, %c0_190, %c0_191] : memref<5x16x1xf32, #tpu.memory_space<vmem>>, vector<1x16x1xf32>
    %203 = vector.shape_cast %202 : vector<1x16x1xf32> to vector<16x1xf32>
    %c0_192 = arith.constant 0 : index
    %c128_193 = arith.constant 128 : index
    %204 = vector.load %arg14[%c0_192, %c128_193] : memref<16x512xf32, #tpu.memory_space<vmem>>, vector<16x256xf32>
    tpu.vector_store %arg14[%c0_192, %c128_193], %199 {strides = array<i32>} : memref<16x512xf32, #tpu.memory_space<vmem>>, vector<16x256xf32>,
    %c0_194 = arith.constant 0 : index
    %c111_195 = arith.constant 111 : index
    %205 = vector.load %arg14[%c0_194, %c111_195] : memref<16x512xf32, #tpu.memory_space<vmem>>, vector<16x256xf32>
    %206 = vector.extract_strided_slice %6 {offsets = [0, 0], sizes = [1, 256], strides = [1, 1]} : vector<3x256xf32> to vector<1x256xf32>
    %207 = vector.broadcast %206 : vector<1x256xf32> to vector<16x256xf32>
    %208 = arith.mulf %205, %207 : vector<16x256xf32>
    %c0_196 = arith.constant 0 : index
    %c0_197 = arith.constant 0 : index
    %209 = vector.load %arg16[%c0_196, %c0_197] : memref<144x256xf32, #tpu.memory_space<vmem>>, vector<16x256xf32>
    tpu.vector_store %arg16[%c0_196, %c0_197], %208 {strides = array<i32>} : memref<144x256xf32, #tpu.memory_space<vmem>>, vector<16x256xf32>,
    %c0_198 = arith.constant 0 : index
    %c112_199 = arith.constant 112 : index
    %210 = vector.load %arg14[%c0_198, %c112_199] : memref<16x512xf32, #tpu.memory_space<vmem>>, vector<16x256xf32>
    %c16_200 = arith.constant 16 : index
    %c0_201 = arith.constant 0 : index
    %211 = vector.load %arg16[%c16_200, %c0_201] : memref<144x256xf32, #tpu.memory_space<vmem>>, vector<16x256xf32>
    tpu.vector_store %arg16[%c16_200, %c0_201], %210 {strides = array<i32>} : memref<144x256xf32, #tpu.memory_space<vmem>>, vector<16x256xf32>,
    %c0_202 = arith.constant 0 : index
    %c113_203 = arith.constant 113 : index
    %212 = vector.load %arg14[%c0_202, %c113_203] : memref<16x512xf32, #tpu.memory_space<vmem>>, vector<16x256xf32>
    %213 = vector.extract_strided_slice %6 {offsets = [2, 0], sizes = [1, 256], strides = [1, 1]} : vector<3x256xf32> to vector<1x256xf32>
    %214 = vector.broadcast %213 : vector<1x256xf32> to vector<16x256xf32>
    %215 = arith.mulf %212, %214 : vector<16x256xf32>
    %c32_204 = arith.constant 32 : index
    %c0_205 = arith.constant 0 : index
    %216 = vector.load %arg16[%c32_204, %c0_205] : memref<144x256xf32, #tpu.memory_space<vmem>>, vector<16x256xf32>
    tpu.vector_store %arg16[%c32_204, %c0_205], %215 {strides = array<i32>} : memref<144x256xf32, #tpu.memory_space<vmem>>, vector<16x256xf32>,
    %c0_206 = arith.constant 0 : index
    %c127_207 = arith.constant 127 : index
    %217 = vector.load %arg14[%c0_206, %c127_207] : memref<16x512xf32, #tpu.memory_space<vmem>>, vector<16x256xf32>
    %218 = vector.extract_strided_slice %6 {offsets = [0, 0], sizes = [1, 256], strides = [1, 1]} : vector<3x256xf32> to vector<1x256xf32>
    %219 = vector.broadcast %218 : vector<1x256xf32> to vector<16x256xf32>
    %220 = arith.mulf %217, %219 : vector<16x256xf32>
    %c48_208 = arith.constant 48 : index
    %c0_209 = arith.constant 0 : index
    %221 = vector.load %arg16[%c48_208, %c0_209] : memref<144x256xf32, #tpu.memory_space<vmem>>, vector<16x256xf32>
    tpu.vector_store %arg16[%c48_208, %c0_209], %220 {strides = array<i32>} : memref<144x256xf32, #tpu.memory_space<vmem>>, vector<16x256xf32>,
    %c0_210 = arith.constant 0 : index
    %c128_211 = arith.constant 128 : index
    %222 = vector.load %arg14[%c0_210, %c128_211] : memref<16x512xf32, #tpu.memory_space<vmem>>, vector<16x256xf32>
    %c64_212 = arith.constant 64 : index
    %c0_213 = arith.constant 0 : index
    %223 = vector.load %arg16[%c64_212, %c0_213] : memref<144x256xf32, #tpu.memory_space<vmem>>, vector<16x256xf32>
    tpu.vector_store %arg16[%c64_212, %c0_213], %222 {strides = array<i32>} : memref<144x256xf32, #tpu.memory_space<vmem>>, vector<16x256xf32>,
    %c0_214 = arith.constant 0 : index
    %c129_215 = arith.constant 129 : index
    %224 = vector.load %arg14[%c0_214, %c129_215] : memref<16x512xf32, #tpu.memory_space<vmem>>, vector<16x256xf32>
    %225 = vector.extract_strided_slice %6 {offsets = [2, 0], sizes = [1, 256], strides = [1, 1]} : vector<3x256xf32> to vector<1x256xf32>
    %226 = vector.broadcast %225 : vector<1x256xf32> to vector<16x256xf32>
    %227 = arith.mulf %224, %226 : vector<16x256xf32>
    %c80_216 = arith.constant 80 : index
    %c0_217 = arith.constant 0 : index
    %228 = vector.load %arg16[%c80_216, %c0_217] : memref<144x256xf32, #tpu.memory_space<vmem>>, vector<16x256xf32>
    tpu.vector_store %arg16[%c80_216, %c0_217], %227 {strides = array<i32>} : memref<144x256xf32, #tpu.memory_space<vmem>>, vector<16x256xf32>,
    %c0_218 = arith.constant 0 : index
    %c143_219 = arith.constant 143 : index
    %229 = vector.load %arg14[%c0_218, %c143_219] : memref<16x512xf32, #tpu.memory_space<vmem>>, vector<16x256xf32>
    %230 = vector.extract_strided_slice %6 {offsets = [0, 0], sizes = [1, 256], strides = [1, 1]} : vector<3x256xf32> to vector<1x256xf32>
    %231 = vector.broadcast %230 : vector<1x256xf32> to vector<16x256xf32>
    %232 = arith.mulf %229, %231 : vector<16x256xf32>
    %c96_220 = arith.constant 96 : index
    %c0_221 = arith.constant 0 : index
    %233 = vector.load %arg16[%c96_220, %c0_221] : memref<144x256xf32, #tpu.memory_space<vmem>>, vector<16x256xf32>
    tpu.vector_store %arg16[%c96_220, %c0_221], %232 {strides = array<i32>} : memref<144x256xf32, #tpu.memory_space<vmem>>, vector<16x256xf32>,
    %c0_222 = arith.constant 0 : index
    %c144_223 = arith.constant 144 : index
    %234 = vector.load %arg14[%c0_222, %c144_223] : memref<16x512xf32, #tpu.memory_space<vmem>>, vector<16x256xf32>
    %c112_224 = arith.constant 112 : index
    %c0_225 = arith.constant 0 : index
    %235 = vector.load %arg16[%c112_224, %c0_225] : memref<144x256xf32, #tpu.memory_space<vmem>>, vector<16x256xf32>
    tpu.vector_store %arg16[%c112_224, %c0_225], %234 {strides = array<i32>} : memref<144x256xf32, #tpu.memory_space<vmem>>, vector<16x256xf32>,
    %c0_226 = arith.constant 0 : index
    %c145_227 = arith.constant 145 : index
    %236 = vector.load %arg14[%c0_226, %c145_227] : memref<16x512xf32, #tpu.memory_space<vmem>>, vector<16x256xf32>
    %237 = vector.extract_strided_slice %6 {offsets = [2, 0], sizes = [1, 256], strides = [1, 1]} : vector<3x256xf32> to vector<1x256xf32>
    %238 = vector.broadcast %237 : vector<1x256xf32> to vector<16x256xf32>
    %239 = arith.mulf %236, %238 : vector<16x256xf32>
    %c128_228 = arith.constant 128 : index
    %c0_229 = arith.constant 0 : index
    %240 = vector.load %arg16[%c128_228, %c0_229] : memref<144x256xf32, #tpu.memory_space<vmem>>, vector<16x256xf32>
    tpu.vector_store %arg16[%c128_228, %c0_229], %239 {strides = array<i32>} : memref<144x256xf32, #tpu.memory_space<vmem>>, vector<16x256xf32>,
    %c0_230 = arith.constant 0 : index
    %c0_231 = arith.constant 0 : index
    %241 = vector.load %arg16[%c0_230, %c0_231] : memref<144x256xf32, #tpu.memory_space<vmem>>, vector<144x256xf32>
    %cst_232 = arith.constant dense<0.000000e+00> : vector<16x256xf32>
    %242 = tpu.matmul %201, %241, %cst_232 {dimension_numbers = #tpu.dot_dimension_numbers<[1], [0], [0], [1], [0, 0, 1, 1], [], []>} : vector<16x144xf32>, vector<144x256xf32>, vector<16x256xf32> -> vector<16x256xf32>
    %243 = vector.broadcast %203 : vector<16x1xf32> to vector<16x256xf32>
    %244 = arith.addf %242, %243 : vector<16x256xf32>
    %cst_233 = arith.constant 1.000000e-01 : f32
    %245 = vector.broadcast %cst_233 : f32 to vector<16x256xf32>
    %246 = arith.mulf %245, %244 : vector<16x256xf32>
    %247 = arith.addf %152, %246 : vector<16x256xf32>
    %c4 = arith.constant 4 : index
    %c0_234 = arith.constant 0 : index
    %c0_235 = arith.constant 0 : index
    %248 = vector.load %arg4[%c4, %c0_234, %c0_235] : memref<5x16x144xf32, #tpu.memory_space<vmem>>, vector<1x16x144xf32>
    %249 = vector.shape_cast %248 : vector<1x16x144xf32> to vector<16x144xf32>
    %c4_236 = arith.constant 4 : index
    %c0_237 = arith.constant 0 : index
    %c0_238 = arith.constant 0 : index
    %250 = vector.load %arg5[%c4_236, %c0_237, %c0_238] : memref<5x16x1xf32, #tpu.memory_space<vmem>>, vector<1x16x1xf32>
    %251 = vector.shape_cast %250 : vector<1x16x1xf32> to vector<16x1xf32>
    %c0_239 = arith.constant 0 : index
    %c128_240 = arith.constant 128 : index
    %252 = vector.load %arg14[%c0_239, %c128_240] : memref<16x512xf32, #tpu.memory_space<vmem>>, vector<16x256xf32>
    tpu.vector_store %arg14[%c0_239, %c128_240], %247 {strides = array<i32>} : memref<16x512xf32, #tpu.memory_space<vmem>>, vector<16x256xf32>,
    %c0_241 = arith.constant 0 : index
    %c111_242 = arith.constant 111 : index
    %253 = vector.load %arg14[%c0_241, %c111_242] : memref<16x512xf32, #tpu.memory_space<vmem>>, vector<16x256xf32>
    %254 = vector.extract_strided_slice %6 {offsets = [0, 0], sizes = [1, 256], strides = [1, 1]} : vector<3x256xf32> to vector<1x256xf32>
    %255 = vector.broadcast %254 : vector<1x256xf32> to vector<16x256xf32>
    %256 = arith.mulf %253, %255 : vector<16x256xf32>
    %c0_243 = arith.constant 0 : index
    %c0_244 = arith.constant 0 : index
    %257 = vector.load %arg16[%c0_243, %c0_244] : memref<144x256xf32, #tpu.memory_space<vmem>>, vector<16x256xf32>
    tpu.vector_store %arg16[%c0_243, %c0_244], %256 {strides = array<i32>} : memref<144x256xf32, #tpu.memory_space<vmem>>, vector<16x256xf32>,
    %c0_245 = arith.constant 0 : index
    %c112_246 = arith.constant 112 : index
    %258 = vector.load %arg14[%c0_245, %c112_246] : memref<16x512xf32, #tpu.memory_space<vmem>>, vector<16x256xf32>
    %c16_247 = arith.constant 16 : index
    %c0_248 = arith.constant 0 : index
    %259 = vector.load %arg16[%c16_247, %c0_248] : memref<144x256xf32, #tpu.memory_space<vmem>>, vector<16x256xf32>
    tpu.vector_store %arg16[%c16_247, %c0_248], %258 {strides = array<i32>} : memref<144x256xf32, #tpu.memory_space<vmem>>, vector<16x256xf32>,
    %c0_249 = arith.constant 0 : index
    %c113_250 = arith.constant 113 : index
    %260 = vector.load %arg14[%c0_249, %c113_250] : memref<16x512xf32, #tpu.memory_space<vmem>>, vector<16x256xf32>
    %261 = vector.extract_strided_slice %6 {offsets = [2, 0], sizes = [1, 256], strides = [1, 1]} : vector<3x256xf32> to vector<1x256xf32>
    %262 = vector.broadcast %261 : vector<1x256xf32> to vector<16x256xf32>
    %263 = arith.mulf %260, %262 : vector<16x256xf32>
    %c32_251 = arith.constant 32 : index
    %c0_252 = arith.constant 0 : index
    %264 = vector.load %arg16[%c32_251, %c0_252] : memref<144x256xf32, #tpu.memory_space<vmem>>, vector<16x256xf32>
    tpu.vector_store %arg16[%c32_251, %c0_252], %263 {strides = array<i32>} : memref<144x256xf32, #tpu.memory_space<vmem>>, vector<16x256xf32>,
    %c0_253 = arith.constant 0 : index
    %c127_254 = arith.constant 127 : index
    %265 = vector.load %arg14[%c0_253, %c127_254] : memref<16x512xf32, #tpu.memory_space<vmem>>, vector<16x256xf32>
    %266 = vector.extract_strided_slice %6 {offsets = [0, 0], sizes = [1, 256], strides = [1, 1]} : vector<3x256xf32> to vector<1x256xf32>
    %267 = vector.broadcast %266 : vector<1x256xf32> to vector<16x256xf32>
    %268 = arith.mulf %265, %267 : vector<16x256xf32>
    %c48_255 = arith.constant 48 : index
    %c0_256 = arith.constant 0 : index
    %269 = vector.load %arg16[%c48_255, %c0_256] : memref<144x256xf32, #tpu.memory_space<vmem>>, vector<16x256xf32>
    tpu.vector_store %arg16[%c48_255, %c0_256], %268 {strides = array<i32>} : memref<144x256xf32, #tpu.memory_space<vmem>>, vector<16x256xf32>,
    %c0_257 = arith.constant 0 : index
    %c128_258 = arith.constant 128 : index
    %270 = vector.load %arg14[%c0_257, %c128_258] : memref<16x512xf32, #tpu.memory_space<vmem>>, vector<16x256xf32>
    %c64_259 = arith.constant 64 : index
    %c0_260 = arith.constant 0 : index
    %271 = vector.load %arg16[%c64_259, %c0_260] : memref<144x256xf32, #tpu.memory_space<vmem>>, vector<16x256xf32>
    tpu.vector_store %arg16[%c64_259, %c0_260], %270 {strides = array<i32>} : memref<144x256xf32, #tpu.memory_space<vmem>>, vector<16x256xf32>,
    %c0_261 = arith.constant 0 : index
    %c129_262 = arith.constant 129 : index
    %272 = vector.load %arg14[%c0_261, %c129_262] : memref<16x512xf32, #tpu.memory_space<vmem>>, vector<16x256xf32>
    %273 = vector.extract_strided_slice %6 {offsets = [2, 0], sizes = [1, 256], strides = [1, 1]} : vector<3x256xf32> to vector<1x256xf32>
    %274 = vector.broadcast %273 : vector<1x256xf32> to vector<16x256xf32>
    %275 = arith.mulf %272, %274 : vector<16x256xf32>
    %c80_263 = arith.constant 80 : index
    %c0_264 = arith.constant 0 : index
    %276 = vector.load %arg16[%c80_263, %c0_264] : memref<144x256xf32, #tpu.memory_space<vmem>>, vector<16x256xf32>
    tpu.vector_store %arg16[%c80_263, %c0_264], %275 {strides = array<i32>} : memref<144x256xf32, #tpu.memory_space<vmem>>, vector<16x256xf32>,
    %c0_265 = arith.constant 0 : index
    %c143_266 = arith.constant 143 : index
    %277 = vector.load %arg14[%c0_265, %c143_266] : memref<16x512xf32, #tpu.memory_space<vmem>>, vector<16x256xf32>
    %278 = vector.extract_strided_slice %6 {offsets = [0, 0], sizes = [1, 256], strides = [1, 1]} : vector<3x256xf32> to vector<1x256xf32>
    %279 = vector.broadcast %278 : vector<1x256xf32> to vector<16x256xf32>
    %280 = arith.mulf %277, %279 : vector<16x256xf32>
    %c96_267 = arith.constant 96 : index
    %c0_268 = arith.constant 0 : index
    %281 = vector.load %arg16[%c96_267, %c0_268] : memref<144x256xf32, #tpu.memory_space<vmem>>, vector<16x256xf32>
    tpu.vector_store %arg16[%c96_267, %c0_268], %280 {strides = array<i32>} : memref<144x256xf32, #tpu.memory_space<vmem>>, vector<16x256xf32>,
    %c0_269 = arith.constant 0 : index
    %c144_270 = arith.constant 144 : index
    %282 = vector.load %arg14[%c0_269, %c144_270] : memref<16x512xf32, #tpu.memory_space<vmem>>, vector<16x256xf32>
    %c112_271 = arith.constant 112 : index
    %c0_272 = arith.constant 0 : index
    %283 = vector.load %arg16[%c112_271, %c0_272] : memref<144x256xf32, #tpu.memory_space<vmem>>, vector<16x256xf32>
    tpu.vector_store %arg16[%c112_271, %c0_272], %282 {strides = array<i32>} : memref<144x256xf32, #tpu.memory_space<vmem>>, vector<16x256xf32>,
    %c0_273 = arith.constant 0 : index
    %c145_274 = arith.constant 145 : index
    %284 = vector.load %arg14[%c0_273, %c145_274] : memref<16x512xf32, #tpu.memory_space<vmem>>, vector<16x256xf32>
    %285 = vector.extract_strided_slice %6 {offsets = [2, 0], sizes = [1, 256], strides = [1, 1]} : vector<3x256xf32> to vector<1x256xf32>
    %286 = vector.broadcast %285 : vector<1x256xf32> to vector<16x256xf32>
    %287 = arith.mulf %284, %286 : vector<16x256xf32>
    %c128_275 = arith.constant 128 : index
    %c0_276 = arith.constant 0 : index
    %288 = vector.load %arg16[%c128_275, %c0_276] : memref<144x256xf32, #tpu.memory_space<vmem>>, vector<16x256xf32>
    tpu.vector_store %arg16[%c128_275, %c0_276], %287 {strides = array<i32>} : memref<144x256xf32, #tpu.memory_space<vmem>>, vector<16x256xf32>,
    %c0_277 = arith.constant 0 : index
    %c0_278 = arith.constant 0 : index
    %289 = vector.load %arg16[%c0_277, %c0_278] : memref<144x256xf32, #tpu.memory_space<vmem>>, vector<144x256xf32>
    %cst_279 = arith.constant dense<0.000000e+00> : vector<16x256xf32>
    %290 = tpu.matmul %249, %289, %cst_279 {dimension_numbers = #tpu.dot_dimension_numbers<[1], [0], [0], [1], [0, 0, 1, 1], [], []>} : vector<16x144xf32>, vector<144x256xf32>, vector<16x256xf32> -> vector<16x256xf32>
    %291 = vector.broadcast %251 : vector<16x1xf32> to vector<16x256xf32>
    %292 = arith.addf %290, %291 : vector<16x256xf32>
    %293 = arith.addf %292, %57 : vector<16x256xf32>
    %c0_280 = arith.constant 0 : index
    %c0_281 = arith.constant 0 : index
    %294 = vector.load %arg6[%c0_280, %c0_281] : memref<64x144xf32, #tpu.memory_space<vmem>>, vector<64x144xf32>
    %c0_282 = arith.constant 0 : index
    %c0_283 = arith.constant 0 : index
    %295 = vector.load %arg7[%c0_282, %c0_283] : memref<64x1xf32, #tpu.memory_space<vmem>>, vector<64x1xf32>
    %c0_284 = arith.constant 0 : index
    %c128_285 = arith.constant 128 : index
    %296 = vector.load %arg14[%c0_284, %c128_285] : memref<16x512xf32, #tpu.memory_space<vmem>>, vector<16x256xf32>
    tpu.vector_store %arg14[%c0_284, %c128_285], %293 {strides = array<i32>} : memref<16x512xf32, #tpu.memory_space<vmem>>, vector<16x256xf32>,
    %c0_286 = arith.constant 0 : index
    %c111_287 = arith.constant 111 : index
    %297 = vector.load %arg14[%c0_286, %c111_287] : memref<16x512xf32, #tpu.memory_space<vmem>>, vector<16x256xf32>
    %298 = vector.extract_strided_slice %6 {offsets = [0, 0], sizes = [1, 256], strides = [1, 1]} : vector<3x256xf32> to vector<1x256xf32>
    %299 = vector.broadcast %298 : vector<1x256xf32> to vector<16x256xf32>
    %300 = arith.mulf %297, %299 : vector<16x256xf32>
    %c0_288 = arith.constant 0 : index
    %c0_289 = arith.constant 0 : index
    %301 = vector.load %arg16[%c0_288, %c0_289] : memref<144x256xf32, #tpu.memory_space<vmem>>, vector<16x256xf32>
    tpu.vector_store %arg16[%c0_288, %c0_289], %300 {strides = array<i32>} : memref<144x256xf32, #tpu.memory_space<vmem>>, vector<16x256xf32>,
    %c0_290 = arith.constant 0 : index
    %c112_291 = arith.constant 112 : index
    %302 = vector.load %arg14[%c0_290, %c112_291] : memref<16x512xf32, #tpu.memory_space<vmem>>, vector<16x256xf32>
    %c16_292 = arith.constant 16 : index
    %c0_293 = arith.constant 0 : index
    %303 = vector.load %arg16[%c16_292, %c0_293] : memref<144x256xf32, #tpu.memory_space<vmem>>, vector<16x256xf32>
    tpu.vector_store %arg16[%c16_292, %c0_293], %302 {strides = array<i32>} : memref<144x256xf32, #tpu.memory_space<vmem>>, vector<16x256xf32>,
    %c0_294 = arith.constant 0 : index
    %c113_295 = arith.constant 113 : index
    %304 = vector.load %arg14[%c0_294, %c113_295] : memref<16x512xf32, #tpu.memory_space<vmem>>, vector<16x256xf32>
    %305 = vector.extract_strided_slice %6 {offsets = [2, 0], sizes = [1, 256], strides = [1, 1]} : vector<3x256xf32> to vector<1x256xf32>
    %306 = vector.broadcast %305 : vector<1x256xf32> to vector<16x256xf32>
    %307 = arith.mulf %304, %306 : vector<16x256xf32>
    %c32_296 = arith.constant 32 : index
    %c0_297 = arith.constant 0 : index
    %308 = vector.load %arg16[%c32_296, %c0_297] : memref<144x256xf32, #tpu.memory_space<vmem>>, vector<16x256xf32>
    tpu.vector_store %arg16[%c32_296, %c0_297], %307 {strides = array<i32>} : memref<144x256xf32, #tpu.memory_space<vmem>>, vector<16x256xf32>,
    %c0_298 = arith.constant 0 : index
    %c127_299 = arith.constant 127 : index
    %309 = vector.load %arg14[%c0_298, %c127_299] : memref<16x512xf32, #tpu.memory_space<vmem>>, vector<16x256xf32>
    %310 = vector.extract_strided_slice %6 {offsets = [0, 0], sizes = [1, 256], strides = [1, 1]} : vector<3x256xf32> to vector<1x256xf32>
    %311 = vector.broadcast %310 : vector<1x256xf32> to vector<16x256xf32>
    %312 = arith.mulf %309, %311 : vector<16x256xf32>
    %c48_300 = arith.constant 48 : index
    %c0_301 = arith.constant 0 : index
    %313 = vector.load %arg16[%c48_300, %c0_301] : memref<144x256xf32, #tpu.memory_space<vmem>>, vector<16x256xf32>
    tpu.vector_store %arg16[%c48_300, %c0_301], %312 {strides = array<i32>} : memref<144x256xf32, #tpu.memory_space<vmem>>, vector<16x256xf32>,
    %c0_302 = arith.constant 0 : index
    %c128_303 = arith.constant 128 : index
    %314 = vector.load %arg14[%c0_302, %c128_303] : memref<16x512xf32, #tpu.memory_space<vmem>>, vector<16x256xf32>
    %c64_304 = arith.constant 64 : index
    %c0_305 = arith.constant 0 : index
    %315 = vector.load %arg16[%c64_304, %c0_305] : memref<144x256xf32, #tpu.memory_space<vmem>>, vector<16x256xf32>
    tpu.vector_store %arg16[%c64_304, %c0_305], %314 {strides = array<i32>} : memref<144x256xf32, #tpu.memory_space<vmem>>, vector<16x256xf32>,
    %c0_306 = arith.constant 0 : index
    %c129_307 = arith.constant 129 : index
    %316 = vector.load %arg14[%c0_306, %c129_307] : memref<16x512xf32, #tpu.memory_space<vmem>>, vector<16x256xf32>
    %317 = vector.extract_strided_slice %6 {offsets = [2, 0], sizes = [1, 256], strides = [1, 1]} : vector<3x256xf32> to vector<1x256xf32>
    %318 = vector.broadcast %317 : vector<1x256xf32> to vector<16x256xf32>
    %319 = arith.mulf %316, %318 : vector<16x256xf32>
    %c80_308 = arith.constant 80 : index
    %c0_309 = arith.constant 0 : index
    %320 = vector.load %arg16[%c80_308, %c0_309] : memref<144x256xf32, #tpu.memory_space<vmem>>, vector<16x256xf32>
    tpu.vector_store %arg16[%c80_308, %c0_309], %319 {strides = array<i32>} : memref<144x256xf32, #tpu.memory_space<vmem>>, vector<16x256xf32>,
    %c0_310 = arith.constant 0 : index
    %c143_311 = arith.constant 143 : index
    %321 = vector.load %arg14[%c0_310, %c143_311] : memref<16x512xf32, #tpu.memory_space<vmem>>, vector<16x256xf32>
    %322 = vector.extract_strided_slice %6 {offsets = [0, 0], sizes = [1, 256], strides = [1, 1]} : vector<3x256xf32> to vector<1x256xf32>
    %323 = vector.broadcast %322 : vector<1x256xf32> to vector<16x256xf32>
    %324 = arith.mulf %321, %323 : vector<16x256xf32>
    %c96_312 = arith.constant 96 : index
    %c0_313 = arith.constant 0 : index
    %325 = vector.load %arg16[%c96_312, %c0_313] : memref<144x256xf32, #tpu.memory_space<vmem>>, vector<16x256xf32>
    tpu.vector_store %arg16[%c96_312, %c0_313], %324 {strides = array<i32>} : memref<144x256xf32, #tpu.memory_space<vmem>>, vector<16x256xf32>,
    %c0_314 = arith.constant 0 : index
    %c144_315 = arith.constant 144 : index
    %326 = vector.load %arg14[%c0_314, %c144_315] : memref<16x512xf32, #tpu.memory_space<vmem>>, vector<16x256xf32>
    %c112_316 = arith.constant 112 : index
    %c0_317 = arith.constant 0 : index
    %327 = vector.load %arg16[%c112_316, %c0_317] : memref<144x256xf32, #tpu.memory_space<vmem>>, vector<16x256xf32>
    tpu.vector_store %arg16[%c112_316, %c0_317], %326 {strides = array<i32>} : memref<144x256xf32, #tpu.memory_space<vmem>>, vector<16x256xf32>,
    %c0_318 = arith.constant 0 : index
    %c145_319 = arith.constant 145 : index
    %328 = vector.load %arg14[%c0_318, %c145_319] : memref<16x512xf32, #tpu.memory_space<vmem>>, vector<16x256xf32>
    %329 = vector.extract_strided_slice %6 {offsets = [2, 0], sizes = [1, 256], strides = [1, 1]} : vector<3x256xf32> to vector<1x256xf32>
    %330 = vector.broadcast %329 : vector<1x256xf32> to vector<16x256xf32>
    %331 = arith.mulf %328, %330 : vector<16x256xf32>
    %c128_320 = arith.constant 128 : index
    %c0_321 = arith.constant 0 : index
    %332 = vector.load %arg16[%c128_320, %c0_321] : memref<144x256xf32, #tpu.memory_space<vmem>>, vector<16x256xf32>
    tpu.vector_store %arg16[%c128_320, %c0_321], %331 {strides = array<i32>} : memref<144x256xf32, #tpu.memory_space<vmem>>, vector<16x256xf32>,
    %c0_322 = arith.constant 0 : index
    %c0_323 = arith.constant 0 : index
    %333 = vector.load %arg16[%c0_322, %c0_323] : memref<144x256xf32, #tpu.memory_space<vmem>>, vector<144x256xf32>
    %cst_324 = arith.constant dense<0.000000e+00> : vector<64x256xf32>
    %334 = tpu.matmul %294, %333, %cst_324 {dimension_numbers = #tpu.dot_dimension_numbers<[1], [0], [0], [1], [0, 0, 1, 1], [], []>} : vector<64x144xf32>, vector<144x256xf32>, vector<64x256xf32> -> vector<64x256xf32>
    %335 = vector.broadcast %295 : vector<64x1xf32> to vector<64x256xf32>
    %336 = arith.addf %334, %335 : vector<64x256xf32>
    %c0_325 = arith.constant 0 : index
    %c128_326 = arith.constant 128 : index
    %337 = vector.load %arg15[%c0_325, %c128_326] : memref<64x512xf32, #tpu.memory_space<vmem>>, vector<64x256xf32>
    tpu.vector_store %arg15[%c0_325, %c128_326], %336 {strides = array<i32>} : memref<64x512xf32, #tpu.memory_space<vmem>>, vector<64x256xf32>,
    %c0_327 = arith.constant 0 : index
    %c0_328 = arith.constant 0 : index
    %338 = vector.load %arg8[%c0_327, %c0_328] : memref<3x144xf32, #tpu.memory_space<vmem>>, vector<3x144xf32>
    %c0_329 = arith.constant 0 : index
    %c0_330 = arith.constant 0 : index
    %339 = vector.load %arg9[%c0_329, %c0_330] : memref<3x1xf32, #tpu.memory_space<vmem>>, vector<3x1xf32>
    %c48_331 = arith.constant 48 : index
    %c111_332 = arith.constant 111 : index
    %340 = vector.load %arg15[%c48_331, %c111_332] : memref<64x512xf32, #tpu.memory_space<vmem>>, vector<16x256xf32>
    %341 = vector.extract_strided_slice %6 {offsets = [0, 0], sizes = [1, 256], strides = [1, 1]} : vector<3x256xf32> to vector<1x256xf32>
    %342 = vector.broadcast %341 : vector<1x256xf32> to vector<16x256xf32>
    %343 = arith.mulf %340, %342 : vector<16x256xf32>
    %c0_333 = arith.constant 0 : index
    %c0_334 = arith.constant 0 : index
    %344 = vector.load %arg16[%c0_333, %c0_334] : memref<144x256xf32, #tpu.memory_space<vmem>>, vector<16x256xf32>
    tpu.vector_store %arg16[%c0_333, %c0_334], %343 {strides = array<i32>} : memref<144x256xf32, #tpu.memory_space<vmem>>, vector<16x256xf32>,
    %c32_335 = arith.constant 32 : index
    %c112_336 = arith.constant 112 : index
    %345 = vector.load %arg15[%c32_335, %c112_336] : memref<64x512xf32, #tpu.memory_space<vmem>>, vector<16x256xf32>
    %c16_337 = arith.constant 16 : index
    %c0_338 = arith.constant 0 : index
    %346 = vector.load %arg16[%c16_337, %c0_338] : memref<144x256xf32, #tpu.memory_space<vmem>>, vector<16x256xf32>
    tpu.vector_store %arg16[%c16_337, %c0_338], %345 {strides = array<i32>} : memref<144x256xf32, #tpu.memory_space<vmem>>, vector<16x256xf32>,
    %c48_339 = arith.constant 48 : index
    %c112_340 = arith.constant 112 : index
    %347 = vector.load %arg15[%c48_339, %c112_340] : memref<64x512xf32, #tpu.memory_space<vmem>>, vector<16x256xf32>
    %c32_341 = arith.constant 32 : index
    %c0_342 = arith.constant 0 : index
    %348 = vector.load %arg16[%c32_341, %c0_342] : memref<144x256xf32, #tpu.memory_space<vmem>>, vector<16x256xf32>
    tpu.vector_store %arg16[%c32_341, %c0_342], %347 {strides = array<i32>} : memref<144x256xf32, #tpu.memory_space<vmem>>, vector<16x256xf32>,
    %c16_343 = arith.constant 16 : index
    %c127_344 = arith.constant 127 : index
    %349 = vector.load %arg15[%c16_343, %c127_344] : memref<64x512xf32, #tpu.memory_space<vmem>>, vector<16x256xf32>
    %350 = vector.extract_strided_slice %6 {offsets = [0, 0], sizes = [1, 256], strides = [1, 1]} : vector<3x256xf32> to vector<1x256xf32>
    %351 = vector.broadcast %350 : vector<1x256xf32> to vector<16x256xf32>
    %352 = arith.mulf %349, %351 : vector<16x256xf32>
    %c48_345 = arith.constant 48 : index
    %c0_346 = arith.constant 0 : index
    %353 = vector.load %arg16[%c48_345, %c0_346] : memref<144x256xf32, #tpu.memory_space<vmem>>, vector<16x256xf32>
    tpu.vector_store %arg16[%c48_345, %c0_346], %352 {strides = array<i32>} : memref<144x256xf32, #tpu.memory_space<vmem>>, vector<16x256xf32>,
    %c0_347 = arith.constant 0 : index
    %c128_348 = arith.constant 128 : index
    %354 = vector.load %arg15[%c0_347, %c128_348] : memref<64x512xf32, #tpu.memory_space<vmem>>, vector<16x256xf32>
    %c64_349 = arith.constant 64 : index
    %c0_350 = arith.constant 0 : index
    %355 = vector.load %arg16[%c64_349, %c0_350] : memref<144x256xf32, #tpu.memory_space<vmem>>, vector<16x256xf32>
    tpu.vector_store %arg16[%c64_349, %c0_350], %354 {strides = array<i32>} : memref<144x256xf32, #tpu.memory_space<vmem>>, vector<16x256xf32>,
    %c16_351 = arith.constant 16 : index
    %c128_352 = arith.constant 128 : index
    %356 = vector.load %arg15[%c16_351, %c128_352] : memref<64x512xf32, #tpu.memory_space<vmem>>, vector<16x256xf32>
    %c80_353 = arith.constant 80 : index
    %c0_354 = arith.constant 0 : index
    %357 = vector.load %arg16[%c80_353, %c0_354] : memref<144x256xf32, #tpu.memory_space<vmem>>, vector<16x256xf32>
    tpu.vector_store %arg16[%c80_353, %c0_354], %356 {strides = array<i32>} : memref<144x256xf32, #tpu.memory_space<vmem>>, vector<16x256xf32>,
    %c48_355 = arith.constant 48 : index
    %c127_356 = arith.constant 127 : index
    %358 = vector.load %arg15[%c48_355, %c127_356] : memref<64x512xf32, #tpu.memory_space<vmem>>, vector<16x256xf32>
    %359 = vector.extract_strided_slice %6 {offsets = [0, 0], sizes = [1, 256], strides = [1, 1]} : vector<3x256xf32> to vector<1x256xf32>
    %360 = vector.broadcast %359 : vector<1x256xf32> to vector<16x256xf32>
    %361 = arith.mulf %358, %360 : vector<16x256xf32>
    %c96_357 = arith.constant 96 : index
    %c0_358 = arith.constant 0 : index
    %362 = vector.load %arg16[%c96_357, %c0_358] : memref<144x256xf32, #tpu.memory_space<vmem>>, vector<16x256xf32>
    tpu.vector_store %arg16[%c96_357, %c0_358], %361 {strides = array<i32>} : memref<144x256xf32, #tpu.memory_space<vmem>>, vector<16x256xf32>,
    %c32_359 = arith.constant 32 : index
    %c128_360 = arith.constant 128 : index
    %363 = vector.load %arg15[%c32_359, %c128_360] : memref<64x512xf32, #tpu.memory_space<vmem>>, vector<16x256xf32>
    %c112_361 = arith.constant 112 : index
    %c0_362 = arith.constant 0 : index
    %364 = vector.load %arg16[%c112_361, %c0_362] : memref<144x256xf32, #tpu.memory_space<vmem>>, vector<16x256xf32>
    tpu.vector_store %arg16[%c112_361, %c0_362], %363 {strides = array<i32>} : memref<144x256xf32, #tpu.memory_space<vmem>>, vector<16x256xf32>,
    %c48_363 = arith.constant 48 : index
    %c128_364 = arith.constant 128 : index
    %365 = vector.load %arg15[%c48_363, %c128_364] : memref<64x512xf32, #tpu.memory_space<vmem>>, vector<16x256xf32>
    %c128_365 = arith.constant 128 : index
    %c0_366 = arith.constant 0 : index
    %366 = vector.load %arg16[%c128_365, %c0_366] : memref<144x256xf32, #tpu.memory_space<vmem>>, vector<16x256xf32>
    tpu.vector_store %arg16[%c128_365, %c0_366], %365 {strides = array<i32>} : memref<144x256xf32, #tpu.memory_space<vmem>>, vector<16x256xf32>,
    %c0_367 = arith.constant 0 : index
    %c0_368 = arith.constant 0 : index
    %367 = vector.load %arg16[%c0_367, %c0_368] : memref<144x256xf32, #tpu.memory_space<vmem>>, vector<144x256xf32>
    %cst_369 = arith.constant dense<0.000000e+00> : vector<3x256xf32>
    %368 = tpu.matmul %338, %367, %cst_369 {dimension_numbers = #tpu.dot_dimension_numbers<[1], [0], [0], [1], [0, 0, 1, 1], [], []>} : vector<3x144xf32>, vector<144x256xf32>, vector<3x256xf32> -> vector<3x256xf32>
    %369 = vector.broadcast %339 : vector<3x1xf32> to vector<3x256xf32>
    %370 = arith.addf %368, %369 : vector<3x256xf32>
    %c0_370 = arith.constant 0 : index
    %c0_371 = arith.constant 0 : index
    %c0_372 = arith.constant 0 : index
    %c0_373 = arith.constant 0 : index
    %371 = vector.load %arg13[%c0_370, %c0_371, %c0_372, %c0_373] : memref<1x4x3x256xf32, #tpu.memory_space<vmem>>, vector<1x1x3x256xf32>
    %372 = vector.shape_cast %371 : vector<1x1x3x256xf32> to vector<3x256xf32>
    %373 = vector.shape_cast %370 : vector<3x256xf32> to vector<1x1x3x256xf32>
    tpu.vector_store %arg13[%c0_370, %c0_371, %c0_372, %c0_373], %373 {strides = array<i32>} : memref<1x4x3x256xf32, #tpu.memory_space<vmem>>, vector<1x1x3x256xf32>,
    %c32_374 = arith.constant 32 : index
    %c112_375 = arith.constant 112 : index
    %374 = vector.load %arg15[%c32_374, %c112_375] : memref<64x512xf32, #tpu.memory_space<vmem>>, vector<16x256xf32>
    %c0_376 = arith.constant 0 : index
    %c0_377 = arith.constant 0 : index
    %375 = vector.load %arg16[%c0_376, %c0_377] : memref<144x256xf32, #tpu.memory_space<vmem>>, vector<16x256xf32>
    tpu.vector_store %arg16[%c0_376, %c0_377], %374 {strides = array<i32>} : memref<144x256xf32, #tpu.memory_space<vmem>>, vector<16x256xf32>,
    %c48_378 = arith.constant 48 : index
    %c112_379 = arith.constant 112 : index
    %376 = vector.load %arg15[%c48_378, %c112_379] : memref<64x512xf32, #tpu.memory_space<vmem>>, vector<16x256xf32>
    %c16_380 = arith.constant 16 : index
    %c0_381 = arith.constant 0 : index
    %377 = vector.load %arg16[%c16_380, %c0_381] : memref<144x256xf32, #tpu.memory_space<vmem>>, vector<16x256xf32>
    tpu.vector_store %arg16[%c16_380, %c0_381], %376 {strides = array<i32>} : memref<144x256xf32, #tpu.memory_space<vmem>>, vector<16x256xf32>,
    %c32_382 = arith.constant 32 : index
    %c113_383 = arith.constant 113 : index
    %378 = vector.load %arg15[%c32_382, %c113_383] : memref<64x512xf32, #tpu.memory_space<vmem>>, vector<16x256xf32>
    %379 = vector.extract_strided_slice %6 {offsets = [2, 0], sizes = [1, 256], strides = [1, 1]} : vector<3x256xf32> to vector<1x256xf32>
    %380 = vector.broadcast %379 : vector<1x256xf32> to vector<16x256xf32>
    %381 = arith.mulf %378, %380 : vector<16x256xf32>
    %c32_384 = arith.constant 32 : index
    %c0_385 = arith.constant 0 : index
    %382 = vector.load %arg16[%c32_384, %c0_385] : memref<144x256xf32, #tpu.memory_space<vmem>>, vector<16x256xf32>
    tpu.vector_store %arg16[%c32_384, %c0_385], %381 {strides = array<i32>} : memref<144x256xf32, #tpu.memory_space<vmem>>, vector<16x256xf32>,
    %c0_386 = arith.constant 0 : index
    %c128_387 = arith.constant 128 : index
    %383 = vector.load %arg15[%c0_386, %c128_387] : memref<64x512xf32, #tpu.memory_space<vmem>>, vector<16x256xf32>
    %c48_388 = arith.constant 48 : index
    %c0_389 = arith.constant 0 : index
    %384 = vector.load %arg16[%c48_388, %c0_389] : memref<144x256xf32, #tpu.memory_space<vmem>>, vector<16x256xf32>
    tpu.vector_store %arg16[%c48_388, %c0_389], %383 {strides = array<i32>} : memref<144x256xf32, #tpu.memory_space<vmem>>, vector<16x256xf32>,
    %c16_390 = arith.constant 16 : index
    %c128_391 = arith.constant 128 : index
    %385 = vector.load %arg15[%c16_390, %c128_391] : memref<64x512xf32, #tpu.memory_space<vmem>>, vector<16x256xf32>
    %c64_392 = arith.constant 64 : index
    %c0_393 = arith.constant 0 : index
    %386 = vector.load %arg16[%c64_392, %c0_393] : memref<144x256xf32, #tpu.memory_space<vmem>>, vector<16x256xf32>
    tpu.vector_store %arg16[%c64_392, %c0_393], %385 {strides = array<i32>} : memref<144x256xf32, #tpu.memory_space<vmem>>, vector<16x256xf32>,
    %c0_394 = arith.constant 0 : index
    %c129_395 = arith.constant 129 : index
    %387 = vector.load %arg15[%c0_394, %c129_395] : memref<64x512xf32, #tpu.memory_space<vmem>>, vector<16x256xf32>
    %388 = vector.extract_strided_slice %6 {offsets = [2, 0], sizes = [1, 256], strides = [1, 1]} : vector<3x256xf32> to vector<1x256xf32>
    %389 = vector.broadcast %388 : vector<1x256xf32> to vector<16x256xf32>
    %390 = arith.mulf %387, %389 : vector<16x256xf32>
    %c80_396 = arith.constant 80 : index
    %c0_397 = arith.constant 0 : index
    %391 = vector.load %arg16[%c80_396, %c0_397] : memref<144x256xf32, #tpu.memory_space<vmem>>, vector<16x256xf32>
    tpu.vector_store %arg16[%c80_396, %c0_397], %390 {strides = array<i32>} : memref<144x256xf32, #tpu.memory_space<vmem>>, vector<16x256xf32>,
    %c32_398 = arith.constant 32 : index
    %c128_399 = arith.constant 128 : index
    %392 = vector.load %arg15[%c32_398, %c128_399] : memref<64x512xf32, #tpu.memory_space<vmem>>, vector<16x256xf32>
    %c96_400 = arith.constant 96 : index
    %c0_401 = arith.constant 0 : index
    %393 = vector.load %arg16[%c96_400, %c0_401] : memref<144x256xf32, #tpu.memory_space<vmem>>, vector<16x256xf32>
    tpu.vector_store %arg16[%c96_400, %c0_401], %392 {strides = array<i32>} : memref<144x256xf32, #tpu.memory_space<vmem>>, vector<16x256xf32>,
    %c48_402 = arith.constant 48 : index
    %c128_403 = arith.constant 128 : index
    %394 = vector.load %arg15[%c48_402, %c128_403] : memref<64x512xf32, #tpu.memory_space<vmem>>, vector<16x256xf32>
    %c112_404 = arith.constant 112 : index
    %c0_405 = arith.constant 0 : index
    %395 = vector.load %arg16[%c112_404, %c0_405] : memref<144x256xf32, #tpu.memory_space<vmem>>, vector<16x256xf32>
    tpu.vector_store %arg16[%c112_404, %c0_405], %394 {strides = array<i32>} : memref<144x256xf32, #tpu.memory_space<vmem>>, vector<16x256xf32>,
    %c32_406 = arith.constant 32 : index
    %c129_407 = arith.constant 129 : index
    %396 = vector.load %arg15[%c32_406, %c129_407] : memref<64x512xf32, #tpu.memory_space<vmem>>, vector<16x256xf32>
    %397 = vector.extract_strided_slice %6 {offsets = [2, 0], sizes = [1, 256], strides = [1, 1]} : vector<3x256xf32> to vector<1x256xf32>
    %398 = vector.broadcast %397 : vector<1x256xf32> to vector<16x256xf32>
    %399 = arith.mulf %396, %398 : vector<16x256xf32>
    %c128_408 = arith.constant 128 : index
    %c0_409 = arith.constant 0 : index
    %400 = vector.load %arg16[%c128_408, %c0_409] : memref<144x256xf32, #tpu.memory_space<vmem>>, vector<16x256xf32>
    tpu.vector_store %arg16[%c128_408, %c0_409], %399 {strides = array<i32>} : memref<144x256xf32, #tpu.memory_space<vmem>>, vector<16x256xf32>,
    %c0_410 = arith.constant 0 : index
    %c0_411 = arith.constant 0 : index
    %401 = vector.load %arg16[%c0_410, %c0_411] : memref<144x256xf32, #tpu.memory_space<vmem>>, vector<144x256xf32>
    %cst_412 = arith.constant dense<0.000000e+00> : vector<3x256xf32>
    %402 = tpu.matmul %338, %401, %cst_412 {dimension_numbers = #tpu.dot_dimension_numbers<[1], [0], [0], [1], [0, 0, 1, 1], [], []>} : vector<3x144xf32>, vector<144x256xf32>, vector<3x256xf32> -> vector<3x256xf32>
    %403 = vector.broadcast %339 : vector<3x1xf32> to vector<3x256xf32>
    %404 = arith.addf %402, %403 : vector<3x256xf32>
    %c0_413 = arith.constant 0 : index
    %c1_414 = arith.constant 1 : index
    %c0_415 = arith.constant 0 : index
    %c0_416 = arith.constant 0 : index
    %405 = vector.load %arg13[%c0_413, %c1_414, %c0_415, %c0_416] : memref<1x4x3x256xf32, #tpu.memory_space<vmem>>, vector<1x1x3x256xf32>
    %406 = vector.shape_cast %405 : vector<1x1x3x256xf32> to vector<3x256xf32>
    %407 = vector.shape_cast %404 : vector<3x256xf32> to vector<1x1x3x256xf32>
    tpu.vector_store %arg13[%c0_413, %c1_414, %c0_415, %c0_416], %407 {strides = array<i32>} : memref<1x4x3x256xf32, #tpu.memory_space<vmem>>, vector<1x1x3x256xf32>,
    %c16_417 = arith.constant 16 : index
    %c127_418 = arith.constant 127 : index
    %408 = vector.load %arg15[%c16_417, %c127_418] : memref<64x512xf32, #tpu.memory_space<vmem>>, vector<16x256xf32>
    %409 = vector.extract_strided_slice %6 {offsets = [0, 0], sizes = [1, 256], strides = [1, 1]} : vector<3x256xf32> to vector<1x256xf32>
    %410 = vector.broadcast %409 : vector<1x256xf32> to vector<16x256xf32>
    %411 = arith.mulf %408, %410 : vector<16x256xf32>
    %c0_419 = arith.constant 0 : index
    %c0_420 = arith.constant 0 : index
    %412 = vector.load %arg16[%c0_419, %c0_420] : memref<144x256xf32, #tpu.memory_space<vmem>>, vector<16x256xf32>
    tpu.vector_store %arg16[%c0_419, %c0_420], %411 {strides = array<i32>} : memref<144x256xf32, #tpu.memory_space<vmem>>, vector<16x256xf32>,
    %c0_421 = arith.constant 0 : index
    %c128_422 = arith.constant 128 : index
    %413 = vector.load %arg15[%c0_421, %c128_422] : memref<64x512xf32, #tpu.memory_space<vmem>>, vector<16x256xf32>
    %c16_423 = arith.constant 16 : index
    %c0_424 = arith.constant 0 : index
    %414 = vector.load %arg16[%c16_423, %c0_424] : memref<144x256xf32, #tpu.memory_space<vmem>>, vector<16x256xf32>
    tpu.vector_store %arg16[%c16_423, %c0_424], %413 {strides = array<i32>} : memref<144x256xf32, #tpu.memory_space<vmem>>, vector<16x256xf32>,
    %c16_425 = arith.constant 16 : index
    %c128_426 = arith.constant 128 : index
    %415 = vector.load %arg15[%c16_425, %c128_426] : memref<64x512xf32, #tpu.memory_space<vmem>>, vector<16x256xf32>
    %c32_427 = arith.constant 32 : index
    %c0_428 = arith.constant 0 : index
    %416 = vector.load %arg16[%c32_427, %c0_428] : memref<144x256xf32, #tpu.memory_space<vmem>>, vector<16x256xf32>
    tpu.vector_store %arg16[%c32_427, %c0_428], %415 {strides = array<i32>} : memref<144x256xf32, #tpu.memory_space<vmem>>, vector<16x256xf32>,
    %c48_429 = arith.constant 48 : index
    %c127_430 = arith.constant 127 : index
    %417 = vector.load %arg15[%c48_429, %c127_430] : memref<64x512xf32, #tpu.memory_space<vmem>>, vector<16x256xf32>
    %418 = vector.extract_strided_slice %6 {offsets = [0, 0], sizes = [1, 256], strides = [1, 1]} : vector<3x256xf32> to vector<1x256xf32>
    %419 = vector.broadcast %418 : vector<1x256xf32> to vector<16x256xf32>
    %420 = arith.mulf %417, %419 : vector<16x256xf32>
    %c48_431 = arith.constant 48 : index
    %c0_432 = arith.constant 0 : index
    %421 = vector.load %arg16[%c48_431, %c0_432] : memref<144x256xf32, #tpu.memory_space<vmem>>, vector<16x256xf32>
    tpu.vector_store %arg16[%c48_431, %c0_432], %420 {strides = array<i32>} : memref<144x256xf32, #tpu.memory_space<vmem>>, vector<16x256xf32>,
    %c32_433 = arith.constant 32 : index
    %c128_434 = arith.constant 128 : index
    %422 = vector.load %arg15[%c32_433, %c128_434] : memref<64x512xf32, #tpu.memory_space<vmem>>, vector<16x256xf32>
    %c64_435 = arith.constant 64 : index
    %c0_436 = arith.constant 0 : index
    %423 = vector.load %arg16[%c64_435, %c0_436] : memref<144x256xf32, #tpu.memory_space<vmem>>, vector<16x256xf32>
    tpu.vector_store %arg16[%c64_435, %c0_436], %422 {strides = array<i32>} : memref<144x256xf32, #tpu.memory_space<vmem>>, vector<16x256xf32>,
    %c48_437 = arith.constant 48 : index
    %c128_438 = arith.constant 128 : index
    %424 = vector.load %arg15[%c48_437, %c128_438] : memref<64x512xf32, #tpu.memory_space<vmem>>, vector<16x256xf32>
    %c80_439 = arith.constant 80 : index
    %c0_440 = arith.constant 0 : index
    %425 = vector.load %arg16[%c80_439, %c0_440] : memref<144x256xf32, #tpu.memory_space<vmem>>, vector<16x256xf32>
    tpu.vector_store %arg16[%c80_439, %c0_440], %424 {strides = array<i32>} : memref<144x256xf32, #tpu.memory_space<vmem>>, vector<16x256xf32>,
    %c16_441 = arith.constant 16 : index
    %c143_442 = arith.constant 143 : index
    %426 = vector.load %arg15[%c16_441, %c143_442] : memref<64x512xf32, #tpu.memory_space<vmem>>, vector<16x256xf32>
    %427 = vector.extract_strided_slice %6 {offsets = [0, 0], sizes = [1, 256], strides = [1, 1]} : vector<3x256xf32> to vector<1x256xf32>
    %428 = vector.broadcast %427 : vector<1x256xf32> to vector<16x256xf32>
    %429 = arith.mulf %426, %428 : vector<16x256xf32>
    %c96_443 = arith.constant 96 : index
    %c0_444 = arith.constant 0 : index
    %430 = vector.load %arg16[%c96_443, %c0_444] : memref<144x256xf32, #tpu.memory_space<vmem>>, vector<16x256xf32>
    tpu.vector_store %arg16[%c96_443, %c0_444], %429 {strides = array<i32>} : memref<144x256xf32, #tpu.memory_space<vmem>>, vector<16x256xf32>,
    %c0_445 = arith.constant 0 : index
    %c144_446 = arith.constant 144 : index
    %431 = vector.load %arg15[%c0_445, %c144_446] : memref<64x512xf32, #tpu.memory_space<vmem>>, vector<16x256xf32>
    %c112_447 = arith.constant 112 : index
    %c0_448 = arith.constant 0 : index
    %432 = vector.load %arg16[%c112_447, %c0_448] : memref<144x256xf32, #tpu.memory_space<vmem>>, vector<16x256xf32>
    tpu.vector_store %arg16[%c112_447, %c0_448], %431 {strides = array<i32>} : memref<144x256xf32, #tpu.memory_space<vmem>>, vector<16x256xf32>,
    %c16_449 = arith.constant 16 : index
    %c144_450 = arith.constant 144 : index
    %433 = vector.load %arg15[%c16_449, %c144_450] : memref<64x512xf32, #tpu.memory_space<vmem>>, vector<16x256xf32>
    %c128_451 = arith.constant 128 : index
    %c0_452 = arith.constant 0 : index
    %434 = vector.load %arg16[%c128_451, %c0_452] : memref<144x256xf32, #tpu.memory_space<vmem>>, vector<16x256xf32>
    tpu.vector_store %arg16[%c128_451, %c0_452], %433 {strides = array<i32>} : memref<144x256xf32, #tpu.memory_space<vmem>>, vector<16x256xf32>,
    %c0_453 = arith.constant 0 : index
    %c0_454 = arith.constant 0 : index
    %435 = vector.load %arg16[%c0_453, %c0_454] : memref<144x256xf32, #tpu.memory_space<vmem>>, vector<144x256xf32>
    %cst_455 = arith.constant dense<0.000000e+00> : vector<3x256xf32>
    %436 = tpu.matmul %338, %435, %cst_455 {dimension_numbers = #tpu.dot_dimension_numbers<[1], [0], [0], [1], [0, 0, 1, 1], [], []>} : vector<3x144xf32>, vector<144x256xf32>, vector<3x256xf32> -> vector<3x256xf32>
    %437 = vector.broadcast %339 : vector<3x1xf32> to vector<3x256xf32>
    %438 = arith.addf %436, %437 : vector<3x256xf32>
    %c0_456 = arith.constant 0 : index
    %c2_457 = arith.constant 2 : index
    %c0_458 = arith.constant 0 : index
    %c0_459 = arith.constant 0 : index
    %439 = vector.load %arg13[%c0_456, %c2_457, %c0_458, %c0_459] : memref<1x4x3x256xf32, #tpu.memory_space<vmem>>, vector<1x1x3x256xf32>
    %440 = vector.shape_cast %439 : vector<1x1x3x256xf32> to vector<3x256xf32>
    %441 = vector.shape_cast %438 : vector<3x256xf32> to vector<1x1x3x256xf32>
    tpu.vector_store %arg13[%c0_456, %c2_457, %c0_458, %c0_459], %441 {strides = array<i32>} : memref<1x4x3x256xf32, #tpu.memory_space<vmem>>, vector<1x1x3x256xf32>,
    %c0_460 = arith.constant 0 : index
    %c128_461 = arith.constant 128 : index
    %442 = vector.load %arg15[%c0_460, %c128_461] : memref<64x512xf32, #tpu.memory_space<vmem>>, vector<16x256xf32>
    %c0_462 = arith.constant 0 : index
    %c0_463 = arith.constant 0 : index
    %443 = vector.load %arg16[%c0_462, %c0_463] : memref<144x256xf32, #tpu.memory_space<vmem>>, vector<16x256xf32>
    tpu.vector_store %arg16[%c0_462, %c0_463], %442 {strides = array<i32>} : memref<144x256xf32, #tpu.memory_space<vmem>>, vector<16x256xf32>,
    %c16_464 = arith.constant 16 : index
    %c128_465 = arith.constant 128 : index
    %444 = vector.load %arg15[%c16_464, %c128_465] : memref<64x512xf32, #tpu.memory_space<vmem>>, vector<16x256xf32>
    %c16_466 = arith.constant 16 : index
    %c0_467 = arith.constant 0 : index
    %445 = vector.load %arg16[%c16_466, %c0_467] : memref<144x256xf32, #tpu.memory_space<vmem>>, vector<16x256xf32>
    tpu.vector_store %arg16[%c16_466, %c0_467], %444 {strides = array<i32>} : memref<144x256xf32, #tpu.memory_space<vmem>>, vector<16x256xf32>,
    %c0_468 = arith.constant 0 : index
    %c129_469 = arith.constant 129 : index
    %446 = vector.load %arg15[%c0_468, %c129_469] : memref<64x512xf32, #tpu.memory_space<vmem>>, vector<16x256xf32>
    %447 = vector.extract_strided_slice %6 {offsets = [2, 0], sizes = [1, 256], strides = [1, 1]} : vector<3x256xf32> to vector<1x256xf32>
    %448 = vector.broadcast %447 : vector<1x256xf32> to vector<16x256xf32>
    %449 = arith.mulf %446, %448 : vector<16x256xf32>
    %c32_470 = arith.constant 32 : index
    %c0_471 = arith.constant 0 : index
    %450 = vector.load %arg16[%c32_470, %c0_471] : memref<144x256xf32, #tpu.memory_space<vmem>>, vector<16x256xf32>
    tpu.vector_store %arg16[%c32_470, %c0_471], %449 {strides = array<i32>} : memref<144x256xf32, #tpu.memory_space<vmem>>, vector<16x256xf32>,
    %c32_472 = arith.constant 32 : index
    %c128_473 = arith.constant 128 : index
    %451 = vector.load %arg15[%c32_472, %c128_473] : memref<64x512xf32, #tpu.memory_space<vmem>>, vector<16x256xf32>
    %c48_474 = arith.constant 48 : index
    %c0_475 = arith.constant 0 : index
    %452 = vector.load %arg16[%c48_474, %c0_475] : memref<144x256xf32, #tpu.memory_space<vmem>>, vector<16x256xf32>
    tpu.vector_store %arg16[%c48_474, %c0_475], %451 {strides = array<i32>} : memref<144x256xf32, #tpu.memory_space<vmem>>, vector<16x256xf32>,
    %c48_476 = arith.constant 48 : index
    %c128_477 = arith.constant 128 : index
    %453 = vector.load %arg15[%c48_476, %c128_477] : memref<64x512xf32, #tpu.memory_space<vmem>>, vector<16x256xf32>
    %c64_478 = arith.constant 64 : index
    %c0_479 = arith.constant 0 : index
    %454 = vector.load %arg16[%c64_478, %c0_479] : memref<144x256xf32, #tpu.memory_space<vmem>>, vector<16x256xf32>
    tpu.vector_store %arg16[%c64_478, %c0_479], %453 {strides = array<i32>} : memref<144x256xf32, #tpu.memory_space<vmem>>, vector<16x256xf32>,
    %c32_480 = arith.constant 32 : index
    %c129_481 = arith.constant 129 : index
    %455 = vector.load %arg15[%c32_480, %c129_481] : memref<64x512xf32, #tpu.memory_space<vmem>>, vector<16x256xf32>
    %456 = vector.extract_strided_slice %6 {offsets = [2, 0], sizes = [1, 256], strides = [1, 1]} : vector<3x256xf32> to vector<1x256xf32>
    %457 = vector.broadcast %456 : vector<1x256xf32> to vector<16x256xf32>
    %458 = arith.mulf %455, %457 : vector<16x256xf32>
    %c80_482 = arith.constant 80 : index
    %c0_483 = arith.constant 0 : index
    %459 = vector.load %arg16[%c80_482, %c0_483] : memref<144x256xf32, #tpu.memory_space<vmem>>, vector<16x256xf32>
    tpu.vector_store %arg16[%c80_482, %c0_483], %458 {strides = array<i32>} : memref<144x256xf32, #tpu.memory_space<vmem>>, vector<16x256xf32>,
    %c0_484 = arith.constant 0 : index
    %c144_485 = arith.constant 144 : index
    %460 = vector.load %arg15[%c0_484, %c144_485] : memref<64x512xf32, #tpu.memory_space<vmem>>, vector<16x256xf32>
    %c96_486 = arith.constant 96 : index
    %c0_487 = arith.constant 0 : index
    %461 = vector.load %arg16[%c96_486, %c0_487] : memref<144x256xf32, #tpu.memory_space<vmem>>, vector<16x256xf32>
    tpu.vector_store %arg16[%c96_486, %c0_487], %460 {strides = array<i32>} : memref<144x256xf32, #tpu.memory_space<vmem>>, vector<16x256xf32>,
    %c16_488 = arith.constant 16 : index
    %c144_489 = arith.constant 144 : index
    %462 = vector.load %arg15[%c16_488, %c144_489] : memref<64x512xf32, #tpu.memory_space<vmem>>, vector<16x256xf32>
    %c112_490 = arith.constant 112 : index
    %c0_491 = arith.constant 0 : index
    %463 = vector.load %arg16[%c112_490, %c0_491] : memref<144x256xf32, #tpu.memory_space<vmem>>, vector<16x256xf32>
    tpu.vector_store %arg16[%c112_490, %c0_491], %462 {strides = array<i32>} : memref<144x256xf32, #tpu.memory_space<vmem>>, vector<16x256xf32>,
    %c0_492 = arith.constant 0 : index
    %c145_493 = arith.constant 145 : index
    %464 = vector.load %arg15[%c0_492, %c145_493] : memref<64x512xf32, #tpu.memory_space<vmem>>, vector<16x256xf32>
    %465 = vector.extract_strided_slice %6 {offsets = [2, 0], sizes = [1, 256], strides = [1, 1]} : vector<3x256xf32> to vector<1x256xf32>
    %466 = vector.broadcast %465 : vector<1x256xf32> to vector<16x256xf32>
    %467 = arith.mulf %464, %466 : vector<16x256xf32>
    %c128_494 = arith.constant 128 : index
    %c0_495 = arith.constant 0 : index
    %468 = vector.load %arg16[%c128_494, %c0_495] : memref<144x256xf32, #tpu.memory_space<vmem>>, vector<16x256xf32>
    tpu.vector_store %arg16[%c128_494, %c0_495], %467 {strides = array<i32>} : memref<144x256xf32, #tpu.memory_space<vmem>>, vector<16x256xf32>,
    %c0_496 = arith.constant 0 : index
    %c0_497 = arith.constant 0 : index
    %469 = vector.load %arg16[%c0_496, %c0_497] : memref<144x256xf32, #tpu.memory_space<vmem>>, vector<144x256xf32>
    %cst_498 = arith.constant dense<0.000000e+00> : vector<3x256xf32>
    %470 = tpu.matmul %338, %469, %cst_498 {dimension_numbers = #tpu.dot_dimension_numbers<[1], [0], [0], [1], [0, 0, 1, 1], [], []>} : vector<3x144xf32>, vector<144x256xf32>, vector<3x256xf32> -> vector<3x256xf32>
    %471 = vector.broadcast %339 : vector<3x1xf32> to vector<3x256xf32>
    %472 = arith.addf %470, %471 : vector<3x256xf32>
    %c0_499 = arith.constant 0 : index
    %c3_500 = arith.constant 3 : index
    %c0_501 = arith.constant 0 : index
    %c0_502 = arith.constant 0 : index
    %473 = vector.load %arg13[%c0_499, %c3_500, %c0_501, %c0_502] : memref<1x4x3x256xf32, #tpu.memory_space<vmem>>, vector<1x1x3x256xf32>
    %474 = vector.shape_cast %473 : vector<1x1x3x256xf32> to vector<3x256xf32>
    %475 = vector.shape_cast %472 : vector<3x256xf32> to vector<1x1x3x256xf32>
    tpu.vector_store %arg13[%c0_499, %c3_500, %c0_501, %c0_502], %475 {strides = array<i32>} : memref<1x4x3x256xf32, #tpu.memory_space<vmem>>, vector<1x1x3x256xf32>,
    return
  }
  func.func @transform_0(%arg0: i32) -> (i32, i32, i32) {
    %c0_i32 = arith.constant 0 : i32
    %c0_i32_0 = arith.constant 0 : i32
    %c0_i32_1 = arith.constant 0 : i32
    return %arg0, %c0_i32, %c0_i32_0 : i32, i32, i32
  }
  func.func @transform_1(%arg0: i32) -> (i32, i32) {
    %c0_i32 = arith.constant 0 : i32
    %c0_i32_0 = arith.constant 0 : i32
    %c0_i32_1 = arith.constant 0 : i32
    return %c0_i32, %c0_i32_0 : i32, i32
  }
  func.func @transform_2(%arg0: i32) -> (i32, i32) {
    %c0_i32 = arith.constant 0 : i32
    %c0_i32_0 = arith.constant 0 : i32
    %c0_i32_1 = arith.constant 0 : i32
    return %c0_i32, %c0_i32_0 : i32, i32
  }
  func.func @transform_3(%arg0: i32) -> (i32, i32, i32) {
    %c0_i32 = arith.constant 0 : i32
    %c0_i32_0 = arith.constant 0 : i32
    %c0_i32_1 = arith.constant 0 : i32
    %c0_i32_2 = arith.constant 0 : i32
    return %c0_i32, %c0_i32_0, %c0_i32_1 : i32, i32, i32
  }
  func.func @transform_4(%arg0: i32) -> (i32, i32, i32) {
    %c0_i32 = arith.constant 0 : i32
    %c0_i32_0 = arith.constant 0 : i32
    %c0_i32_1 = arith.constant 0 : i32
    %c0_i32_2 = arith.constant 0 : i32
    return %c0_i32, %c0_i32_0, %c0_i32_1 : i32, i32, i32
  }
  func.func @transform_5(%arg0: i32) -> (i32, i32) {
    %c0_i32 = arith.constant 0 : i32
    %c0_i32_0 = arith.constant 0 : i32
    %c0_i32_1 = arith.constant 0 : i32
    return %c0_i32, %c0_i32_0 : i32, i32
  }
  func.func @transform_6(%arg0: i32) -> (i32, i32) {
    %c0_i32 = arith.constant 0 : i32
    %c0_i32_0 = arith.constant 0 : i32
    %c0_i32_1 = arith.constant 0 : i32
    return %c0_i32, %c0_i32_0 : i32, i32
  }
  func.func @transform_7(%arg0: i32) -> (i32, i32) {
    %c0_i32 = arith.constant 0 : i32
    %c0_i32_0 = arith.constant 0 : i32
    %c0_i32_1 = arith.constant 0 : i32
    return %c0_i32, %c0_i32_0 : i32, i32
  }
  func.func @transform_8(%arg0: i32) -> (i32, i32) {
    %c0_i32 = arith.constant 0 : i32
    %c0_i32_0 = arith.constant 0 : i32
    %c0_i32_1 = arith.constant 0 : i32
    return %c0_i32, %c0_i32_0 : i32, i32
  }
  func.func @transform_9(%arg0: i32) -> (i32, i32) {
    %c0_i32 = arith.constant 0 : i32
    %c0_i32_0 = arith.constant 0 : i32
    %c0_i32_1 = arith.constant 0 : i32
    return %c0_i32, %c0_i32_0 : i32, i32
  }
  func.func @transform_10(%arg0: i32) -> (i32, i32) {
    %c0_i32 = arith.constant 0 : i32
    %c0_i32_0 = arith.constant 0 : i32
    %c0_i32_1 = arith.constant 0 : i32
    return %c0_i32, %c0_i32_0 : i32, i32
  }
  func.func @transform_11(%arg0: i32) -> (i32, i32) {
    %c0_i32 = arith.constant 0 : i32
    %c0_i32_0 = arith.constant 0 : i32
    %c0_i32_1 = arith.constant 0 : i32
    return %c0_i32, %c0_i32_0 : i32, i32
  }
  func.func @transform_12(%arg0: i32) -> (i32, i32, i32, i32) {
    %c0_i32 = arith.constant 0 : i32
    %c0_i32_0 = arith.constant 0 : i32
    %c0_i32_1 = arith.constant 0 : i32
    %c0_i32_2 = arith.constant 0 : i32
    return %arg0, %c0_i32, %c0_i32_0, %c0_i32_1 : i32, i32, i32, i32
  }
}

</mosaic_0001>

<bundles_post_ra>
// kernel: edsr_forward.1
= control target key start
LH: loop header
LB: loop body
LE: loop exit
PB: predicated region body
PF: predicated region fallthrough
CT: control target
= control target key end

     0   :  { %s9327_s0 = inlined_call_operand.vmem [shape: f32[2,3,256], index: 0, kind: input, shape index: {}]   ;;  %s9328_s1 = inlined_call_operand.hbm [shape: f32[16,144], index: 1, kind: input, shape index: {}]   ;;  %s9329_s2 = inlined_call_operand.vmem [shape: f32[16,1], index: 2, kind: input, shape index: {}]   ;;  %s9330_s3 = inlined_call_operand.hbm [shape: f32[5,16,144], index: 3, kind: input, shape index: {}]   ;;  %s9331_s4 = inlined_call_operand.vmem [shape: f32[5,16,1], index: 4, kind: input, shape index: {}]   ;;  %s9332_s5 = inlined_call_operand.hbm [shape: f32[64,144], index: 5, kind: input, shape index: {}]   ;;  %s9333_s6 = inlined_call_operand.vmem [shape: f32[64,1], index: 6, kind: input, shape index: {}]   ;;  %s9334_s7 = inlined_call_operand.hbm [shape: f32[3,144], index: 7, kind: input, shape index: {}]   ;;  %s9335_s8 = inlined_call_operand.vmem [shape: f32[3,1], index: 8, kind: input, shape index: {}]   ;;  %s9336_s9 = inlined_call_operand.vmem [shape: f32[3,1], index: 9, kind: input, shape index: {}]   ;;  %s9337_s10 = inlined_call_operand.vmem [shape: f32[3,1], index: 10, kind: input, shape index: {}]   ;;  %s9338_s11 = inlined_call_operand.hbm [shape: f32[3,256], index: 11, kind: input, shape index: {}]   ;;  %s9339_s12 = inlined_call_operand.vmem [shape: f32[2,4,3,256], index: 12, kind: output, shape index: {}]  }
   0x1   :  { %9343 = sst [smem:[#allocation17_spill]] %s9339_s12 }
   0x2   :  { %17 = vsyncpa [#allocation6], 0 }
   0x3   :  { %18 = vsyncpa [#allocation8], 0 }
   0x4   :  { %19 = vsyncpa [#allocation11], 0  ;;  %s7488_s21 = smov 0  }
   0x5 LB: > { %9344 = sst [smem:[#allocation16_spill]] %s7403_s21  ;;  %s7494_s22 = sadd.s32 4294967295, %s7403_s21   ;;  %s7403_s21 = sphi %s7488_s21, %s25_s21  }
   0x6   : > { %p5575_p0 = scmp.ge.s32.totalorder %s7403_s21, 1  ;;  %p313_p1 = scmp.lt.s32.totalorder %s7403_s21, 3 }
   0x7   : > { %p9341_p2 = scmp.eq.s32.totalorder %s7494_s22, 0  ;;  %s7405_s24 = smov [#allocation7]  }
   0x8   : > { %p7499_p3 = pnand %p5575_p0, %p313_p1  ;;  %s341_s25 = sshll.u32 %s7405_s24, 4  ;;  %s7503_s25 = int_to_ptr.vmem [resolvable:$true] %s341_s25 }
   0x9   : > { %s7406_s26 = smov [#allocation10]   ;;  %s7407_s29 = smov [#allocation5]  }
   0xa   : > { %s9345_s23 = scalar_select %p7499_p3, 1, 0 }
   0xb   : > { %p6047_p4 = pneg %p7499_p3  ;;  %s374_s27 = sshll.u32 %s7406_s26, 4  ;;  %s7507_s27 = int_to_ptr.vmem [resolvable:$true] %s374_s27 }
   0xc   : > { %s325_s30 = sshll.u32 %s7407_s29, 4  ;;  %s7408_s13 = smov [#allocation9]   ;;  %s7515_s30 = int_to_ptr.vmem [resolvable:$true] %s325_s30 }
   0xd   : > { %p7511_p5 = pnand %p9341_p2, %p6047_p4  ;;  %s7517_s14 = sshll.u32 %s7408_s13, 4  ;;  %s358_s14 = int_to_ptr.vmem [resolvable:$true] %s7517_s14 }
   0xe   : > { %s7245_s17 = scalar_lea.hbm %s9330_s3, 2560 }
   0xf   : > { %p7246_p6 = scmp.ne.s32.totalorder %s9330_s3, %s7245_s17  ;;  %p7527_p7 = pneg %p7511_p5 }
  0x10   : > { %p7252_p10 = scmp.lt.u32.totalorder %s7245_s17, %s9330_s3 }
  0x11   : > { %p7248_p8 = pnand %p7527_p7, %p7246_p6 }
  0x13   : > { %p7249_p9 = pneg %p7248_p8 }
  0x15   : > { %p7254_p11 = pnand %p7252_p10, %p7249_p9 }
  0x17   : > { %7257 = shalt.err (!%p7254_p11)
}
  0x18   : > { %s7258_s29 = scalar_lea.vmem %s7503_s25, 2560  ;;  %p7266_p1 = scmp.lt.s32.totalorder %s7503_s25, %s7503_s25 }
  0x19   : > { %p7259_p12 = scmp.ne.s32.totalorder %s7503_s25, %s7258_s29  ;;  %p7267_p4 = scmp.lt.s32.totalorder %s7258_s29, %s7258_s29 }
  0x1b   : > { %p7261_p13 = pnand %p7259_p12, %p7527_p7  ;;  %p7268_p6 = por %p7267_p4, %p7266_p1 }
  0x1d   : > { %p7262_p0 = pneg %p7261_p13 }
  0x1f   : > { %p7269_p8 = pnand %p7268_p6, %p7262_p0 }
  0x21   : > { %7272 = shalt.err (!%p7269_p8)
}
  0x22   : > { %s7409_s13 = smov 256   ;;  %s7410_s15 = smov 16  }
  0x23   : > { %6053 = dma.hbm_to_vmem [thread:$0]  (!%p7511_p5), %s9330_s3, 2560, %s7503_s25, [#allocation8], %s7409_s13, %s7409_s13, %s7410_s15  }
  0x24   : > { %s7273_s24 = scalar_lea.hbm %s9334_s7, 128 }
  0x25   : > { %p7274_p9 = scmp.ne.s32.totalorder %s9334_s7, %s7273_s24  ;;  %p7280_p12 = scmp.lt.u32.totalorder %s7273_s24, %s9334_s7 }
  0x27   : > { %p7276_p10 = pnand %p7274_p9, %p7527_p7 }
  0x29   : > { %p7277_p11 = pneg %p7276_p10 }
  0x2b   : > { %p7282_p13 = pnand %p7280_p12, %p7277_p11 }
  0x2d   : > { %7285 = shalt.err (!%p7282_p13)
}
  0x2e   : > { %s7286_s25 = scalar_lea.vmem %s7507_s27, 128  ;;  %p7294_p6 = scmp.lt.s32.totalorder %s7507_s27, %s7507_s27 }
  0x2f   : > { %p7287_p0 = scmp.ne.s32.totalorder %s7507_s27, %s7286_s25  ;;  %p7295_p8 = scmp.lt.s32.totalorder %s7286_s25, %s7286_s25 }
  0x31   : > { %p7289_p1 = pnand %p7287_p0, %p7527_p7  ;;  %p7296_p9 = por %p7295_p8, %p7294_p6 }
  0x33   : > { %p7290_p4 = pneg %p7289_p1 }
  0x35   : > { %p7297_p10 = pnand %p7296_p9, %p7290_p4 }
  0x37   : > { %7300 = shalt.err (!%p7297_p10)
}
  0x38   : > { %6059 = dma.hbm_to_vmem [thread:$0]  (!%p7511_p5), %s9334_s7, 128, %s7507_s27, [#allocation11]  }
  0x39   : > { %s7301_s18 = scalar_lea.hbm %s9328_s1, 512 }
  0x3a   : > { %p7302_p11 = scmp.ne.s32.totalorder %s9328_s1, %s7301_s18  ;;  %p7308_p0 = scmp.lt.u32.totalorder %s7301_s18, %s9328_s1 }
  0x3c   : > { %p7304_p12 = pnand %p7302_p11, %p7527_p7 }
  0x3e   : > { %p7305_p13 = pneg %p7304_p12 }
  0x40   : > { %p7310_p1 = pnand %p7308_p0, %p7305_p13 }
  0x42   : > { %7313 = shalt.err (!%p7310_p1)
}
  0x43   : > { %s7314_s27 = scalar_lea.vmem %s7515_s30, 512  ;;  %p7322_p9 = scmp.lt.s32.totalorder %s7515_s30, %s7515_s30 }
  0x44   : > { %p7315_p4 = scmp.ne.s32.totalorder %s7515_s30, %s7314_s27  ;;  %p7323_p10 = scmp.lt.s32.totalorder %s7314_s27, %s7314_s27 }
  0x46   : > { %p7317_p6 = pnand %p7315_p4, %p7527_p7  ;;  %p7324_p11 = por %p7323_p10, %p7322_p9 }
  0x48   : > { %p7318_p8 = pneg %p7317_p6 }
  0x4a   : > { %p7325_p12 = pnand %p7324_p11, %p7318_p8 }
  0x4c   : > { %7328 = shalt.err (!%p7325_p12)
}
  0x4d   : > { %6050 = dma.hbm_to_vmem [thread:$0]  (!%p7511_p5), %s9328_s1, 512, %s7515_s30, [#allocation6], %s7409_s13, %s7409_s13, %s7410_s15  }
  0x4e   : > { %s7329_s17 = scalar_lea.hbm %s9332_s5, 2048 }
  0x4f   : > { %p7330_p13 = scmp.ne.s32.totalorder %s9332_s5, %s7329_s17  ;;  %p7336_p4 = scmp.lt.u32.totalorder %s7329_s17, %s9332_s5 }
  0x51   : > { %p7332_p0 = pnand %p7330_p13, %p7527_p7 }
  0x53   : > { %p7333_p1 = pneg %p7332_p0 }
  0x55   : > { %p7338_p6 = pnand %p7336_p4, %p7333_p1 }
  0x57   : > { %7341 = shalt.err (!%p7338_p6)
}
  0x58   : > { %s7342_s29 = scalar_lea.vmem %s358_s14, 2048  ;;  %p7350_p11 = scmp.lt.s32.totalorder %s358_s14, %s358_s14 }
  0x59   : > { %p7343_p8 = scmp.ne.s32.totalorder %s358_s14, %s7342_s29  ;;  %p7351_p12 = scmp.lt.s32.totalorder %s7342_s29, %s7342_s29 }
  0x5b   : > { %p7345_p9 = pnand %p7343_p8, %p7527_p7  ;;  %p7352_p2 = por %p7351_p12, %p7350_p11 }
  0x5d   : > { %p7346_p10 = pneg %p7345_p9 }
  0x5f   : > { %p7353_p3 = pnand %p7352_p2, %p7346_p10 }
  0x61   : > { %7356 = shalt.err (!%p7353_p3)
}
  0x62   : > { %6056 = dma.hbm_to_vmem [thread:$0]  (!%p7511_p5), %s9332_s5, 2048, %s358_s14, [#allocation8], %s7409_s13, %s7409_s13, %s7410_s15  }
  0x63   : > { %s7411_s25 = smov [#allocation12]   ;;  %s7357_s17 = scalar_lea.hbm %s9338_s11, 128 }
  0x64   : > { %s394_s12 = sshll.u32 %s7411_s25, 4  ;;  %p7358_p2 = scmp.ne.s32.totalorder %s9338_s11, %s7357_s17  ;;  %s395_s12 = int_to_ptr.vmem [resolvable:$true] %s394_s12 }
  0x65   : > { %p7364_p0 = scmp.lt.u32.totalorder %s7357_s17, %s9338_s11 }
  0x66   : > { %p7360_p3 = pnand %p7358_p2, %p7527_p7 }
  0x68   : > { %p7361_p13 = pneg %p7360_p3 }
  0x6a   : > { %p7366_p1 = pnand %p7364_p0, %p7361_p13 }
  0x6c   : > { %7369 = shalt.err (!%p7366_p1)
}
  0x6d   : > { %s7370_s14 = scalar_lea.vmem %s395_s12, 128  ;;  %p7378_p9 = scmp.lt.s32.totalorder %s395_s12, %s395_s12 }
  0x6e   : > { %p7371_p4 = scmp.ne.s32.totalorder %s395_s12, %s7370_s14  ;;  %p7379_p10 = scmp.lt.s32.totalorder %s7370_s14, %s7370_s14 }
  0x70   : > { %p7373_p6 = pnand %p7371_p4, %p7527_p7  ;;  %p7380_p11 = por %p7379_p10, %p7378_p9 }
  0x72   : > { %p7374_p8 = pneg %p7373_p6 }
  0x74   : > { %p7381_p12 = pnand %p7380_p11, %p7374_p8 }
  0x76   : > { %7384 = shalt.err (!%p7381_p12)
}
  0x77   : > { %6062 = dma.hbm_to_vmem [thread:$0]  (!%p7511_p5), %s9338_s11, 128, %s395_s12, [#allocation11]  }
  0x78   : > { %p9348_p2 = scmp.ne.s32.totalorder %s9345_s23, 0 }
  0x79   : > { %p9349_p3 = scmp.eq.s32.totalorder (!%p9348_p2), %s7494_s22, 0 }
  0x7a   : > { %415 = sbr.rel (%p9348_p2) target bundleno = 3421 (0xd5d), region = 68 }
  0x81   : > { %7390 = dma.done.wait (%p9349_p3), [#allocation6], 512   ;;  %p9350_p7 = pmov %p9349_p3 }
  0x82   : > { %p9351_p13 = pmov %p9349_p3 }
  0x83   : > { %7392 = vsyncadd (%p9350_p7), [#allocation6], 4294966784 }
  0x84   : > { %7394 = dma.done.wait (%p9351_p13), [#allocation8], 4608   ;;  %p9352_p0 = pmov %p9349_p3 }
  0x86   : > { %7396 = vsyncadd (%p9352_p0), [#allocation8], 4294962688  ;;  %p9353_p1 = pmov %p9352_p0 }
  0x87   : > { %p9354_p5 = pmov %p9352_p0 }
  0x88   : > { %7398 = dma.done.wait (%p9353_p1), [#allocation11], 256  }
  0x89   : > { %7400 = vsyncadd (%p9354_p5), [#allocation11], 4294967040  ;;  %v517_v0 = vlaneseq  ;;  %v7412_v1 = vmov 0   ;;  %v509_v6 = vld [vmem:[%s9336_s9] sm:$0x7]  ;;  %s7413_s30 = smov 111  }
  0x8a   : > { %6099 = vset.pattern.permute.xlu0 %v7412_v1  ;;  %6220 = vset.pattern.permute.xlu1 %v7412_v1  ;;  %v507_v7 = vld [vmem:[#allocation12] sm:$0x77]  ;;  %v523_v12 = vld [vmem:[%s9337_s10] sm:$0x7]  ;;  %v7414_v17 = vmov 0.0   ;;  %s7415_s27 = smov 113  }
  0x8b   : > { %v518_v2 = vshrl.u32 %v517_v0, 7  ;;  %512 = vperm.xlu0 %6099, %v509_v6   ;;  %484 = vst [vmem:[#allocation2 + $0x8] sm:$0xff] %v7414_v17  ;;  %485 = vst [vmem:[#allocation2 + $0x10] sm:$0xff] %v7414_v17  ;;  %s7416_s25 = smov 127   ;;  %s7417_s12 = smov 1   ;;  %vm579_vm0 = vcmask 908288  }
  0x8c   : > { %483 = vst [vmem:[#allocation2] sm:$0xff] %v7414_v17  ;;  %s7418_s21 = smov 15   ;;  %s7419_s16 = smov 17   ;;  %v7421_v19 = vmov 839922192   ;;  %vm688_vm1 = vcmask 924672  }
  0x8d   : > { %v557_v3 = vsub.s32 0, %v518_v2  ;;  %v561_v4 = vsub.s32 4, %v518_v2  ;;  %v666_v5 = vsub.s32 2, %v518_v2  ;;  %v670_v11 = vsub.s32 6, %v518_v2  ;;  %s7420_s17 = smov 16   ;;  %p473_p4 = scmp.lt.s32.totalorder %s7494_s22, 1 }
  0x8e   : > { %v515_v20 = vunpack.c.l.s4 %v7421_v19  ;;  %vm740_vm2 = vcmask 1039360   ;;  %vm769_vm3 = vcmask 7168   ;;  %vm717_vm4 = vcmask 121856   ;;  %s7422_s14 = smov 112  }
  0x8f   : > { %v558_v8 = vrot.slane %v507_v7, %v557_v3  ;;  %v562_v9 = vrot.slane %v507_v7, %v561_v4  ;;  %v667_v10 = vrot.slane %v507_v7, %v666_v5  ;;  %526 = vperm.xlu0 %6099, %v523_v12   ;;  %v671_v16 = vrot.slane %v507_v7, %v670_v11  ;;  %s9359_s22 = smov (!%p473_p4, %s7494_s22), 1 }
  0x90   : > { %v516_v23 = vunpack.c.0.s8 %v515_v20  ;;  %s5629_s18 = sshll.u32 %s9359_s22, 3  ;;  %vm608_vm5 = vcmask 138240   ;;  %vm645_vm6 = vcmask 130048   ;;  %vm914_vm7 = vcmask 916480  }
  0x91   : > { %v568_v13 = vrot.slane %v558_v8, %v557_v3  ;;  %v572_v14 = vrot.slane %v562_v9, %v557_v3  ;;  %v677_v15 = vrot.slane %v667_v10, %v666_v5  ;;  %v681_v18 = vrot.slane %v671_v16, %v666_v5  ;;  %s477_s26 = scalar_lea.vmem %s9327_s0, %s5629_s18 }
  0x92   : > { %v519_v28 = vsub.s32 %v516_v23, %v518_v2  ;;  %v508_v33 = vld [vmem:[%s477_s26] sm:$0x77] }
  0x93   : > { %575 = vrot.lane.b32.xlu1 %v568_v13, %s7413_s30  ;;  %684 = vrot.lane.b32.xlu0 %v677_v15, %s7415_s27 }
  0x97   : > { %577 = vrot.lane.b32.xlu1 %v572_v14, %s7413_s30  ;;  %736 = vrot.lane.b32.xlu0 %v568_v13, %s7416_s25 }
  0x9b   : > { %686 = vrot.lane.b32.xlu1 %v681_v18, %s7415_s27  ;;  %796 = vrot.lane.b32.xlu0 %v677_v15, %s7417_s12 }
  0x9f   : > { %738 = vrot.lane.b32.xlu1 %v572_v14, %s7416_s25  ;;  %846 = vrot.lane.b32.xlu0 %v568_v13, %s7418_s21 }
  0xa3   : > { %798 = vrot.lane.b32.xlu1 %v681_v18, %s7417_s12  ;;  %933 = vrot.lane.b32.xlu0 %v677_v15, %s7419_s16 }
  0xa7   : > { %848 = vrot.lane.b32.xlu1 %v572_v14, %s7418_s21  ;;  %6101 = vrot.lane.b32.xlu0 %v7414_v17, %s7420_s17 }
  0xab   : > { %935 = vrot.lane.b32.xlu1 %v681_v18, %s7419_s16 }
  0xaf   : > { %6106 = vrot.lane.b32.xlu1 %v7414_v17, %s7420_s17 }
 0x105   : > { %v7680_v21 = vpop.permute.xlu1 %575 }
 0x106   : > { %v584_v22 = vmul.f32 0.0, %v7680_v21 }
 0x108   : > { %v7686_v24 = vpack.i.bf16 %v584_v22, %v584_v22 }
 0x109   : > { %v7688_v25 = vpop.permute.xlu1 %577 }
 0x10a   : > { %v7694_v26 = vsel %vm579_vm0, %v7680_v21, %v7688_v25  ;;  %v589_v27 = vmul.f32 0.0, %v7688_v25  ;;  %6111 = vrot.lane.b32.xlu0 %v7686_v24, %s7419_s16  ;;  %v513_v31 = vpop.permute.xlu0 %512 }
 0x10b   : > { %v588_v29 = vmul.f32 0.0, %v7694_v26  ;;  %v520_v32 = vrot.slane %v513_v31, %v519_v28 }
 0x10d   : > { %v6120_v30 = vpack.i.bf16 %v589_v27, %v588_v29  ;;  %v522_v35 = vmul.f32 %v520_v32, %v508_v33  ;;  %v7704_v38 = vpop.permute.xlu1 %686 }
 0x10e   : > { %v527_v34 = vpop.permute.xlu0 %526  ;;  %v698_v40 = vmul.f32 0.0, %v7704_v38 }
 0x10f   : > { %6121 = vrot.lane.b32.xlu1 %v6120_v30, %s7419_s16  ;;  %v534_v36 = vrot.slane %v527_v34, %v519_v28 }
 0x111   : > { %v536_v37 = vadd.f32 %v534_v36, %v522_v35  ;;  %v7723_v48 = vpop.permute.xlu1 %738 }
 0x112   : > { %v7706_v39 = vpop.permute.xlu0 %684  ;;  %v750_v53 = vmul.f32 0.0, %v7723_v48 }
 0x113   : > { %v544_v41 = vcombine.high %v536_v37, %v536_v37  ;;  %546 = vst [vmem:[#allocation2 + $0x8] sm:$0x7] %v536_v37  ;;  %v7712_v42 = vsel %vm688_vm1, %v7706_v39, %v7704_v38  ;;  %v693_v43 = vmul.f32 0.0, %v7706_v39 }
 0x114   : > { %v697_v44 = vmul.f32 0.0, %v7712_v42 }
 0x115   : > { %547 = vst [vmem:[#allocation2 + $0x10] sm:$0x7] %v544_v41  ;;  %v7716_v45 = vpack.i.bf16 %v693_v43, %v693_v43  ;;  %v7745_v59 = vpop.permute.xlu1 %798  ;;  %v538_v41 = vld [vmem:[#allocation5 + $0x8] sm:$0xff] }
 0x116   : > { %v6125_v46 = vpack.i.bf16 %v698_v40, %v697_v44  ;;  %v7721_v47 = vpop.permute.xlu0 %736  ;;  %v7773_v8 = vmul.f32 0.0, %v7745_v59  ;;  %5592 = vmatprep.mubr.msk.f32.mxu0 %vm645_vm6, %v538_v41 }
 0x117   : > { %6116 = vrot.lane.b32.xlu0 %v7716_v45, %s7418_s21  ;;  %v745_v50 = vmul.f32 0.0, %v7721_v47  ;;  %v7733_v52 = vsel %vm740_vm2, %v7721_v47, %v7723_v48 }
 0x118   : > { %6126 = vrot.lane.b32.xlu1 %v6125_v46, %s7418_s21  ;;  %v749_v57 = vmul.f32 0.0, %v7733_v52 }
 0x119   : > { %v7748_v61 = vpack.i.bf16 %v745_v50, %v745_v50  ;;  %v7767_v5 = vpop.permute.xlu1 %848 }
 0x11a   : > { %v7725_v49 = vld [vmem:[#allocation2 + $0x8] sm:$0xff]  ;;  %v7743_v58 = vpop.permute.xlu0 %796  ;;  %v6140_v62 = vpack.i.bf16 %v750_v53, %v749_v57  ;;  %v7792_v19 = vmul.f32 0.0, %v7767_v5  ;;  %v541_v53 = vld [vmem:[%s9329_s2] sm:$0xff] }
 0x11b   : > { %v585_v55 = vmul.f32 %v7725_v49, %v7694_v26  ;;  %v7756_v0 = vsel %vm769_vm3, %v7743_v58, %v7745_v59  ;;  %v746_v1 = vmul.f32 %v7733_v52, %v7725_v49  ;;  %v694_v7 = vmul.f32 %v7712_v42, %v7725_v49 }
 0x11c   : > { %v7728_v51 = vld [vmem:[#allocation2 + $0x10] sm:$0xff]  ;;  %v808_v3 = vmul.f32 0.0, %v7756_v0  ;;  %v804_v11 = vmul.f32 %v7743_v58, %v7725_v49  ;;  %v807_v12 = vmul.f32 0.0, %v7743_v58  ;;  %v6200_v43 = vpack.i.bf16 %v7414_v17, %v7725_v49 }
 0x11d   : > { %v6130_v54 = vpack.i.bf16 %v7728_v51, %v7725_v49  ;;  %v586_v56 = vmul.f32 %v7728_v51, %v7688_v25  ;;  %v747_v63 = vmul.f32 %v7723_v48, %v7728_v51  ;;  %v695_v2 = vmul.f32 %v7704_v38, %v7728_v51  ;;  %v7800_v28 = vpop.permute.xlu1 %935 }
 0x11e   : > { %v7765_v4 = vpop.permute.xlu0 %846  ;;  %v6160_v10 = vpack.i.bf16 %v7773_v8, %v808_v3  ;;  %v6165_v18 = vpack.i.bf16 %v807_v12, %v804_v11  ;;  %v805_v29 = vmul.f32 %v7756_v0, %v7728_v51  ;;  %v7818_v34 = vmul.f32 0.0, %v7800_v28 }
 0x11f   : > { %6131 = vrot.lane.b32.xlu1 %v6130_v54, %s7420_s17  ;;  %v6135_v60 = vpack.i.bf16 %v586_v56, %v585_v55  ;;  %v6155_v6 = vpack.i.bf16 %v747_v63, %v746_v1  ;;  %v6150_v9 = vpack.i.bf16 %v695_v2, %v694_v7  ;;  %v7783_v13 = vsel %vm717_vm4, %v7765_v4, %v7767_v5  ;;  %v542_v54 = vld [vmem:[%s9329_s2 + $0x8] sm:$0xff] }
 0x120   : > { %v854_v14 = vmul.f32 %v7765_v4, %v7725_v49  ;;  %v857_v15 = vmul.f32 0.0, %v7765_v4  ;;  %v858_v16 = vmul.f32 0.0, %v7783_v13  ;;  %v855_v23 = vmul.f32 %v7783_v13, %v7728_v51 }
 0x121   : > { %6136 = vrot.lane.b32.xlu0 %v6135_v60, %s7419_s16  ;;  %v6180_v32 = vpack.i.bf16 %v7773_v8, %v805_v29  ;;  %v6185_v35 = vpack.i.bf16 %v7414_v17, %v7728_v51  ;;  %v6107_v55 = vpop.permute.xlu1 %6106 }
 0x122   : > { %v6175_v20 = vpack.i.bf16 %v857_v15, %v854_v14  ;;  %v6170_v22 = vpack.i.bf16 %v7792_v19, %v858_v16  ;;  %v7798_v27 = vpop.permute.xlu0 %933  ;;  %v6190_v30 = vpack.i.bf16 %v7792_v19, %v855_v23 }
 0x123   : > { %6146 = vrot.lane.b32.xlu1 %v7748_v61, %s7417_s12  ;;  %v7810_v31 = vsel %vm608_vm5, %v7798_v27, %v7800_v28  ;;  %v941_v37 = vmul.f32 %v7798_v27, %v7725_v49  ;;  %v944_v40 = vmul.f32 0.0, %v7798_v27 }
 0x124   : > { %v942_v33 = vmul.f32 %v7810_v31, %v7728_v51  ;;  %v945_v44 = vmul.f32 0.0, %v7810_v31 }
 0x125   : > { %6141 = vrot.lane.b32.xlu0 %v6140_v62, %s7417_s12  ;;  %v6215_v46 = vpack.i.bf16 %v944_v40, %v941_v37 }
 0x126   : > { %v6210_v36 = vpack.i.bf16 %v7818_v34, %v942_v33  ;;  %v6205_v50 = vpack.i.bf16 %v7818_v34, %v945_v44  ;;  %v6102_v56 = vpop.permute.xlu0 %6101 }
 0x127   : > { %6156 = vrot.lane.b32.xlu1 %v6155_v6, %s7417_s12  ;;  %v6103_v12 = vunpack.i.l.bf16 %v6102_v56 }
 0x129   : > { %6151 = vrot.lane.b32.xlu0 %v6150_v9, %s7418_s21 }
 0x12b   : > { %6161 = vrot.lane.b32.xlu1 %v6160_v10, %s7416_s25  ;;  %v6104_v10 = vunpack.i.h.bf16 %v6102_v56 }
 0x12d   : > { %6166 = vrot.lane.b32.xlu0 %v6165_v18, %s7416_s25  ;;  %v6109_v18 = vunpack.i.h.bf16 %v6107_v55  ;;  %v649_v40 = vsel %vm645_vm6, %v6103_v12, %v6104_v10 }
 0x12f   : > { %6176 = vrot.lane.b32.xlu1 %v6175_v20, %s7415_s27  ;;  %v6108_v20 = vunpack.i.l.bf16 %v6107_v55  ;;  %v648_v56 = vsel %vm645_vm6, %v6109_v18, %v6103_v12 }
 0x131   : > { %6171 = vrot.lane.b32.xlu0 %v6170_v22, %s7415_s27 }
 0x133   : > { %6191 = vrot.lane.b32.xlu1 %v6190_v30, %s7415_s27 }
 0x135   : > { %6181 = vrot.lane.b32.xlu0 %v6180_v32, %s7416_s25 }
 0x137   : > { %6196 = vrot.lane.b32.xlu1 %v7414_v17, %s7422_s14 }
 0x139   : > { %6186 = vrot.lane.b32.xlu0 %v6185_v35, %s7422_s14 }
 0x13b   : > { %6211 = vrot.lane.b32.xlu1 %v6210_v36, %s7413_s30 }
 0x13d   : > { %6201 = vrot.lane.b32.xlu0 %v6200_v43, %s7422_s14 }
 0x13f   : > { %6216 = vrot.lane.b32.xlu1 %v6215_v46, %s7413_s30 }
 0x141   : > { %6206 = vrot.lane.b32.xlu0 %v6205_v50, %s7413_s30 }
 0x143   : > { %1020 = vperm.xlu1 %6220, %v542_v54  }
 0x145   : > { %1015 = vperm.xlu0 %6099, %v541_v53  }
 0x147   : > { %6227 = vrot.lane.b32.xlu1 %v7414_v17, %s7420_s17 }
 0x149   : > { %6222 = vrot.lane.b32.xlu0 %v7686_v24, %s7419_s16 }
 0x14d   : > { %6232 = vrot.lane.b32.xlu0 %v7716_v45, %s7418_s21 }
 0x17c   : > { %v6112_v60 = vpop.permute.xlu0 %6111 }
 0x17d   : > { %v6114_v6 = vunpack.i.h.bf16 %v6112_v60  ;;  %v6113_v14 = vunpack.i.l.bf16 %v6112_v60 }
 0x181   : > { %v6122_v57 = vpop.permute.xlu1 %6121 }
 0x182   : > { %v6124_v1 = vunpack.i.h.bf16 %v6122_v57  ;;  %v6123_v2 = vunpack.i.l.bf16 %v6122_v57 }
 0x184   : > { %v612_v23 = vsel %vm608_vm5, %v6123_v2, %v6124_v1  ;;  %v611_v32 = vsel %vm608_vm5, %v6114_v6, %v6123_v2 }
 0x189   : > { %v6117_v63 = vpop.permute.xlu0 %6116 }
 0x18a   : > { %v6127_v62 = vpop.permute.xlu1 %6126  ;;  %v6119_v53 = vunpack.i.h.bf16 %v6117_v63  ;;  %v6118_v57 = vunpack.i.l.bf16 %v6117_v63 }
 0x18b   : > { %v6129_v43 = vunpack.i.h.bf16 %v6127_v62  ;;  %v6128_v44 = vunpack.i.l.bf16 %v6127_v62 }
 0x18d   : > { %v721_v62 = vsel %vm717_vm4, %v6128_v44, %v6129_v43  ;;  %v5647_v43 = vpack.c.bf16 %v7414_v17, %v7728_v51 }
 0x191   : > { %v6132_v3 = vpop.permute.xlu1 %6131 }
 0x192   : > { %v6134_v7 = vunpack.i.h.bf16 %v6132_v3  ;;  %v6133_v9 = vunpack.i.l.bf16 %v6132_v3 }
 0x193   : > { %v6137_v11 = vpop.permute.xlu0 %6136 }
 0x194   : > { %v6139_v15 = vunpack.i.h.bf16 %v6137_v11  ;;  %v6138_v16 = vunpack.i.l.bf16 %v6137_v11  ;;  %v647_v33 = vsel %vm645_vm6, %v6133_v9, %v6134_v7  ;;  %v646_v41 = vsel %vm645_vm6, %v6108_v20, %v6133_v9 }
 0x195   : > { %v6147_v22 = vpop.permute.xlu1 %6146  ;;  %v5635_v50 = vpack.c.bf16 %v649_v40, %v647_v33  ;;  %v5637_v1 = vpack.c.bf16 %v648_v56, %v646_v41 }
 0x196   : > { %v610_v29 = vsel %vm608_vm5, %v6138_v16, %v6139_v15  ;;  %v609_v30 = vsel %vm608_vm5, %v6113_v14, %v6138_v16  ;;  %v720_v14 = vsel %vm717_vm4, %v6119_v53, %v6128_v44  ;;  %v6149_v63 = vunpack.i.h.bf16 %v6147_v22 }
 0x197   : > { %v6142_v35 = vpop.permute.xlu0 %6141  ;;  %v5631_v36 = vpack.c.bf16 %v612_v23, %v610_v29  ;;  %v5633_v37 = vpack.c.bf16 %v611_v32, %v609_v30  ;;  %v6148_v15 = vunpack.i.l.bf16 %v6147_v22 }
 0x198   : > { %v6144_v2 = vunpack.i.h.bf16 %v6142_v35  ;;  %v6143_v3 = vunpack.i.l.bf16 %v6142_v35 }
 0x199   : > { %v6157_v46 = vpop.permute.xlu1 %6156  ;;  %5632 = vmatprep.subr.bf16.mxu0 %v5631_v36 }
 0x19a   : > { %v6159_v54 = vunpack.i.h.bf16 %v6157_v46  ;;  %v6158_v55 = vunpack.i.l.bf16 %v6157_v46  ;;  %5634 = vmatpush1.bf16.msra.mxu0 %v5633_v37  ;;  %v773_v23 = vsel %vm769_vm3, %v6143_v3, %v6144_v2  ;;  %v772_v35 = vsel %vm769_vm3, %v6149_v63, %v6143_v3 }
 0x19b   : > { %v6152_v60 = vpop.permute.xlu0 %6151  ;;  %5636 = vmatprep.subr.bf16.mxu0 %v5635_v50 }
 0x19c   : > { %v6154_v6 = vunpack.i.h.bf16 %v6152_v60  ;;  %v6153_v7 = vunpack.i.l.bf16 %v6152_v60  ;;  %v771_v12 = vsel %vm769_vm3, %v6158_v55, %v6159_v54  ;;  %v770_v32 = vsel %vm769_vm3, %v6148_v15, %v6158_v55 }
 0x19d   : > { %v6162_v9 = vpop.permute.xlu1 %6161  ;;  %v5643_v30 = vpack.c.bf16 %v773_v23, %v771_v12  ;;  %v5645_v36 = vpack.c.bf16 %v772_v35, %v770_v32  ;;  %v5649_v54 = vpack.c.bf16 %v7414_v17, %v7725_v49 }
 0x19e   : > { %5638 = vmatpush1.bf16.msra.mxu0 %v5637_v1  ;;  %v719_v10 = vsel %vm717_vm4, %v6153_v7, %v6154_v6  ;;  %v718_v11 = vsel %vm717_vm4, %v6118_v57, %v6153_v7  ;;  %v6164_v37 = vunpack.i.h.bf16 %v6162_v9  ;;  %v6163_v40 = vunpack.i.l.bf16 %v6162_v9 }
 0x19f   : > { %v6167_v16 = vpop.permute.xlu0 %6166  ;;  %v5639_v18 = vpack.c.bf16 %v721_v62, %v719_v10  ;;  %v5641_v20 = vpack.c.bf16 %v720_v14, %v718_v11 }
 0x1a0   : > { %v6169_v41 = vunpack.i.h.bf16 %v6167_v16  ;;  %v6168_v50 = vunpack.i.l.bf16 %v6167_v16  ;;  %v831_v2 = vsel %vm740_vm2, %v6163_v40, %v6164_v37 }
 0x1a1   : > { %v6177_v29 = vpop.permute.xlu1 %6176  ;;  %5640 = vmatprep.subr.bf16.mxu0 %v5639_v18 }
 0x1a2   : > { %5642 = vmatpush1.bf16.msra.mxu0 %v5641_v20  ;;  %v830_v3 = vsel %vm740_vm2, %v6169_v41, %v6163_v40  ;;  %v6178_v10 = vunpack.i.l.bf16 %v6177_v29  ;;  %v6179_v16 = vunpack.i.h.bf16 %v6177_v29 }
 0x1a3   : > { %v6172_v33 = vpop.permute.xlu0 %6171  ;;  %5644 = vmatprep.subr.bf16.mxu0 %v5643_v30 }
 0x1a4   : > { %v6174_v55 = vunpack.i.h.bf16 %v6172_v33  ;;  %v6173_v56 = vunpack.i.l.bf16 %v6172_v33 }
 0x1a5   : > { %v6192_v22 = vpop.permute.xlu1 %6191 }
 0x1a6   : > { %v6194_v44 = vunpack.i.h.bf16 %v6192_v22  ;;  %v6193_v46 = vunpack.i.l.bf16 %v6192_v22  ;;  %5646 = vmatpush1.bf16.msra.mxu0 %v5645_v36  ;;  %v881_v15 = vsel %vm688_vm1, %v6173_v56, %v6174_v55  ;;  %v880_v35 = vsel %vm688_vm1, %v6179_v16, %v6173_v56 }
 0x1a7   : > { %v6182_v53 = vpop.permute.xlu0 %6181  ;;  %5648 = vmatprep.subr.bf16.mxu0 %v5647_v43 }
 0x1a8   : > { %v6184_v57 = vunpack.i.h.bf16 %v6182_v53  ;;  %v6183_v60 = vunpack.i.l.bf16 %v6182_v53  ;;  %v879_v51 = vsel %vm688_vm1, %v6193_v46, %v6194_v44  ;;  %v878_v23 = vsel %vm688_vm1, %v6178_v10, %v6193_v46 }
 0x1a9   : > { %v6197_v1 = vpop.permute.xlu1 %6196  ;;  %v5655_v20 = vpack.c.bf16 %v881_v15, %v879_v51  ;;  %v5657_v40 = vpack.c.bf16 %v880_v35, %v878_v23 }
 0x1aa   : > { %v6199_v6 = vunpack.i.h.bf16 %v6197_v1  ;;  %v6198_v7 = vunpack.i.l.bf16 %v6197_v1  ;;  %5650 = vmatpush1.bf16.msra.mxu0 %v5649_v54  ;;  %v829_v9 = vsel %vm740_vm2, %v6183_v60, %v6184_v57  ;;  %v828_v62 = vsel %vm740_vm2, %v6168_v50, %v6183_v60 }
 0x1ab   : > { %v6187_v49 = vpop.permute.xlu0 %6186  ;;  %v5651_v11 = vpack.c.bf16 %v831_v2, %v829_v9  ;;  %v5653_v14 = vpack.c.bf16 %v830_v3, %v828_v62  ;;  %v540_v9 = vld [vmem:[#allocation5 + $0x18] sm:$0xff]  ;;  %v539_v62 = vld [vmem:[#allocation5 + $0x10] sm:$0xff] }
 0x1ac   : > { %v6189_v12 = vunpack.i.h.bf16 %v6187_v49  ;;  %v6188_v63 = vunpack.i.l.bf16 %v6187_v49  ;;  %v918_v32 = vsel %vm914_vm7, %v6198_v7, %v6199_v6 }
 0x1ad   : > { %v6212_v18 = vpop.permute.xlu1 %6211  ;;  %5652 = vmatprep.subr.bf16.mxu0 %v5651_v11 }
 0x1ae   : > { %5654 = vmatpush1.bf16.msra.mxu0 %v5653_v14  ;;  %v916_v30 = vsel %vm914_vm7, %v6188_v63, %v6189_v12  ;;  %v6214_v41 = vunpack.i.h.bf16 %v6212_v18  ;;  %v6213_v43 = vunpack.i.l.bf16 %v6212_v18 }
 0x1af   : > { %v6202_v33 = vpop.permute.xlu0 %6201  ;;  %5656 = vmatprep.subr.bf16.mxu0 %v5655_v20  ;;  %v5659_v29 = vpack.c.bf16 %v918_v32, %v916_v30 }
 0x1b0   : > { %v6204_v36 = vunpack.i.h.bf16 %v6202_v33  ;;  %v6203_v37 = vunpack.i.l.bf16 %v6202_v33  ;;  %v966_v56 = vsel %vm579_vm0, %v6213_v43, %v6214_v41 }
 0x1b1   : > { %v6217_v22 = vpop.permute.xlu1 %6216 }
 0x1b2   : > { %v6218_v44 = vunpack.i.l.bf16 %v6217_v22  ;;  %5658 = vmatpush1.bf16.msra.mxu0 %v5657_v40  ;;  %v915_v46 = vsel %vm914_vm7, %v6203_v37, %v6188_v63  ;;  %v917_v50 = vsel %vm914_vm7, %v6204_v36, %v6198_v7  ;;  %v6219_v55 = vunpack.i.h.bf16 %v6217_v22  ;;  %v537_v7 = vld [vmem:[#allocation5] sm:$0xff] }
 0x1b3   : > { %v6207_v53 = vpop.permute.xlu0 %6206  ;;  %5660 = vmatprep.subr.bf16.mxu0 %v5659_v29  ;;  %v5661_v54 = vpack.c.bf16 %v917_v50, %v915_v46 }
 0x1b4   : > { %v6209_v57 = vunpack.i.h.bf16 %v6207_v53  ;;  %v6208_v60 = vunpack.i.l.bf16 %v6207_v53  ;;  %v965_v2 = vsel %vm579_vm0, %v6218_v44, %v6213_v43 }
 0x1b6   : > { %5662 = vmatpush1.bf16.msra.mxu0 %v5661_v54  ;;  %v968_v1 = vsel %vm579_vm0, %v6208_v60, %v6209_v57  ;;  %v967_v3 = vsel %vm579_vm0, %v6219_v55, %v6208_v60 }
 0x1b7   : > { %v5663_v51 = vpack.c.bf16 %v968_v1, %v966_v56  ;;  %v5665_v6 = vpack.c.bf16 %v967_v3, %v965_v2 }
 0x1b9   : > { %5664 = vmatprep.subr.bf16.mxu0 %v5663_v51 }
 0x1ba   : > { %5666 = vmatpush1.bf16.msra.mxu0 %v5665_v6 }
 0x1bd   : > { %1094 = vmatmul.mubr.f32.vlgmr.msra.gmra.mrb[0].mxu0 %v537_v7 }
 0x1be   : > { %5593 = vmatprep.mubr.msk.f32.mxu0 %vm645_vm6, %v540_v9 }
 0x1c1   : > { %1100 = vmatmul.mubr.f32.gmra.mrb[2].mxu0 %v539_v62 }
 0x1c2   : > { %v1021_v63 = vpop.permute.xlu1 %1020 }
 0x1c4   : > { %v1016_v10 = vpop.permute.xlu0 %1015 }
 0x290   : > { %v1095_v49 = vpop.f32.mrb[0].mxu0 }
 0x291   : > { %v7887_v11 = vadd.f32 %v1095_v49, %v1016_v10  ;;  %v1097_v14 = vpop.f32.mrb[1].mxu0 }
 0x292   : > { %v7889_v12 = vadd.f32 %v1097_v14, %v1016_v10 }
 0x293   : > { %v1123_v15 = vmul.f32 %v7887_v11, %v7694_v26  ;;  %v1201_v35 = vmul.f32 %v7887_v11, %v7712_v42  ;;  %v1243_v29 = vmul.f32 %v7887_v11, %v7733_v52  ;;  %v1292_v51 = vmul.f32 %v7887_v11, %v7743_v58 }
 0x294   : > { %v1101_v16 = vpop.f32.mrb[2].mxu0  ;;  %v6236_v18 = vpack.i.bf16 %v7889_v12, %v7887_v11  ;;  %v1124_v20 = vmul.f32 %v7889_v12, %v7688_v25  ;;  %v1202_v36 = vmul.f32 %v7889_v12, %v7704_v38  ;;  %v1244_v43 = vmul.f32 %v7889_v12, %v7723_v48 }
 0x295   : > { %v7897_v23 = vadd.f32 %v1101_v16, %v1021_v63  ;;  %v1103_v30 = vpop.f32.mrb[3].mxu0  ;;  %v1293_v44 = vmul.f32 %v7889_v12, %v7756_v0  ;;  %v1335_v2 = vmul.f32 %v7889_v12, %v7783_v13  ;;  %v6306_v10 = vpack.i.bf16 %v7414_v17, %v7889_v12 }
 0x296   : > { %v7899_v32 = vadd.f32 %v1103_v30, %v1021_v63  ;;  %6237 = vrot.lane.b32.xlu1 %v6236_v18, %s7420_s17  ;;  %v6241_v33 = vpack.i.bf16 %v1124_v20, %v1123_v15  ;;  %v6246_v22 = vpack.i.bf16 %v1202_v36, %v1201_v35  ;;  %v6261_v46 = vpack.i.bf16 %v1244_v43, %v1243_v29  ;;  %v1107_v35 = vld [vmem:[#allocation7 + $0x8] sm:$0xff]  ;;  %v6223_v43 = vpop.permute.xlu0 %6222 }
 0x297   : > { %v1126_v37 = vmul.f32 %v7897_v23, %v7694_v26  ;;  %v1204_v53 = vmul.f32 %v7897_v23, %v7712_v42  ;;  %v6276_v57 = vpack.i.bf16 %v7773_v8, %v1293_v44  ;;  %v1246_v60 = vmul.f32 %v7897_v23, %v7733_v52  ;;  %5594 = vmatprep.mubr.msk.f32.mxu1 %vm645_vm6, %v1107_v35  ;;  %v1111_v29 = vld [vmem:[%s9331_s4 + $0x8] sm:$0xff]  ;;  %v6228_v44 = vpop.permute.xlu1 %6227 }
 0x298   : > { %6242 = vrot.lane.b32.xlu0 %v6241_v33, %s7419_s16  ;;  %v1127_v40 = vmul.f32 %v7899_v32, %v7688_v25  ;;  %v6251_v50 = vpack.i.bf16 %v7899_v32, %v7897_v23  ;;  %v1205_v54 = vmul.f32 %v7899_v32, %v7704_v38  ;;  %v1247_v56 = vmul.f32 %v7899_v32, %v7723_v48 }
 0x299   : > { %v1295_v3 = vmul.f32 %v7897_v23, %v7743_v58  ;;  %v6291_v6 = vpack.i.bf16 %v7792_v19, %v1335_v2  ;;  %v1296_v9 = vmul.f32 %v7899_v32, %v7756_v0  ;;  %v1337_v49 = vmul.f32 %v7897_v23, %v7765_v4 }
 0x29a   : > { %v6256_v41 = vpack.i.bf16 %v1127_v40, %v1126_v37  ;;  %v6266_v55 = vpack.i.bf16 %v1205_v54, %v1204_v53  ;;  %v6281_v1 = vpack.i.bf16 %v1247_v56, %v1246_v60  ;;  %v1338_v14 = vmul.f32 %v7899_v32, %v7783_v13 }
 0x29b   : > { %v6286_v7 = vpack.i.bf16 %v1295_v3, %v1292_v51  ;;  %v6296_v62 = vpack.i.bf16 %v7773_v8, %v1296_v9  ;;  %v1334_v63 = vmul.f32 %v7887_v11, %v7765_v4  ;;  %v6311_v18 = vpack.i.bf16 %v7414_v17, %v7899_v32 }
 0x29c   : > { %6257 = vrot.lane.b32.xlu1 %v6256_v41, %s7419_s16  ;;  %6247 = vrot.lane.b32.xlu0 %v6246_v22, %s7418_s21  ;;  %v6316_v16 = vpack.i.bf16 %v7792_v19, %v1338_v14  ;;  %v6321_v20 = vpack.i.bf16 %v7897_v23, %v7887_v11  ;;  %v1413_v30 = vmul.f32 %v7889_v12, %v7810_v31  ;;  %v1110_v41 = vld [vmem:[%s9331_s4] sm:$0xff]  ;;  %v6225_v56 = vunpack.i.h.bf16 %v6223_v43 }
 0x29d   : > { %v6301_v15 = vpack.i.bf16 %v1337_v49, %v1334_v63  ;;  %v1416_v33 = vmul.f32 %v7899_v32, %v7810_v31  ;;  %v1415_v37 = vmul.f32 %v7897_v23, %v7798_v27  ;;  %v1412_v40 = vmul.f32 %v7887_v11, %v7798_v27 }
 0x29e   : > { %v6326_v36 = vpack.i.bf16 %v7818_v34, %v1413_v30 }
 0x29f   : > { %v6331_v17 = vpack.i.bf16 %v7818_v34, %v1416_v33  ;;  %v6336_v22 = vpack.i.bf16 %v1415_v37, %v1412_v40 }
 0x2a0   : > { %6262 = vrot.lane.b32.xlu1 %v6261_v46, %s7417_s12  ;;  %6252 = vrot.lane.b32.xlu0 %v6251_v50, %s7420_s17  ;;  %v6233_v46 = vpop.permute.xlu0 %6232 }
 0x2a4   : > { %6267 = vrot.lane.b32.xlu1 %v6266_v55, %s7418_s21  ;;  %6277 = vrot.lane.b32.xlu0 %v6276_v57, %s7416_s25 }
 0x2a8   : > { %6272 = vrot.lane.b32.xlu1 %v7748_v61, %s7417_s12  ;;  %6282 = vrot.lane.b32.xlu0 %v6281_v1, %s7417_s12  ;;  %v6224_v1 = vunpack.i.l.bf16 %v6223_v43 }
 0x2ac   : > { %6292 = vrot.lane.b32.xlu1 %v6291_v6, %s7415_s27  ;;  %6287 = vrot.lane.b32.xlu0 %v6286_v7, %s7416_s25 }
 0x2b0   : > { %6297 = vrot.lane.b32.xlu1 %v6296_v62, %s7416_s25  ;;  %6307 = vrot.lane.b32.xlu0 %v6306_v10, %s7422_s14 }
 0x2b4   : > { %6302 = vrot.lane.b32.xlu1 %v6301_v15, %s7415_s27  ;;  %6317 = vrot.lane.b32.xlu0 %v6316_v16, %s7415_s27  ;;  %v6230_v16 = vunpack.i.h.bf16 %v6228_v44 }
 0x2b8   : > { %6312 = vrot.lane.b32.xlu1 %v6311_v18, %s7422_s14  ;;  %6322 = vrot.lane.b32.xlu0 %v6321_v20, %s7422_s14  ;;  %v6229_v18 = vunpack.i.l.bf16 %v6228_v44  ;;  %v6235_v44 = vunpack.i.h.bf16 %v6233_v46 }
 0x2bc   : > { %6327 = vrot.lane.b32.xlu1 %v6326_v36, %s7413_s30  ;;  %6332 = vrot.lane.b32.xlu0 %v6331_v17, %s7413_s30 }
 0x2c0   : > { %6337 = vrot.lane.b32.xlu1 %v6336_v22, %s7413_s30  ;;  %1486 = vperm.xlu0 %6099, %v1110_v41   ;;  %v6234_v41 = vunpack.i.l.bf16 %v6233_v46 }
 0x2c4   : > { %1491 = vperm.xlu1 %6220, %v1111_v29   ;;  %6342 = vrot.lane.b32.xlu0 %v7686_v24, %s7419_s16 }
 0x2c8   : > { %6352 = vrot.lane.b32.xlu0 %v7716_v45, %s7418_s21 }
 0x308   : > { %v6238_v50 = vpop.permute.xlu1 %6237 }
 0x309   : > { %v6240_v51 = vunpack.i.h.bf16 %v6238_v50  ;;  %v6239_v6 = vunpack.i.l.bf16 %v6238_v50 }
 0x30a   : > { %v6243_v53 = vpop.permute.xlu0 %6242 }
 0x30b   : > { %v6245_v54 = vunpack.i.h.bf16 %v6243_v53  ;;  %v6244_v55 = vunpack.i.l.bf16 %v6243_v53  ;;  %v1183_v36 = vsel %vm645_vm6, %v6239_v6, %v6240_v51  ;;  %v1182_v37 = vsel %vm645_vm6, %v6229_v18, %v6239_v6 }
 0x30d   : > { %v1147_v7 = vsel %vm608_vm5, %v6244_v55, %v6245_v54  ;;  %v1146_v62 = vsel %vm608_vm5, %v6224_v1, %v6244_v55 }
 0x30e   : > { %v6258_v57 = vpop.permute.xlu1 %6257  ;;  %v6248_v60 = vpop.permute.xlu0 %6247 }
 0x30f   : > { %v6260_v2 = vunpack.i.h.bf16 %v6258_v57  ;;  %v6259_v3 = vunpack.i.l.bf16 %v6258_v57  ;;  %v6250_v33 = vunpack.i.h.bf16 %v6248_v60  ;;  %v6249_v35 = vunpack.i.l.bf16 %v6248_v60 }
 0x311   : > { %v1149_v9 = vsel %vm608_vm5, %v6259_v3, %v6260_v2  ;;  %v1148_v10 = vsel %vm608_vm5, %v6225_v56, %v6259_v3  ;;  %v1225_v55 = vsel %vm717_vm4, %v6249_v35, %v6250_v33  ;;  %v1224_v57 = vsel %vm717_vm4, %v6234_v41, %v6249_v35 }
 0x312   : > { %v6263_v49 = vpop.permute.xlu1 %6262  ;;  %v6253_v14 = vpop.permute.xlu0 %6252  ;;  %v5667_v63 = vpack.c.bf16 %v1149_v9, %v1147_v7  ;;  %v5669_v15 = vpack.c.bf16 %v1148_v10, %v1146_v62  ;;  %v5683_v33 = vpack.c.bf16 %v7899_v32, %v7889_v12 }
 0x313   : > { %v6255_v20 = vunpack.i.h.bf16 %v6253_v14  ;;  %v6254_v30 = vunpack.i.l.bf16 %v6253_v14  ;;  %v6265_v60 = vunpack.i.h.bf16 %v6263_v49  ;;  %v6264_v56 = vunpack.i.l.bf16 %v6263_v49 }
 0x314   : > { %5668 = vmatprep.subr.bf16.mxu1 %v5667_v63 }
 0x315   : > { %5670 = vmatpush1.bf16.msra.mxu1 %v5669_v15  ;;  %v1185_v17 = vsel %vm645_vm6, %v6254_v30, %v6255_v20  ;;  %v1184_v40 = vsel %vm645_vm6, %v6230_v16, %v6254_v30  ;;  %v1267_v14 = vsel %vm769_vm3, %v6264_v56, %v6265_v60 }
 0x316   : > { %v6268_v22 = vpop.permute.xlu1 %6267  ;;  %v6278_v29 = vpop.permute.xlu0 %6277  ;;  %v5671_v43 = vpack.c.bf16 %v1185_v17, %v1183_v36  ;;  %v5673_v50 = vpack.c.bf16 %v1184_v40, %v1182_v37 }
 0x317   : > { %v6270_v53 = vunpack.i.h.bf16 %v6268_v22  ;;  %v6269_v54 = vunpack.i.l.bf16 %v6268_v22  ;;  %v6280_v35 = vunpack.i.h.bf16 %v6278_v29  ;;  %v6279_v36 = vunpack.i.l.bf16 %v6278_v29 }
 0x318   : > { %5672 = vmatprep.subr.bf16.mxu1 %v5671_v43 }
 0x319   : > { %5674 = vmatpush1.bf16.msra.mxu1 %v5673_v50  ;;  %v1227_v1 = vsel %vm717_vm4, %v6269_v54, %v6270_v53  ;;  %v1226_v2 = vsel %vm717_vm4, %v6235_v44, %v6269_v54  ;;  %v5685_v50 = vpack.c.bf16 %v7897_v23, %v7887_v11  ;;  %v1317_v54 = vsel %vm740_vm2, %v6279_v36, %v6280_v35 }
 0x31a   : > { %v6273_v3 = vpop.permute.xlu1 %6272  ;;  %v6283_v51 = vpop.permute.xlu0 %6282  ;;  %v5675_v6 = vpack.c.bf16 %v1227_v1, %v1225_v55  ;;  %v5677_v7 = vpack.c.bf16 %v1226_v2, %v1224_v57 }
 0x31b   : > { %v6275_v9 = vunpack.i.h.bf16 %v6273_v3  ;;  %v6274_v46 = vunpack.i.l.bf16 %v6273_v3  ;;  %v6285_v62 = vunpack.i.h.bf16 %v6283_v51  ;;  %v6284_v10 = vunpack.i.l.bf16 %v6283_v51 }
 0x31c   : > { %5676 = vmatprep.subr.bf16.mxu1 %v5675_v6 }
 0x31d   : > { %5678 = vmatpush1.bf16.msra.mxu1 %v5677_v7  ;;  %v1269_v63 = vsel %vm769_vm3, %v6284_v10, %v6285_v62  ;;  %v1266_v49 = vsel %vm769_vm3, %v6274_v46, %v6264_v56  ;;  %v1268_v15 = vsel %vm769_vm3, %v6275_v9, %v6284_v10 }
 0x31e   : > { %v6293_v16 = vpop.permute.xlu1 %6292  ;;  %v6288_v18 = vpop.permute.xlu0 %6287  ;;  %v5679_v20 = vpack.c.bf16 %v1269_v63, %v1267_v14  ;;  %v5681_v30 = vpack.c.bf16 %v1268_v15, %v1266_v49 }
 0x31f   : > { %v6289_v17 = vunpack.i.l.bf16 %v6288_v18  ;;  %v6290_v41 = vunpack.i.h.bf16 %v6288_v18  ;;  %v6295_v44 = vunpack.i.h.bf16 %v6293_v16  ;;  %v6294_v53 = vunpack.i.l.bf16 %v6293_v16 }
 0x320   : > { %5680 = vmatprep.subr.bf16.mxu1 %v5679_v20 }
 0x321   : > { %5682 = vmatpush1.bf16.msra.mxu1 %v5681_v30  ;;  %v1316_v29 = vsel %vm740_vm2, %v6289_v17, %v6279_v36  ;;  %v1359_v46 = vsel %vm688_vm1, %v6294_v53, %v6295_v44 }
 0x322   : > { %v6298_v37 = vpop.permute.xlu1 %6297  ;;  %v6308_v40 = vpop.permute.xlu0 %6307  ;;  %5684 = vmatprep.subr.bf16.mxu1 %v5683_v33 }
 0x323   : > { %v6300_v22 = vunpack.i.h.bf16 %v6298_v37  ;;  %v6299_v43 = vunpack.i.l.bf16 %v6298_v37  ;;  %v6310_v9 = vunpack.i.h.bf16 %v6308_v40  ;;  %v6309_v62 = vunpack.i.l.bf16 %v6308_v40 }
 0x325   : > { %5686 = vmatpush1.bf16.msra.mxu1 %v5685_v50  ;;  %v1319_v55 = vsel %vm740_vm2, %v6299_v43, %v6300_v22  ;;  %v1318_v57 = vsel %vm740_vm2, %v6290_v41, %v6299_v43  ;;  %v1395_v36 = vsel %vm914_vm7, %v6309_v62, %v6310_v9  ;;  %v1109_v9 = vld [vmem:[#allocation7 + $0x18] sm:$0xff] }
 0x326   : > { %v6303_v60 = vpop.permute.xlu1 %6302  ;;  %v6318_v56 = vpop.permute.xlu0 %6317  ;;  %v5687_v1 = vpack.c.bf16 %v1319_v55, %v1317_v54  ;;  %v5689_v2 = vpack.c.bf16 %v1318_v57, %v1316_v29 }
 0x327   : > { %v6305_v3 = vunpack.i.h.bf16 %v6303_v60  ;;  %v6304_v51 = vunpack.i.l.bf16 %v6303_v60  ;;  %v6320_v6 = vunpack.i.h.bf16 %v6318_v56  ;;  %v6319_v7 = vunpack.i.l.bf16 %v6318_v56 }
 0x328   : > { %5688 = vmatprep.subr.bf16.mxu1 %v5687_v1 }
 0x329   : > { %5690 = vmatpush1.bf16.msra.mxu1 %v5689_v2  ;;  %v1361_v10 = vsel %vm688_vm1, %v6319_v7, %v6320_v6  ;;  %v1358_v14 = vsel %vm688_vm1, %v6304_v51, %v6294_v53  ;;  %v1360_v63 = vsel %vm688_vm1, %v6305_v3, %v6319_v7  ;;  %v1106_v7 = vld [vmem:[#allocation7] sm:$0xff] }
 0x32a   : > { %v6313_v49 = vpop.permute.xlu1 %6312  ;;  %v6323_v15 = vpop.permute.xlu0 %6322  ;;  %v5691_v16 = vpack.c.bf16 %v1361_v10, %v1359_v46  ;;  %v5693_v18 = vpack.c.bf16 %v1360_v63, %v1358_v14  ;;  %v1108_v46 = vld [vmem:[#allocation7 + $0x10] sm:$0xff] }
 0x32b   : > { %v6315_v20 = vunpack.i.h.bf16 %v6313_v49  ;;  %v6314_v30 = vunpack.i.l.bf16 %v6313_v49  ;;  %v6325_v33 = vunpack.i.h.bf16 %v6323_v15  ;;  %v6324_v35 = vunpack.i.l.bf16 %v6323_v15 }
 0x32c   : > { %5692 = vmatprep.subr.bf16.mxu1 %v5691_v16 }
 0x32d   : > { %5694 = vmatpush1.bf16.msra.mxu1 %v5693_v18  ;;  %v1397_v17 = vsel %vm914_vm7, %v6314_v30, %v6315_v20  ;;  %v1394_v37 = vsel %vm914_vm7, %v6324_v35, %v6309_v62  ;;  %v1396_v40 = vsel %vm914_vm7, %v6325_v33, %v6314_v30  ;;  %v8029_v62 = vld [vmem:[#allocation2] sm:$0xff] }
 0x32e   : > { %v6328_v41 = vpop.permute.xlu1 %6327  ;;  %v6333_v22 = vpop.permute.xlu0 %6332  ;;  %v5695_v43 = vpack.c.bf16 %v1397_v17, %v1395_v36  ;;  %v5697_v50 = vpack.c.bf16 %v1396_v40, %v1394_v37  ;;  %v8033_v10 = vpack.i.bf16 %v8029_v62, %v8029_v62 }
 0x32f   : > { %v6330_v44 = vunpack.i.h.bf16 %v6328_v41  ;;  %v6329_v53 = vunpack.i.l.bf16 %v6328_v41  ;;  %v6335_v54 = vunpack.i.h.bf16 %v6333_v22  ;;  %v6334_v55 = vunpack.i.l.bf16 %v6333_v22 }
 0x330   : > { %5696 = vmatprep.subr.bf16.mxu1 %v5695_v43  ;;  %6347 = vrot.lane.b32.xlu1 %v8033_v10, %s7420_s17 }
 0x331   : > { %5698 = vmatpush1.bf16.msra.mxu1 %v5697_v50  ;;  %v1437_v29 = vsel %vm579_vm0, %v6329_v53, %v6330_v44  ;;  %v1439_v57 = vsel %vm579_vm0, %v6334_v55, %v6335_v54 }
 0x332   : > { %v6338_v60 = vpop.permute.xlu1 %6337  ;;  %v5699_v56 = vpack.c.bf16 %v1439_v57, %v1437_v29 }
 0x333   : > { %v6340_v1 = vunpack.i.h.bf16 %v6338_v60  ;;  %v6339_v2 = vunpack.i.l.bf16 %v6338_v60 }
 0x334   : > { %5700 = vmatprep.subr.bf16.mxu1 %v5699_v56 }
 0x335   : > { %v1436_v3 = vsel %vm579_vm0, %v6339_v2, %v6329_v53  ;;  %v1438_v51 = vsel %vm579_vm0, %v6340_v1, %v6334_v55 }
 0x336   : > { %v5701_v6 = vpack.c.bf16 %v1438_v51, %v1436_v3 }
 0x338   : > { %5702 = vmatpush1.bf16.msra.mxu1 %v5701_v6 }
 0x33b   : > { %1565 = vmatmul.mubr.f32.vlgmr.msra.gmra.mrb[0].mxu1 %v1106_v7 }
 0x33c   : > { %5595 = vmatprep.mubr.msk.f32.mxu1 %vm645_vm6, %v1109_v9 }
 0x33f   : > { %1571 = vmatmul.mubr.f32.gmra.mrb[2].mxu1 %v1108_v46  ;;  %v1487_v14 = vpop.permute.xlu0 %1486 }
 0x343   : > { %v1492_v20 = vpop.permute.xlu1 %1491 }
 0x40e   : > { %v1566_v63 = vpop.f32.mrb[0].mxu1 }
 0x40f   : > { %v1567_v49 = vadd.f32 %v1566_v63, %v1487_v14  ;;  %v1568_v15 = vpop.f32.mrb[1].mxu1 }
 0x410   : > { %v1569_v16 = vadd.f32 %v1568_v15, %v1487_v14 }
 0x411   : > { %v8037_v18 = vmax.f32 %v1567_v49, 0.0 }
 0x412   : > { %v8039_v30 = vmax.f32 %v1569_v16, 0.0  ;;  %v1572_v33 = vpop.f32.mrb[2].mxu1 }
 0x413   : > { %v1573_v35 = vadd.f32 %v1572_v33, %v1492_v20  ;;  %v1574_v36 = vpop.f32.mrb[3].mxu1  ;;  %v1600_v17 = vmul.f32 %v8037_v18, %v7694_v26  ;;  %v1678_v37 = vmul.f32 %v8037_v18, %v7712_v42  ;;  %v1720_v40 = vmul.f32 %v8037_v18, %v7733_v52 }
 0x414   : > { %v1575_v41 = vadd.f32 %v1574_v36, %v1492_v20  ;;  %v6356_v22 = vpack.i.bf16 %v8039_v30, %v8037_v18  ;;  %v1601_v43 = vmul.f32 %v8039_v30, %v7688_v25  ;;  %v1679_v50 = vmul.f32 %v8039_v30, %v7704_v38 }
 0x415   : > { %v8053_v44 = vmax.f32 %v1573_v35, 0.0  ;;  %v1721_v53 = vmul.f32 %v8039_v30, %v7723_v48  ;;  %v1769_v7 = vmul.f32 %v8037_v18, %v7743_v58  ;;  %v1811_v15 = vmul.f32 %v8037_v18, %v7765_v4 }
 0x416   : > { %v8057_v54 = vmax.f32 %v1575_v41, 0.0  ;;  %6357 = vrot.lane.b32.xlu1 %v6356_v22, %s7420_s17  ;;  %v6361_v55 = vpack.i.bf16 %v1601_v43, %v1600_v17  ;;  %v6366_v29 = vpack.i.bf16 %v1679_v50, %v1678_v37  ;;  %v1770_v33 = vmul.f32 %v8039_v30, %v7756_v0 }
 0x417   : > { %v1603_v57 = vmul.f32 %v8053_v44, %v7694_v26  ;;  %v6381_v60 = vpack.i.bf16 %v1721_v53, %v1720_v40  ;;  %v1681_v56 = vmul.f32 %v8053_v44, %v7712_v42  ;;  %v1723_v51 = vmul.f32 %v8053_v44, %v7733_v52 }
 0x418   : > { %6362 = vrot.lane.b32.xlu0 %v6361_v55, %s7419_s16  ;;  %v1604_v1 = vmul.f32 %v8057_v54, %v7688_v25  ;;  %v6371_v2 = vpack.i.bf16 %v8057_v54, %v8053_v44  ;;  %v1682_v3 = vmul.f32 %v8057_v54, %v7704_v38  ;;  %v1724_v6 = vmul.f32 %v8057_v54, %v7723_v48 }
 0x419   : > { %v1772_v9 = vmul.f32 %v8053_v44, %v7743_v58  ;;  %v1814_v16 = vmul.f32 %v8053_v44, %v7765_v4  ;;  %v6441_v20 = vpack.i.bf16 %v8053_v44, %v8037_v18  ;;  %v1889_v36 = vmul.f32 %v8037_v18, %v7798_v27 }
 0x41a   : > { %v6376_v46 = vpack.i.bf16 %v1604_v1, %v1603_v57  ;;  %v6386_v14 = vpack.i.bf16 %v1682_v3, %v1681_v56  ;;  %v6401_v63 = vpack.i.bf16 %v1724_v6, %v1723_v51  ;;  %v1892_v17 = vmul.f32 %v8053_v44, %v7798_v27  ;;  %v1583_v3 = vld [vmem:[#allocation7 + $0x28] sm:$0xff] }
 0x41b   : > { %v6406_v49 = vpack.i.bf16 %v1772_v9, %v1769_v7  ;;  %v6421_v35 = vpack.i.bf16 %v1814_v16, %v1811_v15  ;;  %v5719_v37 = vpack.c.bf16 %v8057_v54, %v8039_v30  ;;  %v5721_v40 = vpack.c.bf16 %v8053_v44, %v8037_v18  ;;  %5598 = vmatprep.mubr.msk.f32.mxu0 %vm645_vm6, %v1583_v3  ;;  %v5596_v7 = vld [vmem:[%s9331_s4 + $0x10] sm:$0xff]  ;;  %v6343_v15 = vpop.permute.xlu0 %6342  ;;  %v6348_v16 = vpop.permute.xlu1 %6347 }
 0x41c   : > { %6377 = vrot.lane.b32.xlu1 %v6376_v46, %s7419_s16  ;;  %6367 = vrot.lane.b32.xlu0 %v6366_v29, %s7418_s21  ;;  %v6456_v41 = vpack.i.bf16 %v1892_v17, %v1889_v36  ;;  %v6396_v22 = vpack.i.bf16 %v7773_v8, %v1770_v33  ;;  %v1812_v43 = vmul.f32 %v8039_v30, %v7783_v13  ;;  %v5597_v46 = vld [vmem:[%s9331_s4 + $0x18] sm:$0xff] }
 0x41d   : > { %v1773_v53 = vmul.f32 %v8057_v54, %v7756_v0  ;;  %v6426_v29 = vpack.i.bf16 %v8029_v62, %v8039_v30  ;;  %v1815_v57 = vmul.f32 %v8057_v54, %v7783_v13  ;;  %v6431_v56 = vpack.i.bf16 %v8029_v62, %v8057_v54 }
 0x41e   : > { %v6411_v50 = vpack.i.bf16 %v7792_v19, %v1812_v43  ;;  %v1890_v1 = vmul.f32 %v8039_v30, %v7810_v31  ;;  %v2080_v9 = vmul.f32 %v8029_v62, %v7680_v21  ;;  %v6345_v43 = vunpack.i.h.bf16 %v6343_v15 }
 0x41f   : > { %v6416_v55 = vpack.i.bf16 %v7773_v8, %v1773_v53 }
 0x420   : > { %6382 = vrot.lane.b32.xlu1 %v6381_v60, %s7417_s12  ;;  %6372 = vrot.lane.b32.xlu0 %v6371_v2, %s7420_s17  ;;  %v6436_v60 = vpack.i.bf16 %v7792_v19, %v1815_v57  ;;  %v1893_v2 = vmul.f32 %v8057_v54, %v7810_v31  ;;  %v6446_v51 = vpack.i.bf16 %v7818_v34, %v1890_v1 }
 0x422   : > { %v6451_v6 = vpack.i.bf16 %v7818_v34, %v1893_v2 }
 0x424   : > { %6387 = vrot.lane.b32.xlu1 %v6386_v14, %s7418_s21  ;;  %6397 = vrot.lane.b32.xlu0 %v6396_v22, %s7416_s25  ;;  %v8144_v14 = vpack.i.bf16 %v2080_v9, %v2080_v9  ;;  %v6350_v9 = vunpack.i.h.bf16 %v6348_v16 }
 0x428   : > { %6392 = vrot.lane.b32.xlu1 %v7748_v61, %s7417_s12  ;;  %6402 = vrot.lane.b32.xlu0 %v6401_v63, %s7417_s12  ;;  %v2158_v63 = vmul.f32 %v8029_v62, %v7706_v39 }
 0x42c   : > { %6412 = vrot.lane.b32.xlu1 %v6411_v50, %s7415_s27  ;;  %6407 = vrot.lane.b32.xlu0 %v6406_v49, %s7416_s25  ;;  %v8150_v49 = vpack.i.bf16 %v2158_v63, %v2158_v63  ;;  %v6344_v50 = vunpack.i.l.bf16 %v6343_v15 }
 0x430   : > { %6417 = vrot.lane.b32.xlu1 %v6416_v55, %s7416_s25  ;;  %6427 = vrot.lane.b32.xlu0 %v6426_v29, %s7422_s14 }
 0x434   : > { %6422 = vrot.lane.b32.xlu1 %v6421_v35, %s7415_s27  ;;  %6437 = vrot.lane.b32.xlu0 %v6436_v60, %s7415_s27 }
 0x438   : > { %6432 = vrot.lane.b32.xlu1 %v6431_v56, %s7422_s14  ;;  %6442 = vrot.lane.b32.xlu0 %v6441_v20, %s7422_s14  ;;  %v6353_v20 = vpop.permute.xlu0 %6352 }
 0x43c   : > { %6447 = vrot.lane.b32.xlu1 %v6446_v51, %s7413_s30  ;;  %6452 = vrot.lane.b32.xlu0 %v6451_v6, %s7413_s30 }
 0x440   : > { %6457 = vrot.lane.b32.xlu1 %v6456_v41, %s7413_s30  ;;  %1963 = vperm.xlu0 %6099, %v5596_v7  }
 0x444   : > { %1968 = vperm.xlu1 %6220, %v5597_v46   ;;  %6462 = vrot.lane.b32.xlu0 %v8144_v14, %s7419_s16  ;;  %v6349_v46 = vunpack.i.l.bf16 %v6348_v16  ;;  %v6355_v16 = vunpack.i.h.bf16 %v6353_v20 }
 0x448   : > { %6472 = vrot.lane.b32.xlu0 %v8150_v49, %s7418_s21  ;;  %6467 = vrot.lane.b32.xlu1 %v8033_v10, %s7420_s17 }
 0x488   : > { %v6358_v33 = vpop.permute.xlu1 %6357 }
 0x489   : > { %v6360_v29 = vunpack.i.h.bf16 %v6358_v33  ;;  %v6359_v57 = vunpack.i.l.bf16 %v6358_v33 }
 0x48a   : > { %v6363_v35 = vpop.permute.xlu0 %6362 }
 0x48b   : > { %v6365_v36 = vunpack.i.h.bf16 %v6363_v35  ;;  %v6364_v17 = vunpack.i.l.bf16 %v6363_v35  ;;  %v1659_v33 = vsel %vm645_vm6, %v6349_v46, %v6359_v57 }
 0x48d   : > { %v1623_v60 = vsel %vm608_vm5, %v6344_v50, %v6364_v17  ;;  %v1624_v1 = vsel %vm608_vm5, %v6364_v17, %v6365_v36  ;;  %v1660_v36 = vsel %vm645_vm6, %v6359_v57, %v6360_v29 }
 0x48e   : > { %v6378_v41 = vpop.permute.xlu1 %6377  ;;  %v6368_v22 = vpop.permute.xlu0 %6367 }
 0x48f   : > { %v6380_v53 = vunpack.i.h.bf16 %v6378_v41  ;;  %v6379_v55 = vunpack.i.l.bf16 %v6378_v41  ;;  %v6370_v35 = vunpack.i.h.bf16 %v6368_v22  ;;  %v6369_v41 = vunpack.i.l.bf16 %v6368_v22 }
 0x491   : > { %v1625_v56 = vsel %vm608_vm5, %v6345_v43, %v6379_v55  ;;  %v1626_v2 = vsel %vm608_vm5, %v6379_v55, %v6380_v53  ;;  %v6354_v43 = vunpack.i.l.bf16 %v6353_v20 }
 0x492   : > { %v6383_v3 = vpop.permute.xlu1 %6382  ;;  %v6373_v51 = vpop.permute.xlu0 %6372  ;;  %v5703_v6 = vpack.c.bf16 %v1626_v2, %v1624_v1  ;;  %v5705_v7 = vpack.c.bf16 %v1625_v56, %v1623_v60 }
 0x493   : > { %v6375_v63 = vunpack.i.h.bf16 %v6373_v51  ;;  %v6374_v15 = vunpack.i.l.bf16 %v6373_v51  ;;  %v1701_v22 = vsel %vm717_vm4, %v6354_v43, %v6369_v41  ;;  %v1702_v51 = vsel %vm717_vm4, %v6369_v41, %v6370_v35 }
 0x494   : > { %5704 = vmatprep.subr.bf16.mxu0 %v5703_v6  ;;  %v6385_v6 = vunpack.i.h.bf16 %v6383_v3 }
 0x495   : > { %v1661_v50 = vsel %vm645_vm6, %v6350_v9, %v6374_v15  ;;  %5706 = vmatpush1.bf16.msra.mxu0 %v5705_v7  ;;  %v1662_v17 = vsel %vm645_vm6, %v6374_v15, %v6375_v63  ;;  %v6384_v9 = vunpack.i.l.bf16 %v6383_v3 }
 0x496   : > { %v6388_v53 = vpop.permute.xlu1 %6387  ;;  %v6398_v55 = vpop.permute.xlu0 %6397  ;;  %v5707_v60 = vpack.c.bf16 %v1662_v17, %v1660_v36  ;;  %v5709_v56 = vpack.c.bf16 %v1661_v50, %v1659_v33 }
 0x497   : > { %v6390_v1 = vunpack.i.h.bf16 %v6388_v53  ;;  %v6389_v2 = vunpack.i.l.bf16 %v6388_v53  ;;  %v1744_v3 = vsel %vm769_vm3, %v6384_v9, %v6385_v6 }
 0x498   : > { %5708 = vmatprep.subr.bf16.mxu0 %v5707_v60 }
 0x499   : > { %v1703_v7 = vsel %vm717_vm4, %v6355_v16, %v6389_v2  ;;  %5710 = vmatpush1.bf16.msra.mxu0 %v5709_v56  ;;  %v1704_v29 = vsel %vm717_vm4, %v6389_v2, %v6390_v1  ;;  %v6400_v16 = vunpack.i.h.bf16 %v6398_v55  ;;  %v6399_v1 = vunpack.i.l.bf16 %v6398_v55 }
 0x49a   : > { %v6393_v57 = vpop.permute.xlu1 %6392  ;;  %v6403_v46 = vpop.permute.xlu0 %6402  ;;  %v5711_v63 = vpack.c.bf16 %v1704_v29, %v1702_v51  ;;  %v5713_v15 = vpack.c.bf16 %v1703_v7, %v1701_v22 }
 0x49b   : > { %v6395_v33 = vunpack.i.h.bf16 %v6393_v57  ;;  %v6394_v20 = vunpack.i.l.bf16 %v6393_v57  ;;  %v6405_v50 = vunpack.i.h.bf16 %v6403_v46  ;;  %v6404_v36 = vunpack.i.l.bf16 %v6403_v46 }
 0x49c   : > { %5712 = vmatprep.subr.bf16.mxu0 %v5711_v63  ;;  %v1794_v55 = vsel %vm740_vm2, %v6399_v1, %v6400_v16 }
 0x49d   : > { %v1743_v17 = vsel %vm769_vm3, %v6394_v20, %v6384_v9  ;;  %v1745_v35 = vsel %vm769_vm3, %v6395_v33, %v6404_v36  ;;  %5714 = vmatpush1.bf16.msra.mxu0 %v5713_v15  ;;  %v1746_v41 = vsel %vm769_vm3, %v6404_v36, %v6405_v50 }
 0x49e   : > { %v6413_v43 = vpop.permute.xlu1 %6412  ;;  %v6408_v53 = vpop.permute.xlu0 %6407  ;;  %v5715_v60 = vpack.c.bf16 %v1746_v41, %v1744_v3  ;;  %v5717_v56 = vpack.c.bf16 %v1745_v35, %v1743_v17 }
 0x49f   : > { %v6409_v2 = vunpack.i.l.bf16 %v6408_v53  ;;  %v6410_v7 = vunpack.i.h.bf16 %v6408_v53  ;;  %v6415_v9 = vunpack.i.h.bf16 %v6413_v43  ;;  %v6414_v57 = vunpack.i.l.bf16 %v6413_v43 }
 0x4a0   : > { %5716 = vmatprep.subr.bf16.mxu0 %v5715_v60 }
 0x4a1   : > { %5718 = vmatpush1.bf16.msra.mxu0 %v5717_v56  ;;  %v1793_v46 = vsel %vm740_vm2, %v6409_v2, %v6399_v1  ;;  %v1836_v3 = vsel %vm688_vm1, %v6414_v57, %v6415_v9 }
 0x4a2   : > { %v6418_v22 = vpop.permute.xlu1 %6417  ;;  %v6428_v51 = vpop.permute.xlu0 %6427  ;;  %5720 = vmatprep.subr.bf16.mxu0 %v5719_v37 }
 0x4a3   : > { %v6420_v29 = vunpack.i.h.bf16 %v6418_v22  ;;  %v6419_v6 = vunpack.i.l.bf16 %v6418_v22  ;;  %v6430_v35 = vunpack.i.h.bf16 %v6428_v51  ;;  %v6429_v41 = vunpack.i.l.bf16 %v6428_v51 }
 0x4a5   : > { %v1795_v63 = vsel %vm740_vm2, %v6410_v7, %v6419_v6  ;;  %5722 = vmatpush1.bf16.msra.mxu0 %v5721_v40  ;;  %v1796_v15 = vsel %vm740_vm2, %v6419_v6, %v6420_v29  ;;  %v1872_v29 = vsel %vm914_vm7, %v6429_v41, %v6430_v35 }
 0x4a6   : > { %v6423_v33 = vpop.permute.xlu1 %6422  ;;  %v6438_v30 = vpop.permute.xlu0 %6437  ;;  %v5723_v54 = vpack.c.bf16 %v1796_v15, %v1794_v55  ;;  %v5725_v37 = vpack.c.bf16 %v1795_v63, %v1793_v46 }
 0x4a7   : > { %v6425_v20 = vunpack.i.h.bf16 %v6423_v33  ;;  %v6424_v50 = vunpack.i.l.bf16 %v6423_v33  ;;  %v6440_v36 = vunpack.i.h.bf16 %v6438_v30  ;;  %v6439_v17 = vunpack.i.l.bf16 %v6438_v30 }
 0x4a8   : > { %5724 = vmatprep.subr.bf16.mxu0 %v5723_v54 }
 0x4a9   : > { %v1835_v18 = vsel %vm688_vm1, %v6424_v50, %v6414_v57  ;;  %v1837_v44 = vsel %vm688_vm1, %v6425_v20, %v6439_v17  ;;  %5726 = vmatpush1.bf16.msra.mxu0 %v5725_v37  ;;  %v1838_v40 = vsel %vm688_vm1, %v6439_v17, %v6440_v36 }
 0x4aa   : > { %v6433_v43 = vpop.permute.xlu1 %6432  ;;  %v6443_v53 = vpop.permute.xlu0 %6442  ;;  %v5727_v60 = vpack.c.bf16 %v1838_v40, %v1836_v3  ;;  %v5729_v56 = vpack.c.bf16 %v1837_v44, %v1835_v18  ;;  %v1582_v18 = vld [vmem:[#allocation7 + $0x20] sm:$0xff]  ;;  %v1585_v44 = vld [vmem:[#allocation7 + $0x38] sm:$0xff]  ;;  %v1584_v40 = vld [vmem:[#allocation7 + $0x30] sm:$0xff] }
 0x4ab   : > { %v6435_v16 = vunpack.i.h.bf16 %v6433_v43  ;;  %v6434_v1 = vunpack.i.l.bf16 %v6433_v43  ;;  %v6445_v2 = vunpack.i.h.bf16 %v6443_v53  ;;  %v6444_v22 = vunpack.i.l.bf16 %v6443_v53 }
 0x4ac   : > { %5728 = vmatprep.subr.bf16.mxu0 %v5727_v60 }
 0x4ad   : > { %v1873_v7 = vsel %vm914_vm7, %v6445_v2, %v6434_v1  ;;  %v1871_v51 = vsel %vm914_vm7, %v6444_v22, %v6429_v41  ;;  %5730 = vmatpush1.bf16.msra.mxu0 %v5729_v56  ;;  %v1874_v6 = vsel %vm914_vm7, %v6434_v1, %v6435_v16 }
 0x4ae   : > { %v6448_v9 = vpop.permute.xlu1 %6447  ;;  %v6453_v57 = vpop.permute.xlu0 %6452  ;;  %v5731_v46 = vpack.c.bf16 %v1874_v6, %v1872_v29  ;;  %v5733_v63 = vpack.c.bf16 %v1873_v7, %v1871_v51 }
 0x4af   : > { %v6450_v55 = vunpack.i.h.bf16 %v6448_v9  ;;  %v6449_v15 = vunpack.i.l.bf16 %v6448_v9  ;;  %v6455_v33 = vunpack.i.h.bf16 %v6453_v57  ;;  %v6454_v30 = vunpack.i.l.bf16 %v6453_v57 }
 0x4b0   : > { %5732 = vmatprep.subr.bf16.mxu0 %v5731_v46 }
 0x4b1   : > { %5734 = vmatpush1.bf16.msra.mxu0 %v5733_v63  ;;  %v1914_v54 = vsel %vm579_vm0, %v6449_v15, %v6450_v55  ;;  %v1916_v37 = vsel %vm579_vm0, %v6454_v30, %v6455_v33 }
 0x4b2   : > { %v6458_v20 = vpop.permute.xlu1 %6457  ;;  %v5735_v50 = vpack.c.bf16 %v1916_v37, %v1914_v54 }
 0x4b3   : > { %v6460_v36 = vunpack.i.h.bf16 %v6458_v20  ;;  %v6459_v17 = vunpack.i.l.bf16 %v6458_v20 }
 0x4b4   : > { %5736 = vmatprep.subr.bf16.mxu0 %v5735_v50 }
 0x4b5   : > { %v1913_v35 = vsel %vm579_vm0, %v6459_v17, %v6449_v15  ;;  %v1915_v3 = vsel %vm579_vm0, %v6460_v36, %v6454_v30 }
 0x4b6   : > { %v5737_v41 = vpack.c.bf16 %v1915_v3, %v1913_v35 }
 0x4b8   : > { %5738 = vmatpush1.bf16.msra.mxu0 %v5737_v41 }
 0x4bb   : > { %2042 = vmatmul.mubr.f32.vlgmr.msra.gmra.mrb[4].mxu0 %v1582_v18 }
 0x4bc   : > { %5599 = vmatprep.mubr.msk.f32.mxu0 %vm645_vm6, %v1585_v44 }
 0x4bf   : > { %2048 = vmatmul.mubr.f32.gmra.mrb[6].mxu0 %v1584_v40  ;;  %v1964_v43 = vpop.permute.xlu0 %1963 }
 0x4c3   : > { %v1969_v2 = vpop.permute.xlu1 %1968 }
 0x58e   : > { %v2043_v53 = vpop.f32.mrb[4].mxu0 }
 0x58f   : > { %v2044_v60 = vadd.f32 %v2043_v53, %v1964_v43  ;;  %v2045_v56 = vpop.f32.mrb[5].mxu0 }
 0x590   : > { %v2046_v16 = vadd.f32 %v2045_v56, %v1964_v43  ;;  %v8241_v56 = vmul.f32 %v8029_v62, %v7745_v59 }
 0x591   : > { %v2054_v1 = vmul.f32 0.1, %v2044_v60 }
 0x592   : > { %v2055_v22 = vmul.f32 0.1, %v2046_v16  ;;  %v2049_v7 = vpop.f32.mrb[6].mxu0  ;;  %v2200_v16 = vmul.f32 %v8029_v62, %v7721_v47 }
 0x593   : > { %v8196_v51 = vadd.f32 %v2054_v1, %v7887_v11  ;;  %v2050_v29 = vadd.f32 %v2049_v7, %v1969_v2  ;;  %v2051_v6 = vpop.f32.mrb[7].mxu0 }
 0x594   : > { %v8199_v9 = vadd.f32 %v2055_v22, %v7889_v12  ;;  %v2052_v57 = vadd.f32 %v2051_v6, %v1969_v2 }
 0x595   : > { %v2056_v46 = vmul.f32 0.1, %v2050_v29  ;;  %v2081_v63 = vmul.f32 %v8196_v51, %v7694_v26  ;;  %v2159_v20 = vmul.f32 %v8196_v51, %v7712_v42  ;;  %v2201_v41 = vmul.f32 %v8196_v51, %v7733_v52 }
 0x596   : > { %v2057_v55 = vmul.f32 0.1, %v2052_v57  ;;  %v6476_v15 = vpack.i.bf16 %v8199_v9, %v8196_v51  ;;  %v2082_v33 = vmul.f32 %v8199_v9, %v7688_v25  ;;  %v2160_v50 = vmul.f32 %v8199_v9, %v7704_v38 }
 0x597   : > { %v8208_v30 = vadd.f32 %v2056_v46, %v7897_v23  ;;  %v2202_v18 = vmul.f32 %v8199_v9, %v7723_v48  ;;  %v2251_v44 = vmul.f32 %v8199_v9, %v7756_v0  ;;  %v8252_v29 = vpack.i.bf16 %v2200_v16, %v2200_v16 }
 0x598   : > { %v8211_v54 = vadd.f32 %v2057_v55, %v7899_v32  ;;  %6477 = vrot.lane.b32.xlu1 %v6476_v15, %s7420_s17  ;;  %v6481_v37 = vpack.i.bf16 %v2082_v33, %v2081_v63  ;;  %v6486_v3 = vpack.i.bf16 %v2160_v50, %v2159_v20  ;;  %v2293_v57 = vmul.f32 %v8199_v9, %v7783_v13 }
 0x599   : > { %v2084_v36 = vmul.f32 %v8208_v30, %v7694_v26  ;;  %v6501_v40 = vpack.i.bf16 %v2202_v18, %v2201_v41  ;;  %v2162_v53 = vmul.f32 %v8208_v30, %v7712_v42  ;;  %v6516_v2 = vpack.i.bf16 %v8241_v56, %v2251_v44 }
 0x59a   : > { %6482 = vrot.lane.b32.xlu0 %v6481_v37, %s7419_s16  ;;  %v2085_v17 = vmul.f32 %v8211_v54, %v7688_v25  ;;  %v6491_v43 = vpack.i.bf16 %v8211_v54, %v8208_v30  ;;  %v2163_v60 = vmul.f32 %v8211_v54, %v7704_v38  ;;  %v2204_v22 = vmul.f32 %v8208_v30, %v7733_v52 }
 0x59b   : > { %v2205_v7 = vmul.f32 %v8211_v54, %v7723_v48  ;;  %v2253_v46 = vmul.f32 %v8208_v30, %v7743_v58  ;;  %v8263_v63 = vmul.f32 %v8029_v62, %v7767_v5  ;;  %v2250_v55 = vmul.f32 %v8196_v51, %v7743_v58 }
 0x59c   : > { %v6496_v35 = vpack.i.bf16 %v2085_v17, %v2084_v36  ;;  %v6506_v1 = vpack.i.bf16 %v2163_v60, %v2162_v53  ;;  %v2254_v37 = vmul.f32 %v8211_v54, %v7756_v0  ;;  %v6546_v50 = vpack.i.bf16 %v8029_v62, %v8199_v9  ;;  %v2064_v60 = vld [vmem:[#allocation7 + $0x48] sm:$0xff] }
 0x59d   : > { %v6521_v6 = vpack.i.bf16 %v2205_v7, %v2204_v22  ;;  %v6531_v15 = vpack.i.bf16 %v8263_v63, %v2293_v57  ;;  %v6526_v33 = vpack.i.bf16 %v2253_v46, %v2250_v55  ;;  %v2295_v36 = vmul.f32 %v8208_v30, %v7765_v4  ;;  %5602 = vmatprep.mubr.msk.f32.mxu1 %vm645_vm6, %v2064_v60  ;;  %v6463_v57 = vpop.permute.xlu0 %6462  ;;  %v6468_v46 = vpop.permute.xlu1 %6467 }
 0x59e   : > { %6497 = vrot.lane.b32.xlu1 %v6496_v35, %s7419_s16  ;;  %6487 = vrot.lane.b32.xlu0 %v6486_v3, %s7418_s21  ;;  %v6536_v20 = vpack.i.bf16 %v8241_v56, %v2254_v37  ;;  %v2296_v17 = vmul.f32 %v8211_v54, %v7783_v13  ;;  %v2292_v35 = vmul.f32 %v8196_v51, %v7765_v4 }
 0x59f   : > { %v6551_v18 = vpack.i.bf16 %v8029_v62, %v8211_v54  ;;  %v6561_v44 = vpack.i.bf16 %v8208_v30, %v8196_v51  ;;  %v8298_v53 = vmul.f32 %v8029_v62, %v7800_v28  ;;  %v2370_v22 = vmul.f32 %v8196_v51, %v7798_v27  ;;  %v5600_v62 = vld [vmem:[%s9331_s4 + $0x20] sm:$0xff] }
 0x5a0   : > { %v6541_v3 = vpack.i.bf16 %v2295_v36, %v2292_v35  ;;  %v6556_v41 = vpack.i.bf16 %v8263_v63, %v2296_v17  ;;  %v6465_v17 = vunpack.i.h.bf16 %v6463_v57  ;;  %v6464_v35 = vunpack.i.l.bf16 %v6463_v57 }
 0x5a1   : > { %v6473_v55 = vpop.permute.xlu0 %6472 }
 0x5a2   : > { %6502 = vrot.lane.b32.xlu1 %v6501_v40, %s7417_s12  ;;  %6492 = vrot.lane.b32.xlu0 %v6491_v43, %s7420_s17  ;;  %v2371_v40 = vmul.f32 %v8199_v9, %v7810_v31  ;;  %v2374_v43 = vmul.f32 %v8211_v54, %v7810_v31 }
 0x5a4   : > { %v6566_v16 = vpack.i.bf16 %v8298_v53, %v2371_v40 }
 0x5a6   : > { %6507 = vrot.lane.b32.xlu1 %v6506_v1, %s7418_s21  ;;  %6517 = vrot.lane.b32.xlu0 %v6516_v2, %s7416_s25  ;;  %v6571_v1 = vpack.i.bf16 %v8298_v53, %v2374_v43  ;;  %v2373_v2 = vmul.f32 %v8208_v30, %v7798_v27 }
 0x5a8   : > { %v6576_v7 = vpack.i.bf16 %v2373_v2, %v2370_v22  ;;  %v6470_v22 = vunpack.i.h.bf16 %v6468_v46 }
 0x5aa   : > { %6512 = vrot.lane.b32.xlu1 %v8252_v29, %s7417_s12  ;;  %6522 = vrot.lane.b32.xlu0 %v6521_v6, %s7417_s12  ;;  %v5601_v6 = vld [vmem:[%s9331_s4 + $0x28] sm:$0xff] }
 0x5ae   : > { %6532 = vrot.lane.b32.xlu1 %v6531_v15, %s7415_s27  ;;  %6527 = vrot.lane.b32.xlu0 %v6526_v33, %s7416_s25 }
 0x5b2   : > { %6537 = vrot.lane.b32.xlu1 %v6536_v20, %s7416_s25  ;;  %6547 = vrot.lane.b32.xlu0 %v6546_v50, %s7422_s14 }
 0x5b6   : > { %6542 = vrot.lane.b32.xlu1 %v6541_v3, %s7415_s27  ;;  %6557 = vrot.lane.b32.xlu0 %v6556_v41, %s7415_s27 }
 0x5ba   : > { %6552 = vrot.lane.b32.xlu1 %v6551_v18, %s7422_s14  ;;  %6562 = vrot.lane.b32.xlu0 %v6561_v44, %s7422_s14 }
 0x5be   : > { %6567 = vrot.lane.b32.xlu1 %v6566_v16, %s7413_s30  ;;  %6572 = vrot.lane.b32.xlu0 %v6571_v1, %s7413_s30 }
 0x5c2   : > { %6577 = vrot.lane.b32.xlu1 %v6576_v7, %s7413_s30  ;;  %2444 = vperm.xlu0 %6099, %v5600_v62   ;;  %v6469_v62 = vunpack.i.l.bf16 %v6468_v46  ;;  %v6475_v46 = vunpack.i.h.bf16 %v6473_v55 }
 0x5c6   : > { %2449 = vperm.xlu1 %6220, %v5601_v6   ;;  %6582 = vrot.lane.b32.xlu0 %v8144_v14, %s7419_s16 }
 0x5ca   : > { %6592 = vrot.lane.b32.xlu0 %v8150_v49, %s7418_s21  ;;  %6587 = vrot.lane.b32.xlu1 %v8033_v10, %s7420_s17 }
 0x60a   : > { %v6478_v15 = vpop.permute.xlu1 %6477 }
 0x60b   : > { %v6480_v18 = vunpack.i.h.bf16 %v6478_v15  ;;  %v6479_v44 = vunpack.i.l.bf16 %v6478_v15 }
 0x60c   : > { %v6483_v33 = vpop.permute.xlu0 %6482 }
 0x60d   : > { %v6485_v37 = vunpack.i.h.bf16 %v6483_v33  ;;  %v6484_v20 = vunpack.i.l.bf16 %v6483_v33  ;;  %v2140_v15 = vsel %vm645_vm6, %v6469_v62, %v6479_v44 }
 0x60f   : > { %v2104_v14 = vsel %vm608_vm5, %v6464_v35, %v6484_v20  ;;  %v2105_v49 = vsel %vm608_vm5, %v6484_v20, %v6485_v37  ;;  %v2141_v37 = vsel %vm645_vm6, %v6479_v44, %v6480_v18 }
 0x610   : > { %v6498_v50 = vpop.permute.xlu1 %6497  ;;  %v6488_v36 = vpop.permute.xlu0 %6487 }
 0x611   : > { %v6500_v3 = vunpack.i.h.bf16 %v6498_v50  ;;  %v6499_v41 = vunpack.i.l.bf16 %v6498_v50  ;;  %v6490_v57 = vunpack.i.h.bf16 %v6488_v36  ;;  %v6489_v33 = vunpack.i.l.bf16 %v6488_v36 }
 0x613   : > { %v2106_v40 = vsel %vm608_vm5, %v6465_v17, %v6499_v41  ;;  %v2107_v43 = vsel %vm608_vm5, %v6499_v41, %v6500_v3  ;;  %v6474_v17 = vunpack.i.l.bf16 %v6473_v55 }
 0x614   : > { %v6503_v60 = vpop.permute.xlu1 %6502  ;;  %v6493_v16 = vpop.permute.xlu0 %6492  ;;  %v5739_v1 = vpack.c.bf16 %v2107_v43, %v2105_v49  ;;  %v5741_v2 = vpack.c.bf16 %v2106_v40, %v2104_v14  ;;  %v2183_v43 = vsel %vm717_vm4, %v6489_v33, %v6490_v57 }
 0x615   : > { %v6495_v7 = vunpack.i.h.bf16 %v6493_v16  ;;  %v6494_v6 = vunpack.i.l.bf16 %v6493_v16  ;;  %v2182_v36 = vsel %vm717_vm4, %v6474_v17, %v6489_v33  ;;  %v6505_v16 = vunpack.i.h.bf16 %v6503_v60 }
 0x616   : > { %5740 = vmatprep.subr.bf16.mxu1 %v5739_v1  ;;  %v6504_v1 = vunpack.i.l.bf16 %v6503_v60 }
 0x617   : > { %v2142_v50 = vsel %vm645_vm6, %v6470_v22, %v6494_v6  ;;  %5742 = vmatpush1.bf16.msra.mxu1 %v5741_v2  ;;  %v2143_v20 = vsel %vm645_vm6, %v6494_v6, %v6495_v7 }
 0x618   : > { %v6508_v35 = vpop.permute.xlu1 %6507  ;;  %v6518_v3 = vpop.permute.xlu0 %6517  ;;  %v5743_v41 = vpack.c.bf16 %v2143_v20, %v2141_v37  ;;  %v5745_v14 = vpack.c.bf16 %v2142_v50, %v2140_v15  ;;  %v2225_v60 = vsel %vm769_vm3, %v6504_v1, %v6505_v16 }
 0x619   : > { %v6510_v40 = vunpack.i.h.bf16 %v6508_v35  ;;  %v6509_v49 = vunpack.i.l.bf16 %v6508_v35 }
 0x61a   : > { %5744 = vmatprep.subr.bf16.mxu1 %v5743_v41 }
 0x61b   : > { %v2184_v2 = vsel %vm717_vm4, %v6475_v46, %v6509_v49  ;;  %5746 = vmatpush1.bf16.msra.mxu1 %v5745_v14  ;;  %v2185_v18 = vsel %vm717_vm4, %v6509_v49, %v6510_v40  ;;  %v5755_v14 = vpack.c.bf16 %v8211_v54, %v8199_v9  ;;  %v6520_v46 = vunpack.i.h.bf16 %v6518_v3 }
 0x61c   : > { %v6513_v44 = vpop.permute.xlu1 %6512  ;;  %v6523_v22 = vpop.permute.xlu0 %6522  ;;  %v5747_v62 = vpack.c.bf16 %v2185_v18, %v2183_v43  ;;  %v5749_v7 = vpack.c.bf16 %v2184_v2, %v2182_v36  ;;  %v6519_v40 = vunpack.i.l.bf16 %v6518_v3 }
 0x61d   : > { %v6515_v6 = vunpack.i.h.bf16 %v6513_v44  ;;  %v6514_v55 = vunpack.i.l.bf16 %v6513_v44  ;;  %v6525_v15 = vunpack.i.h.bf16 %v6523_v22  ;;  %v6524_v50 = vunpack.i.l.bf16 %v6523_v22 }
 0x61e   : > { %5748 = vmatprep.subr.bf16.mxu1 %v5747_v62  ;;  %v2275_v3 = vsel %vm740_vm2, %v6519_v40, %v6520_v46 }
 0x61f   : > { %v2224_v37 = vsel %vm769_vm3, %v6514_v55, %v6504_v1  ;;  %v2226_v57 = vsel %vm769_vm3, %v6515_v6, %v6524_v50  ;;  %5750 = vmatpush1.bf16.msra.mxu1 %v5749_v7  ;;  %v2227_v33 = vsel %vm769_vm3, %v6524_v50, %v6525_v15  ;;  %v5757_v1 = vpack.c.bf16 %v8208_v30, %v8196_v51 }
 0x620   : > { %v6533_v20 = vpop.permute.xlu1 %6532  ;;  %v6528_v17 = vpop.permute.xlu0 %6527  ;;  %v5751_v35 = vpack.c.bf16 %v2227_v33, %v2225_v60  ;;  %v5753_v41 = vpack.c.bf16 %v2226_v57, %v2224_v37 }
 0x621   : > { %v6529_v49 = vunpack.i.l.bf16 %v6528_v17  ;;  %v6530_v2 = vunpack.i.h.bf16 %v6528_v17  ;;  %v6535_v44 = vunpack.i.h.bf16 %v6533_v20  ;;  %v6534_v22 = vunpack.i.l.bf16 %v6533_v20 }
 0x622   : > { %5752 = vmatprep.subr.bf16.mxu1 %v5751_v35 }
 0x623   : > { %5754 = vmatpush1.bf16.msra.mxu1 %v5753_v41  ;;  %v2274_v62 = vsel %vm740_vm2, %v6529_v49, %v6519_v40  ;;  %v2317_v20 = vsel %vm688_vm1, %v6534_v22, %v6535_v44 }
 0x624   : > { %v6538_v36 = vpop.permute.xlu1 %6537  ;;  %v6548_v43 = vpop.permute.xlu0 %6547  ;;  %5756 = vmatprep.subr.bf16.mxu1 %v5755_v14 }
 0x625   : > { %v6540_v18 = vunpack.i.h.bf16 %v6538_v36  ;;  %v6539_v16 = vunpack.i.l.bf16 %v6538_v36  ;;  %v6550_v35 = vunpack.i.h.bf16 %v6548_v43  ;;  %v6549_v41 = vunpack.i.l.bf16 %v6548_v43 }
 0x627   : > { %v2276_v7 = vsel %vm740_vm2, %v6530_v2, %v6539_v16  ;;  %5758 = vmatpush1.bf16.msra.mxu1 %v5757_v1  ;;  %v2277_v6 = vsel %vm740_vm2, %v6539_v16, %v6540_v18  ;;  %v2353_v44 = vsel %vm914_vm7, %v6549_v41, %v6550_v35 }
 0x628   : > { %v6543_v55 = vpop.permute.xlu1 %6542  ;;  %v6558_v15 = vpop.permute.xlu0 %6557  ;;  %v5759_v50 = vpack.c.bf16 %v2277_v6, %v2275_v3  ;;  %v5761_v37 = vpack.c.bf16 %v2276_v7, %v2274_v62 }
 0x629   : > { %v6545_v57 = vunpack.i.h.bf16 %v6543_v55  ;;  %v6544_v60 = vunpack.i.l.bf16 %v6543_v55  ;;  %v6560_v33 = vunpack.i.h.bf16 %v6558_v15  ;;  %v6559_v17 = vunpack.i.l.bf16 %v6558_v15 }
 0x62a   : > { %5760 = vmatprep.subr.bf16.mxu1 %v5759_v50 }
 0x62b   : > { %v2316_v14 = vsel %vm688_vm1, %v6544_v60, %v6534_v22  ;;  %v2318_v49 = vsel %vm688_vm1, %v6545_v57, %v6559_v17  ;;  %5762 = vmatpush1.bf16.msra.mxu1 %v5761_v37  ;;  %v2319_v46 = vsel %vm688_vm1, %v6559_v17, %v6560_v33 }
 0x62c   : > { %v6553_v40 = vpop.permute.xlu1 %6552  ;;  %v6563_v36 = vpop.permute.xlu0 %6562  ;;  %v5763_v2 = vpack.c.bf16 %v2319_v46, %v2317_v20  ;;  %v5765_v18 = vpack.c.bf16 %v2318_v49, %v2316_v14 }
 0x62d   : > { %v6555_v16 = vunpack.i.h.bf16 %v6553_v40  ;;  %v6554_v1 = vunpack.i.l.bf16 %v6553_v40  ;;  %v6565_v62 = vunpack.i.h.bf16 %v6563_v36  ;;  %v6564_v7 = vunpack.i.l.bf16 %v6563_v36 }
 0x62e   : > { %5764 = vmatprep.subr.bf16.mxu1 %v5763_v2  ;;  %v2063_v2 = vld [vmem:[#allocation7 + $0x40] sm:$0xff] }
 0x62f   : > { %v2354_v3 = vsel %vm914_vm7, %v6565_v62, %v6554_v1  ;;  %v2352_v43 = vsel %vm914_vm7, %v6564_v7, %v6549_v41  ;;  %5766 = vmatpush1.bf16.msra.mxu1 %v5765_v18  ;;  %v2355_v22 = vsel %vm914_vm7, %v6554_v1, %v6555_v16  ;;  %v2066_v18 = vld [vmem:[#allocation7 + $0x58] sm:$0xff]  ;;  %v2065_v16 = vld [vmem:[#allocation7 + $0x50] sm:$0xff] }
 0x630   : > { %v6568_v6 = vpop.permute.xlu1 %6567  ;;  %v6573_v55 = vpop.permute.xlu0 %6572  ;;  %v5767_v15 = vpack.c.bf16 %v2355_v22, %v2353_v44  ;;  %v5769_v50 = vpack.c.bf16 %v2354_v3, %v2352_v43 }
 0x631   : > { %v6570_v37 = vunpack.i.h.bf16 %v6568_v6  ;;  %v6569_v57 = vunpack.i.l.bf16 %v6568_v6  ;;  %v6575_v60 = vunpack.i.h.bf16 %v6573_v55  ;;  %v6574_v33 = vunpack.i.l.bf16 %v6573_v55 }
 0x632   : > { %5768 = vmatprep.subr.bf16.mxu1 %v5767_v15 }
 0x633   : > { %5770 = vmatpush1.bf16.msra.mxu1 %v5769_v50  ;;  %v2395_v17 = vsel %vm579_vm0, %v6569_v57, %v6570_v37  ;;  %v2397_v20 = vsel %vm579_vm0, %v6574_v33, %v6575_v60 }
 0x634   : > { %v6578_v14 = vpop.permute.xlu1 %6577  ;;  %v5771_v49 = vpack.c.bf16 %v2397_v20, %v2395_v17 }
 0x635   : > { %v6580_v46 = vunpack.i.h.bf16 %v6578_v14  ;;  %v6579_v35 = vunpack.i.l.bf16 %v6578_v14 }
 0x636   : > { %5772 = vmatprep.subr.bf16.mxu1 %v5771_v49 }
 0x637   : > { %v2394_v41 = vsel %vm579_vm0, %v6579_v35, %v6569_v57  ;;  %v2396_v40 = vsel %vm579_vm0, %v6580_v46, %v6574_v33 }
 0x638   : > { %v5773_v36 = vpack.c.bf16 %v2396_v40, %v2394_v41 }
 0x63a   : > { %5774 = vmatpush1.bf16.msra.mxu1 %v5773_v36 }
 0x63d   : > { %2523 = vmatmul.mubr.f32.vlgmr.msra.gmra.mrb[4].mxu1 %v2063_v2 }
 0x63e   : > { %5603 = vmatprep.mubr.msk.f32.mxu1 %vm645_vm6, %v2066_v18 }
 0x641   : > { %2529 = vmatmul.mubr.f32.gmra.mrb[6].mxu1 %v2065_v16  ;;  %v2445_v1 = vpop.permute.xlu0 %2444 }
 0x645   : > { %v2450_v22 = vpop.permute.xlu1 %2449 }
 0x710   : > { %v2524_v62 = vpop.f32.mrb[4].mxu1 }
 0x711   : > { %v2525_v7 = vadd.f32 %v2524_v62, %v2445_v1  ;;  %v2526_v3 = vpop.f32.mrb[5].mxu1 }
 0x712   : > { %v2527_v43 = vadd.f32 %v2526_v3, %v2445_v1 }
 0x713   : > { %v8359_v44 = vmax.f32 %v2525_v7, 0.0 }
 0x714   : > { %v8361_v6 = vmax.f32 %v2527_v43, 0.0  ;;  %v2530_v55 = vpop.f32.mrb[6].mxu1 }
 0x715   : > { %v2531_v15 = vadd.f32 %v2530_v55, %v2450_v22  ;;  %v2532_v50 = vpop.f32.mrb[7].mxu1  ;;  %v2558_v37 = vmul.f32 %v8359_v44, %v7694_v26  ;;  %v2636_v57 = vmul.f32 %v8359_v44, %v7712_v42  ;;  %v2678_v60 = vmul.f32 %v8359_v44, %v7733_v52 }
 0x716   : > { %v2533_v33 = vadd.f32 %v2532_v50, %v2450_v22  ;;  %v6596_v17 = vpack.i.bf16 %v8361_v6, %v8359_v44  ;;  %v2559_v20 = vmul.f32 %v8361_v6, %v7688_v25  ;;  %v2637_v14 = vmul.f32 %v8361_v6, %v7704_v38 }
 0x717   : > { %v8375_v49 = vmax.f32 %v2531_v15, 0.0  ;;  %v2679_v46 = vmul.f32 %v8361_v6, %v7723_v48  ;;  %v2727_v43 = vmul.f32 %v8359_v44, %v7743_v58 }
 0x718   : > { %v8379_v35 = vmax.f32 %v2533_v33, 0.0  ;;  %6597 = vrot.lane.b32.xlu1 %v6596_v17, %s7420_s17  ;;  %v6601_v41 = vpack.i.bf16 %v2559_v20, %v2558_v37  ;;  %v6606_v40 = vpack.i.bf16 %v2637_v14, %v2636_v57  ;;  %v2769_v57 = vmul.f32 %v8359_v44, %v7765_v4 }
 0x719   : > { %v2561_v36 = vmul.f32 %v8375_v49, %v7694_v26  ;;  %v6621_v2 = vpack.i.bf16 %v2679_v46, %v2678_v60  ;;  %v2639_v18 = vmul.f32 %v8375_v49, %v7712_v42  ;;  %v2681_v7 = vmul.f32 %v8375_v49, %v7733_v52 }
 0x71a   : > { %6602 = vrot.lane.b32.xlu0 %v6601_v41, %s7419_s16  ;;  %v2562_v16 = vmul.f32 %v8379_v35, %v7688_v25  ;;  %v6611_v1 = vpack.i.bf16 %v8379_v35, %v8375_v49  ;;  %v2640_v62 = vmul.f32 %v8379_v35, %v7704_v38  ;;  %v2682_v3 = vmul.f32 %v8379_v35, %v7723_v48 }
 0x71b   : > { %v2730_v22 = vmul.f32 %v8375_v49, %v7743_v58  ;;  %v2772_v60 = vmul.f32 %v8375_v49, %v7765_v4  ;;  %v6681_v33 = vpack.i.bf16 %v8375_v49, %v8359_v44  ;;  %v2728_v17 = vmul.f32 %v8361_v6, %v7756_v0 }
 0x71c   : > { %v6616_v55 = vpack.i.bf16 %v2562_v16, %v2561_v36  ;;  %v6626_v15 = vpack.i.bf16 %v2640_v62, %v2639_v18  ;;  %v6641_v50 = vpack.i.bf16 %v2682_v3, %v2681_v7  ;;  %v2847_v14 = vmul.f32 %v8359_v44, %v7798_v27  ;;  %v8435_v7 = vld [vmem:[#allocation2] sm:$0xff] }
 0x71d   : > { %v6646_v37 = vpack.i.bf16 %v2730_v22, %v2727_v43  ;;  %v6661_v20 = vpack.i.bf16 %v2772_v60, %v2769_v57  ;;  %v2850_v46 = vmul.f32 %v8375_v49, %v7798_v27  ;;  %v5791_v41 = vpack.c.bf16 %v8379_v35, %v8361_v6  ;;  %v5605_v60 = vld [vmem:[%s9331_s4 + $0x38] sm:$0xff] }
 0x71e   : > { %6617 = vrot.lane.b32.xlu1 %v6616_v55, %s7419_s16  ;;  %6607 = vrot.lane.b32.xlu0 %v6606_v40, %s7418_s21  ;;  %v6636_v18 = vpack.i.bf16 %v8241_v56, %v2728_v17  ;;  %v2770_v16 = vmul.f32 %v8361_v6, %v7783_v13  ;;  %v6666_v3 = vpack.i.bf16 %v8435_v7, %v8361_v6 }
 0x71f   : > { %v6696_v40 = vpack.i.bf16 %v2850_v46, %v2847_v14  ;;  %v2848_v22 = vmul.f32 %v8361_v6, %v7810_v31  ;;  %v2851_v55 = vmul.f32 %v8379_v35, %v7810_v31  ;;  %v3038_v57 = vmul.f32 %v8435_v7, %v7680_v21  ;;  %v6583_v21 = vpop.permute.xlu0 %6582 }
 0x720   : > { %v6651_v62 = vpack.i.bf16 %v8263_v63, %v2770_v16 }
 0x722   : > { %6622 = vrot.lane.b32.xlu1 %v6621_v2, %s7417_s12  ;;  %6612 = vrot.lane.b32.xlu0 %v6611_v1, %s7420_s17  ;;  %v2731_v2 = vmul.f32 %v8379_v35, %v7756_v0 }
 0x723   : > { %v6593_v14 = vpop.permute.xlu0 %6592 }
 0x724   : > { %v6656_v1 = vpack.i.bf16 %v8241_v56, %v2731_v2  ;;  %v6671_v56 = vpack.i.bf16 %v8435_v7, %v8379_v35  ;;  %v6585_v2 = vunpack.i.h.bf16 %v6583_v21 }
 0x726   : > { %6627 = vrot.lane.b32.xlu1 %v6626_v15, %s7418_s21  ;;  %6637 = vrot.lane.b32.xlu0 %v6636_v18, %s7416_s25  ;;  %v2541_v15 = vld [vmem:[#allocation7 + $0x68] sm:$0xff] }
 0x727   : > { %5606 = vmatprep.mubr.msk.f32.mxu0 %vm645_vm6, %v2541_v15 }
 0x72a   : > { %6632 = vrot.lane.b32.xlu1 %v8252_v29, %s7417_s12  ;;  %6642 = vrot.lane.b32.xlu0 %v6641_v50, %s7417_s12  ;;  %v2773_v29 = vmul.f32 %v8379_v35, %v7783_v13  ;;  %v6691_v50 = vpack.i.bf16 %v8298_v53, %v2851_v55 }
 0x72c   : > { %v6676_v43 = vpack.i.bf16 %v8263_v63, %v2773_v29  ;;  %v6686_v63 = vpack.i.bf16 %v8298_v53, %v2848_v22  ;;  %v3116_v53 = vmul.f32 %v8435_v7, %v7706_v39 }
 0x72e   : > { %6652 = vrot.lane.b32.xlu1 %v6651_v62, %s7415_s27  ;;  %6647 = vrot.lane.b32.xlu0 %v6646_v37, %s7416_s25  ;;  %v5604_v37 = vld [vmem:[%s9331_s4 + $0x30] sm:$0xff]  ;;  %v8474_v17 = vpack.i.bf16 %v3116_v53, %v3116_v53 }
 0x732   : > { %6657 = vrot.lane.b32.xlu1 %v6656_v1, %s7416_s25  ;;  %6667 = vrot.lane.b32.xlu0 %v6666_v3, %s7422_s14  ;;  %v6584_v1 = vunpack.i.l.bf16 %v6583_v21 }
 0x736   : > { %6662 = vrot.lane.b32.xlu1 %v6661_v20, %s7415_s27  ;;  %6677 = vrot.lane.b32.xlu0 %v6676_v43, %s7415_s27  ;;  %v6588_v20 = vpop.permute.xlu1 %6587 }
 0x737   : > { %v6589_v53 = vunpack.i.l.bf16 %v6588_v20 }
 0x73a   : > { %6672 = vrot.lane.b32.xlu1 %v6671_v56, %s7422_s14  ;;  %6682 = vrot.lane.b32.xlu0 %v6681_v33, %s7422_s14  ;;  %v8468_v33 = vpack.i.bf16 %v3038_v57, %v3038_v57 }
 0x73e   : > { %6687 = vrot.lane.b32.xlu1 %v6686_v63, %s7413_s30  ;;  %6692 = vrot.lane.b32.xlu0 %v6691_v50, %s7413_s30 }
 0x742   : > { %6697 = vrot.lane.b32.xlu1 %v6696_v40, %s7413_s30  ;;  %2921 = vperm.xlu0 %6099, %v5604_v37  }
 0x746   : > { %2926 = vperm.xlu1 %6220, %v5605_v60   ;;  %6702 = vrot.lane.b32.xlu0 %v8468_v33, %s7419_s16  ;;  %v6590_v60 = vunpack.i.h.bf16 %v6588_v20  ;;  %v6595_v20 = vunpack.i.h.bf16 %v6593_v14 }
 0x74a   : > { %6712 = vrot.lane.b32.xlu0 %v8474_v17, %s7418_s21  ;;  %6707 = vrot.lane.b32.xlu1 %v8033_v10, %s7420_s17 }
 0x78a   : > { %v6598_v46 = vpop.permute.xlu1 %6597 }
 0x78b   : > { %v6600_v43 = vunpack.i.h.bf16 %v6598_v46  ;;  %v6599_v56 = vunpack.i.l.bf16 %v6598_v46 }
 0x78c   : > { %v6603_v40 = vpop.permute.xlu0 %6602 }
 0x78d   : > { %v6605_v18 = vunpack.i.h.bf16 %v6603_v40  ;;  %v6604_v16 = vunpack.i.l.bf16 %v6603_v40  ;;  %v2617_v46 = vsel %vm645_vm6, %v6589_v53, %v6599_v56 }
 0x78f   : > { %v2581_v22 = vsel %vm608_vm5, %v6584_v1, %v6604_v16  ;;  %v2582_v10 = vsel %vm608_vm5, %v6604_v16, %v6605_v18  ;;  %v2618_v18 = vsel %vm645_vm6, %v6599_v56, %v6600_v43 }
 0x790   : > { %v6618_v39 = vpop.permute.xlu1 %6617  ;;  %v6608_v62 = vpop.permute.xlu0 %6607 }
 0x791   : > { %v6620_v3 = vunpack.i.h.bf16 %v6618_v39  ;;  %v6619_v29 = vunpack.i.l.bf16 %v6618_v39  ;;  %v6610_v36 = vunpack.i.h.bf16 %v6608_v62  ;;  %v6609_v39 = vunpack.i.l.bf16 %v6608_v62 }
 0x793   : > { %v2583_v55 = vsel %vm608_vm5, %v6585_v2, %v6619_v29  ;;  %v2584_v15 = vsel %vm608_vm5, %v6619_v29, %v6620_v3  ;;  %v6594_v2 = vunpack.i.l.bf16 %v6593_v14 }
 0x794   : > { %v6623_v63 = vpop.permute.xlu1 %6622  ;;  %v6613_v50 = vpop.permute.xlu0 %6612  ;;  %v5775_v37 = vpack.c.bf16 %v2584_v15, %v2582_v10  ;;  %v5777_v57 = vpack.c.bf16 %v2583_v55, %v2581_v22 }
 0x795   : > { %v6615_v40 = vunpack.i.h.bf16 %v6613_v50  ;;  %v6614_v21 = vunpack.i.l.bf16 %v6613_v50  ;;  %v2659_v62 = vsel %vm717_vm4, %v6594_v2, %v6609_v39  ;;  %v2660_v50 = vsel %vm717_vm4, %v6609_v39, %v6610_v36 }
 0x796   : > { %5776 = vmatprep.subr.bf16.mxu0 %v5775_v37  ;;  %v6625_v37 = vunpack.i.h.bf16 %v6623_v63 }
 0x797   : > { %v2619_v1 = vsel %vm645_vm6, %v6590_v60, %v6614_v21  ;;  %5778 = vmatpush1.bf16.msra.mxu0 %v5777_v57  ;;  %v2620_v16 = vsel %vm645_vm6, %v6614_v21, %v6615_v40  ;;  %v6624_v60 = vunpack.i.l.bf16 %v6623_v63 }
 0x798   : > { %v6628_v3 = vpop.permute.xlu1 %6627  ;;  %v6638_v29 = vpop.permute.xlu0 %6637  ;;  %v5779_v22 = vpack.c.bf16 %v2620_v16, %v2618_v18  ;;  %v5781_v55 = vpack.c.bf16 %v2619_v1, %v2617_v46 }
 0x799   : > { %v6630_v10 = vunpack.i.h.bf16 %v6628_v3  ;;  %v6629_v15 = vunpack.i.l.bf16 %v6628_v3  ;;  %v2702_v63 = vsel %vm769_vm3, %v6624_v60, %v6625_v37 }
 0x79a   : > { %5780 = vmatprep.subr.bf16.mxu0 %v5779_v22 }
 0x79b   : > { %v2661_v57 = vsel %vm717_vm4, %v6595_v20, %v6629_v15  ;;  %5782 = vmatpush1.bf16.msra.mxu0 %v5781_v55  ;;  %v2662_v43 = vsel %vm717_vm4, %v6629_v15, %v6630_v10  ;;  %v6640_v20 = vunpack.i.h.bf16 %v6638_v29  ;;  %v6639_v10 = vunpack.i.l.bf16 %v6638_v29 }
 0x79c   : > { %v6633_v56 = vpop.permute.xlu1 %6632  ;;  %v6643_v53 = vpop.permute.xlu0 %6642  ;;  %v5783_v40 = vpack.c.bf16 %v2662_v43, %v2660_v50  ;;  %v5785_v21 = vpack.c.bf16 %v2661_v57, %v2659_v62  ;;  %v9355_v29 = vpack.c.bf16 %v8375_v49, %v8359_v44 }
 0x79d   : > { %v6635_v46 = vunpack.i.h.bf16 %v6633_v56  ;;  %v6634_v14 = vunpack.i.l.bf16 %v6633_v56  ;;  %v6645_v1 = vunpack.i.h.bf16 %v6643_v53  ;;  %v6644_v18 = vunpack.i.l.bf16 %v6643_v53 }
 0x79e   : > { %5784 = vmatprep.subr.bf16.mxu0 %v5783_v40 }
 0x79f   : > { %v2701_v16 = vsel %vm769_vm3, %v6634_v14, %v6624_v60  ;;  %v2703_v36 = vsel %vm769_vm3, %v6635_v46, %v6644_v18  ;;  %5786 = vmatpush1.bf16.msra.mxu0 %v5785_v21  ;;  %v2704_v39 = vsel %vm769_vm3, %v6644_v18, %v6645_v1  ;;  %v2752_v21 = vsel %vm740_vm2, %v6639_v10, %v6640_v20 }
 0x7a0   : > { %v6653_v2 = vpop.permute.xlu1 %6652  ;;  %v6648_v3 = vpop.permute.xlu0 %6647  ;;  %v5787_v22 = vpack.c.bf16 %v2704_v39, %v2702_v63  ;;  %v5789_v55 = vpack.c.bf16 %v2703_v36, %v2701_v16 }
 0x7a1   : > { %v6649_v15 = vunpack.i.l.bf16 %v6648_v3  ;;  %v6650_v57 = vunpack.i.h.bf16 %v6648_v3  ;;  %v6655_v60 = vunpack.i.h.bf16 %v6653_v2  ;;  %v6654_v56 = vunpack.i.l.bf16 %v6653_v2 }
 0x7a2   : > { %5788 = vmatprep.subr.bf16.mxu0 %v5787_v22 }
 0x7a3   : > { %5790 = vmatpush1.bf16.msra.mxu0 %v5789_v55  ;;  %v2751_v53 = vsel %vm740_vm2, %v6649_v15, %v6639_v10  ;;  %v2794_v39 = vsel %vm688_vm1, %v6654_v56, %v6655_v60 }
 0x7a4   : > { %v6658_v62 = vpop.permute.xlu1 %6657  ;;  %v6668_v50 = vpop.permute.xlu0 %6667  ;;  %5792 = vmatprep.subr.bf16.mxu0 %v5791_v41 }
 0x7a5   : > { %v6660_v43 = vunpack.i.h.bf16 %v6658_v62  ;;  %v6659_v37 = vunpack.i.l.bf16 %v6658_v62  ;;  %v6670_v63 = vunpack.i.h.bf16 %v6668_v50  ;;  %v6669_v2 = vunpack.i.l.bf16 %v6668_v50 }
 0x7a7   : > { %v2753_v40 = vsel %vm740_vm2, %v6650_v57, %v6659_v37  ;;  %5794 = vmatpush1.bf16.msra.mxu0 %v9355_v29  ;;  %v2754_v46 = vsel %vm740_vm2, %v6659_v37, %v6660_v43  ;;  %v2830_v60 = vsel %vm914_vm7, %v6669_v2, %v6670_v63 }
 0x7a8   : > { %v6663_v14 = vpop.permute.xlu1 %6662  ;;  %v6678_v6 = vpop.permute.xlu0 %6677  ;;  %v5795_v35 = vpack.c.bf16 %v2754_v46, %v2752_v21  ;;  %v5797_v41 = vpack.c.bf16 %v2753_v40, %v2751_v53 }
 0x7a9   : > { %v6665_v1 = vunpack.i.h.bf16 %v6663_v14  ;;  %v6664_v18 = vunpack.i.l.bf16 %v6663_v14  ;;  %v6680_v16 = vunpack.i.h.bf16 %v6678_v6  ;;  %v6679_v36 = vunpack.i.l.bf16 %v6678_v6 }
 0x7aa   : > { %5796 = vmatprep.subr.bf16.mxu0 %v5795_v35 }
 0x7ab   : > { %v2793_v44 = vsel %vm688_vm1, %v6664_v18, %v6654_v56  ;;  %v2795_v49 = vsel %vm688_vm1, %v6665_v1, %v6679_v36  ;;  %5798 = vmatpush1.bf16.msra.mxu0 %v5797_v41  ;;  %v2796_v3 = vsel %vm688_vm1, %v6679_v36, %v6680_v16 }
 0x7ac   : > { %v6673_v22 = vpop.permute.xlu1 %6672  ;;  %v6683_v55 = vpop.permute.xlu0 %6682  ;;  %v5799_v20 = vpack.c.bf16 %v2796_v3, %v2794_v39  ;;  %v5801_v10 = vpack.c.bf16 %v2795_v49, %v2793_v44  ;;  %v2540_v49 = vld [vmem:[#allocation7 + $0x60] sm:$0xff]  ;;  %v2543_v3 = vld [vmem:[#allocation7 + $0x78] sm:$0xff] }
 0x7ad   : > { %v6675_v15 = vunpack.i.h.bf16 %v6673_v22  ;;  %v6674_v62 = vunpack.i.l.bf16 %v6673_v22  ;;  %v6685_v57 = vunpack.i.h.bf16 %v6683_v55  ;;  %v6684_v43 = vunpack.i.l.bf16 %v6683_v55  ;;  %v2542_v22 = vld [vmem:[#allocation7 + $0x70] sm:$0xff] }
 0x7ae   : > { %5800 = vmatprep.subr.bf16.mxu0 %v5799_v20 }
 0x7af   : > { %v2831_v37 = vsel %vm914_vm7, %v6685_v57, %v6674_v62  ;;  %v2829_v50 = vsel %vm914_vm7, %v6684_v43, %v6669_v2  ;;  %5802 = vmatpush1.bf16.msra.mxu0 %v5801_v10  ;;  %v2832_v56 = vsel %vm914_vm7, %v6674_v62, %v6675_v15 }
 0x7b0   : > { %v6688_v53 = vpop.permute.xlu1 %6687  ;;  %v6693_v40 = vpop.permute.xlu0 %6692  ;;  %v5803_v29 = vpack.c.bf16 %v2832_v56, %v2830_v60  ;;  %v5805_v21 = vpack.c.bf16 %v2831_v37, %v2829_v50 }
 0x7b1   : > { %v6690_v46 = vunpack.i.h.bf16 %v6688_v53  ;;  %v6689_v14 = vunpack.i.l.bf16 %v6688_v53  ;;  %v6695_v6 = vunpack.i.h.bf16 %v6693_v40  ;;  %v6694_v35 = vunpack.i.l.bf16 %v6693_v40 }
 0x7b2   : > { %5804 = vmatprep.subr.bf16.mxu0 %v5803_v29 }
 0x7b3   : > { %5806 = vmatpush1.bf16.msra.mxu0 %v5805_v21  ;;  %v2872_v41 = vsel %vm579_vm0, %v6689_v14, %v6690_v46  ;;  %v2874_v1 = vsel %vm579_vm0, %v6694_v35, %v6695_v6 }
 0x7b4   : > { %v6698_v18 = vpop.permute.xlu1 %6697  ;;  %v5807_v16 = vpack.c.bf16 %v2874_v1, %v2872_v41 }
 0x7b5   : > { %v6700_v36 = vunpack.i.h.bf16 %v6698_v18  ;;  %v6699_v63 = vunpack.i.l.bf16 %v6698_v18 }
 0x7b6   : > { %5808 = vmatprep.subr.bf16.mxu0 %v5807_v16 }
 0x7b7   : > { %v2871_v39 = vsel %vm579_vm0, %v6699_v63, %v6689_v14  ;;  %v2873_v2 = vsel %vm579_vm0, %v6700_v36, %v6694_v35 }
 0x7b8   : > { %v5809_v44 = vpack.c.bf16 %v2873_v2, %v2871_v39 }
 0x7ba   : > { %5810 = vmatpush1.bf16.msra.mxu0 %v5809_v44 }
 0x7bd   : > { %3000 = vmatmul.mubr.f32.vlgmr.msra.gmra.mrb[8].mxu0 %v2540_v49 }
 0x7be   : > { %5607 = vmatprep.mubr.msk.f32.mxu0 %vm645_vm6, %v2543_v3 }
 0x7c1   : > { %3006 = vmatmul.mubr.f32.gmra.mrb[10].mxu0 %v2542_v22  ;;  %v2922_v55 = vpop.permute.xlu0 %2921 }
 0x7c5   : > { %v2927_v43 = vpop.permute.xlu1 %2926 }
 0x890   : > { %v3001_v20 = vpop.f32.mrb[8].mxu0 }
 0x891   : > { %v3002_v10 = vadd.f32 %v3001_v20, %v2922_v55  ;;  %v3003_v15 = vpop.f32.mrb[9].mxu0 }
 0x892   : > { %v3004_v62 = vadd.f32 %v3003_v15, %v2922_v55 }
 0x893   : > { %v3012_v57 = vmul.f32 0.1, %v3002_v10 }
 0x894   : > { %v3013_v37 = vmul.f32 0.1, %v3004_v62  ;;  %v3007_v50 = vpop.f32.mrb[10].mxu0 }
 0x895   : > { %v8520_v60 = vadd.f32 %v3012_v57, %v8196_v51  ;;  %v3008_v56 = vadd.f32 %v3007_v50, %v2927_v43  ;;  %v3009_v53 = vpop.f32.mrb[11].mxu0 }
 0x896   : > { %v8523_v40 = vadd.f32 %v3013_v37, %v8199_v9  ;;  %v3010_v29 = vadd.f32 %v3009_v53, %v2927_v43 }
 0x897   : > { %v3014_v21 = vmul.f32 0.1, %v3008_v56  ;;  %v3039_v46 = vmul.f32 %v8520_v60, %v7694_v26  ;;  %v3117_v14 = vmul.f32 %v8520_v60, %v7712_v42  ;;  %v3159_v6 = vmul.f32 %v8520_v60, %v7733_v52 }
 0x898   : > { %v3015_v35 = vmul.f32 0.1, %v3010_v29  ;;  %v6716_v51 = vpack.i.bf16 %v8523_v40, %v8520_v60  ;;  %v3040_v41 = vmul.f32 %v8523_v40, %v7688_v25  ;;  %v3118_v9 = vmul.f32 %v8523_v40, %v7704_v38 }
 0x899   : > { %v8538_v1 = vadd.f32 %v3014_v21, %v8208_v30  ;;  %v3160_v18 = vmul.f32 %v8523_v40, %v7723_v48  ;;  %v3208_v55 = vmul.f32 %v8520_v60, %v7743_v58  ;;  %v3250_v43 = vmul.f32 %v8520_v60, %v7765_v4 }
 0x89a   : > { %v8543_v16 = vadd.f32 %v3015_v35, %v8211_v54  ;;  %6717 = vrot.lane.b32.xlu1 %v6716_v51, %s7420_s17  ;;  %v6721_v36 = vpack.i.bf16 %v3040_v41, %v3039_v46  ;;  %v6726_v63 = vpack.i.bf16 %v3118_v9, %v3117_v14  ;;  %v3209_v56 = vmul.f32 %v8523_v40, %v7756_v0 }
 0x89b   : > { %v3042_v39 = vmul.f32 %v8538_v1, %v7694_v26  ;;  %v6741_v2 = vpack.i.bf16 %v3160_v18, %v3159_v6  ;;  %v3120_v44 = vmul.f32 %v8538_v1, %v7712_v42  ;;  %v3162_v3 = vmul.f32 %v8538_v1, %v7733_v52 }
 0x89c   : > { %6722 = vrot.lane.b32.xlu0 %v6721_v36, %s7419_s16  ;;  %v3043_v30 = vmul.f32 %v8543_v16, %v7688_v25  ;;  %v6731_v54 = vpack.i.bf16 %v8543_v16, %v8538_v1  ;;  %v3121_v49 = vmul.f32 %v8543_v16, %v7704_v38  ;;  %v3163_v22 = vmul.f32 %v8543_v16, %v7723_v48 }
 0x89d   : > { %v3211_v20 = vmul.f32 %v8538_v1, %v7743_v58  ;;  %v3253_v37 = vmul.f32 %v8538_v1, %v7765_v4  ;;  %v6801_v50 = vpack.i.bf16 %v8538_v1, %v8520_v60  ;;  %v3328_v29 = vmul.f32 %v8520_v60, %v7798_v27 }
 0x89e   : > { %v6736_v10 = vpack.i.bf16 %v3043_v30, %v3042_v39  ;;  %v6746_v15 = vpack.i.bf16 %v3121_v49, %v3120_v44  ;;  %v6761_v62 = vpack.i.bf16 %v3163_v22, %v3162_v3  ;;  %v3331_v21 = vmul.f32 %v8538_v1, %v7798_v27  ;;  %v3022_v3 = vld [vmem:[#allocation7 + $0x88] sm:$0xff] }
 0x89f   : > { %v6766_v57 = vpack.i.bf16 %v3211_v20, %v3208_v55  ;;  %v6781_v53 = vpack.i.bf16 %v3253_v37, %v3250_v43  ;;  %v5827_v46 = vpack.c.bf16 %v8543_v16, %v8523_v40  ;;  %v5829_v14 = vpack.c.bf16 %v8538_v1, %v8520_v60  ;;  %5610 = vmatprep.mubr.msk.f32.mxu1 %vm645_vm6, %v3022_v3  ;;  %v5608_v20 = vld [vmem:[%s9331_s4 + $0x40] sm:$0xff] }
 0x8a0   : > { %6737 = vrot.lane.b32.xlu1 %v6736_v10, %s7419_s16  ;;  %6727 = vrot.lane.b32.xlu0 %v6726_v63, %s7418_s21  ;;  %v8587_v6 = vmul.f32 %v8435_v7, %v7745_v59  ;;  %v6816_v35 = vpack.i.bf16 %v3331_v21, %v3328_v29  ;;  %v3158_v41 = vmul.f32 %v8435_v7, %v7721_v47  ;;  %v6703_v10 = vpop.permute.xlu0 %6702 }
 0x8a1   : > { %v3251_v18 = vmul.f32 %v8523_v40, %v7783_v13  ;;  %v8603_v59 = vmul.f32 %v8435_v7, %v7767_v5  ;;  %v3212_v36 = vmul.f32 %v8543_v16, %v7756_v0  ;;  %v6786_v39 = vpack.i.bf16 %v8435_v7, %v8523_v40 }
 0x8a2   : > { %v6756_v51 = vpack.i.bf16 %v8587_v6, %v3209_v56  ;;  %v8594_v9 = vpack.i.bf16 %v3158_v41, %v3158_v41  ;;  %v6791_v44 = vpack.i.bf16 %v8435_v7, %v8543_v16  ;;  %v3329_v30 = vmul.f32 %v8523_v40, %v7810_v31 }
 0x8a3   : > { %v6771_v47 = vpack.i.bf16 %v8603_v59, %v3251_v18  ;;  %v6776_v63 = vpack.i.bf16 %v8587_v6, %v3212_v36  ;;  %v8630_v49 = vmul.f32 %v8435_v7, %v7800_v28  ;;  %v5609_v28 = vld [vmem:[%s9331_s4 + $0x48] sm:$0xff]  ;;  %v6705_v29 = vunpack.i.h.bf16 %v6703_v10 }
 0x8a4   : > { %6742 = vrot.lane.b32.xlu1 %v6741_v2, %s7417_s12  ;;  %6732 = vrot.lane.b32.xlu0 %v6731_v54, %s7420_s17  ;;  %v3254_v2 = vmul.f32 %v8543_v16, %v7783_v13  ;;  %v3332_v54 = vmul.f32 %v8543_v16, %v7810_v31  ;;  %v6704_v21 = vunpack.i.l.bf16 %v6703_v10 }
 0x8a5   : > { %v6806_v22 = vpack.i.bf16 %v8630_v49, %v3329_v30 }
 0x8a6   : > { %v6796_v5 = vpack.i.bf16 %v8603_v59, %v3254_v2  ;;  %v6811_v55 = vpack.i.bf16 %v8630_v49, %v3332_v54 }
 0x8a8   : > { %6747 = vrot.lane.b32.xlu1 %v6746_v15, %s7418_s21  ;;  %6757 = vrot.lane.b32.xlu0 %v6756_v51, %s7416_s25  ;;  %v6708_v15 = vpop.permute.xlu1 %6707 }
 0x8a9   : > { %v6709_v30 = vunpack.i.l.bf16 %v6708_v15 }
 0x8ac   : > { %6752 = vrot.lane.b32.xlu1 %v8594_v9, %s7417_s12  ;;  %6762 = vrot.lane.b32.xlu0 %v6761_v62, %s7417_s12  ;;  %v6713_v62 = vpop.permute.xlu0 %6712 }
 0x8b0   : > { %6772 = vrot.lane.b32.xlu1 %v6771_v47, %s7415_s27  ;;  %6767 = vrot.lane.b32.xlu0 %v6766_v57, %s7416_s25 }
 0x8b4   : > { %6777 = vrot.lane.b32.xlu1 %v6776_v63, %s7416_s25  ;;  %6787 = vrot.lane.b32.xlu0 %v6786_v39, %s7422_s14 }
 0x8b8   : > { %6782 = vrot.lane.b32.xlu1 %v6781_v53, %s7415_s27  ;;  %6797 = vrot.lane.b32.xlu0 %v6796_v5, %s7415_s27 }
 0x8bc   : > { %6792 = vrot.lane.b32.xlu1 %v6791_v44, %s7422_s14  ;;  %6802 = vrot.lane.b32.xlu0 %v6801_v50, %s7422_s14  ;;  %v6710_v44 = vunpack.i.h.bf16 %v6708_v15  ;;  %v6715_v15 = vunpack.i.h.bf16 %v6713_v62 }
 0x8c0   : > { %6807 = vrot.lane.b32.xlu1 %v6806_v22, %s7413_s30  ;;  %6812 = vrot.lane.b32.xlu0 %v6811_v55, %s7413_s30 }
 0x8c4   : > { %6817 = vrot.lane.b32.xlu1 %v6816_v35, %s7413_s30  ;;  %3402 = vperm.xlu0 %6099, %v5608_v20  }
 0x8c8   : > { %3407 = vperm.xlu1 %6220, %v5609_v28   ;;  %6822 = vrot.lane.b32.xlu0 %v8468_v33, %s7419_s16 }
 0x8cc   : > { %6832 = vrot.lane.b32.xlu0 %v8474_v17, %s7418_s21 }
 0x90c   : > { %v6718_v57 = vpop.permute.xlu1 %6717 }
 0x90d   : > { %v6720_v41 = vunpack.i.h.bf16 %v6718_v57  ;;  %v6719_v18 = vunpack.i.l.bf16 %v6718_v57 }
 0x90e   : > { %v6723_v43 = vpop.permute.xlu0 %6722 }
 0x90f   : > { %v6725_v37 = vunpack.i.h.bf16 %v6723_v43  ;;  %v6724_v50 = vunpack.i.l.bf16 %v6723_v43  ;;  %v3098_v20 = vsel %vm645_vm6, %v6709_v30, %v6719_v18  ;;  %v3099_v10 = vsel %vm645_vm6, %v6719_v18, %v6720_v41 }
 0x910   : > { %v6714_v43 = vunpack.i.l.bf16 %v6713_v62 }
 0x911   : > { %v3062_v33 = vsel %vm608_vm5, %v6704_v21, %v6724_v50  ;;  %v3063_v17 = vsel %vm608_vm5, %v6724_v50, %v6725_v37 }
 0x912   : > { %v6738_v56 = vpop.permute.xlu1 %6737  ;;  %v6728_v53 = vpop.permute.xlu0 %6727 }
 0x913   : > { %v6740_v35 = vunpack.i.h.bf16 %v6738_v56  ;;  %v6739_v51 = vunpack.i.l.bf16 %v6738_v56  ;;  %v6730_v22 = vunpack.i.h.bf16 %v6728_v53  ;;  %v6729_v55 = vunpack.i.l.bf16 %v6728_v53 }
 0x915   : > { %v3064_v47 = vsel %vm608_vm5, %v6705_v29, %v6739_v51  ;;  %v3065_v36 = vsel %vm608_vm5, %v6739_v51, %v6740_v35  ;;  %v3140_v53 = vsel %vm717_vm4, %v6714_v43, %v6729_v55  ;;  %v3141_v51 = vsel %vm717_vm4, %v6729_v55, %v6730_v22 }
 0x916   : > { %v6743_v63 = vpop.permute.xlu1 %6742  ;;  %v6733_v39 = vpop.permute.xlu0 %6732  ;;  %v5811_v2 = vpack.c.bf16 %v3065_v36, %v3063_v17  ;;  %v5813_v5 = vpack.c.bf16 %v3064_v47, %v3062_v33 }
 0x917   : > { %v6735_v54 = vunpack.i.h.bf16 %v6733_v39  ;;  %v6734_v3 = vunpack.i.l.bf16 %v6733_v39  ;;  %v6745_v33 = vunpack.i.h.bf16 %v6743_v63  ;;  %v6744_v47 = vunpack.i.l.bf16 %v6743_v63 }
 0x918   : > { %5812 = vmatprep.subr.bf16.mxu1 %v5811_v2 }
 0x919   : > { %v3100_v28 = vsel %vm645_vm6, %v6710_v44, %v6734_v3  ;;  %5814 = vmatpush1.bf16.msra.mxu1 %v5813_v5  ;;  %v3101_v57 = vsel %vm645_vm6, %v6734_v3, %v6735_v54  ;;  %v3183_v63 = vsel %vm769_vm3, %v6744_v47, %v6745_v33 }
 0x91a   : > { %v6748_v37 = vpop.permute.xlu1 %6747  ;;  %v6758_v50 = vpop.permute.xlu0 %6757  ;;  %v5815_v56 = vpack.c.bf16 %v3101_v57, %v3099_v10  ;;  %v5817_v29 = vpack.c.bf16 %v3100_v28, %v3098_v20 }
 0x91b   : > { %v6750_v21 = vunpack.i.h.bf16 %v6748_v37  ;;  %v6749_v35 = vunpack.i.l.bf16 %v6748_v37  ;;  %v6760_v57 = vunpack.i.h.bf16 %v6758_v50  ;;  %v6759_v43 = vunpack.i.l.bf16 %v6758_v50 }
 0x91c   : > { %5816 = vmatprep.subr.bf16.mxu1 %v5815_v56 }
 0x91d   : > { %v3142_v17 = vsel %vm717_vm4, %v6715_v15, %v6749_v35  ;;  %5818 = vmatpush1.bf16.msra.mxu1 %v5817_v29  ;;  %v3143_v41 = vsel %vm717_vm4, %v6749_v35, %v6750_v21  ;;  %v3233_v50 = vsel %vm740_vm2, %v6759_v43, %v6760_v57 }
 0x91e   : > { %v6753_v18 = vpop.permute.xlu1 %6752  ;;  %v6763_v36 = vpop.permute.xlu0 %6762  ;;  %v5819_v39 = vpack.c.bf16 %v3143_v41, %v3141_v51  ;;  %v5821_v2 = vpack.c.bf16 %v3142_v17, %v3140_v53 }
 0x91f   : > { %v6755_v5 = vunpack.i.h.bf16 %v6753_v18  ;;  %v6754_v62 = vunpack.i.l.bf16 %v6753_v18  ;;  %v6765_v44 = vunpack.i.h.bf16 %v6763_v36  ;;  %v6764_v30 = vunpack.i.l.bf16 %v6763_v36 }
 0x920   : > { %5820 = vmatprep.subr.bf16.mxu1 %v5819_v39 }
 0x921   : > { %v3182_v54 = vsel %vm769_vm3, %v6754_v62, %v6744_v47  ;;  %v3184_v3 = vsel %vm769_vm3, %v6755_v5, %v6764_v30  ;;  %5822 = vmatpush1.bf16.msra.mxu1 %v5821_v2  ;;  %v3185_v22 = vsel %vm769_vm3, %v6764_v30, %v6765_v44 }
 0x922   : > { %v6773_v55 = vpop.permute.xlu1 %6772  ;;  %v6768_v20 = vpop.permute.xlu0 %6767  ;;  %v5823_v28 = vpack.c.bf16 %v3185_v22, %v3183_v63  ;;  %v5825_v10 = vpack.c.bf16 %v3184_v3, %v3182_v54 }
 0x923   : > { %v6769_v37 = vunpack.i.l.bf16 %v6768_v20  ;;  %v6770_v15 = vunpack.i.h.bf16 %v6768_v20  ;;  %v6775_v53 = vunpack.i.h.bf16 %v6773_v55  ;;  %v6774_v51 = vunpack.i.l.bf16 %v6773_v55 }
 0x924   : > { %5824 = vmatprep.subr.bf16.mxu1 %v5823_v28 }
 0x925   : > { %5826 = vmatpush1.bf16.msra.mxu1 %v5825_v10  ;;  %v3232_v33 = vsel %vm740_vm2, %v6769_v37, %v6759_v43  ;;  %v3275_v62 = vsel %vm688_vm1, %v6774_v51, %v6775_v53 }
 0x926   : > { %v6778_v56 = vpop.permute.xlu1 %6777  ;;  %v6788_v29 = vpop.permute.xlu0 %6787  ;;  %5828 = vmatprep.subr.bf16.mxu1 %v5827_v46 }
 0x927   : > { %v6780_v21 = vunpack.i.h.bf16 %v6778_v56  ;;  %v6779_v35 = vunpack.i.l.bf16 %v6778_v56  ;;  %v6790_v5 = vunpack.i.h.bf16 %v6788_v29  ;;  %v6789_v44 = vunpack.i.l.bf16 %v6788_v29 }
 0x929   : > { %v3234_v47 = vsel %vm740_vm2, %v6770_v15, %v6779_v35  ;;  %5830 = vmatpush1.bf16.msra.mxu1 %v5829_v14  ;;  %v3235_v17 = vsel %vm740_vm2, %v6779_v35, %v6780_v21  ;;  %v3311_v43 = vsel %vm914_vm7, %v6789_v44, %v6790_v5  ;;  %v3023_v5 = vld [vmem:[#allocation7 + $0x90] sm:$0xff] }
 0x92a   : > { %v6783_v41 = vpop.permute.xlu1 %6782  ;;  %v6798_v40 = vpop.permute.xlu0 %6797  ;;  %v5831_v16 = vpack.c.bf16 %v3235_v17, %v3233_v50  ;;  %v5833_v46 = vpack.c.bf16 %v3234_v47, %v3232_v33 }
 0x92b   : > { %v6785_v18 = vunpack.i.h.bf16 %v6783_v41  ;;  %v6784_v36 = vunpack.i.l.bf16 %v6783_v41  ;;  %v6800_v39 = vunpack.i.h.bf16 %v6798_v40  ;;  %v6799_v2 = vunpack.i.l.bf16 %v6798_v40 }
 0x92c   : > { %5832 = vmatprep.subr.bf16.mxu1 %v5831_v16 }
 0x92d   : > { %v3274_v60 = vsel %vm688_vm1, %v6784_v36, %v6774_v51  ;;  %v3276_v1 = vsel %vm688_vm1, %v6785_v18, %v6799_v2  ;;  %5834 = vmatpush1.bf16.msra.mxu1 %v5833_v46  ;;  %v3277_v14 = vsel %vm688_vm1, %v6799_v2, %v6800_v39  ;;  %v3021_v39 = vld [vmem:[#allocation7 + $0x80] sm:$0xff]  ;;  %v3024_v2 = vld [vmem:[#allocation7 + $0x98] sm:$0xff] }
 0x92e   : > { %v6793_v30 = vpop.permute.xlu1 %6792  ;;  %v6803_v54 = vpop.permute.xlu0 %6802  ;;  %v5835_v3 = vpack.c.bf16 %v3277_v14, %v3275_v62  ;;  %v5837_v63 = vpack.c.bf16 %v3276_v1, %v3274_v60  ;;  %v8689_v62 = vpack.i.bf16 %v8435_v7, %v8435_v7 }
 0x92f   : > { %v6795_v22 = vunpack.i.h.bf16 %v6793_v30  ;;  %v6794_v55 = vunpack.i.l.bf16 %v6793_v30  ;;  %v6805_v20 = vunpack.i.h.bf16 %v6803_v54  ;;  %v6804_v28 = vunpack.i.l.bf16 %v6803_v54 }
 0x930   : > { %5836 = vmatprep.subr.bf16.mxu1 %v5835_v3  ;;  %6827 = vrot.lane.b32.xlu1 %v8689_v62, %s7420_s17 }
 0x931   : > { %v3312_v10 = vsel %vm914_vm7, %v6805_v20, %v6794_v55  ;;  %v3310_v57 = vsel %vm914_vm7, %v6804_v28, %v6789_v44  ;;  %5838 = vmatpush1.bf16.msra.mxu1 %v5837_v63  ;;  %v3313_v37 = vsel %vm914_vm7, %v6794_v55, %v6795_v22 }
 0x932   : > { %v6808_v56 = vpop.permute.xlu1 %6807  ;;  %v6813_v29 = vpop.permute.xlu0 %6812  ;;  %v5839_v15 = vpack.c.bf16 %v3313_v37, %v3311_v43  ;;  %v5841_v21 = vpack.c.bf16 %v3312_v10, %v3310_v57 }
 0x933   : > { %v6810_v35 = vunpack.i.h.bf16 %v6808_v56  ;;  %v6809_v53 = vunpack.i.l.bf16 %v6808_v56  ;;  %v6815_v51 = vunpack.i.h.bf16 %v6813_v29  ;;  %v6814_v33 = vunpack.i.l.bf16 %v6813_v29 }
 0x934   : > { %5840 = vmatprep.subr.bf16.mxu1 %v5839_v15 }
 0x935   : > { %5842 = vmatpush1.bf16.msra.mxu1 %v5841_v21  ;;  %v3353_v47 = vsel %vm579_vm0, %v6809_v53, %v6810_v35  ;;  %v3355_v50 = vsel %vm579_vm0, %v6814_v33, %v6815_v51 }
 0x936   : > { %v6818_v17 = vpop.permute.xlu1 %6817  ;;  %v5843_v41 = vpack.c.bf16 %v3355_v50, %v3353_v47 }
 0x937   : > { %v6820_v40 = vunpack.i.h.bf16 %v6818_v17  ;;  %v6819_v16 = vunpack.i.l.bf16 %v6818_v17 }
 0x938   : > { %5844 = vmatprep.subr.bf16.mxu1 %v5843_v41 }
 0x939   : > { %v3352_v46 = vsel %vm579_vm0, %v6819_v16, %v6809_v53  ;;  %v3354_v18 = vsel %vm579_vm0, %v6820_v40, %v6814_v33 }
 0x93a   : > { %v5845_v36 = vpack.c.bf16 %v3354_v18, %v3352_v46 }
 0x93c   : > { %5846 = vmatpush1.bf16.msra.mxu1 %v5845_v36 }
 0x93f   : > { %3481 = vmatmul.mubr.f32.vlgmr.msra.gmra.mrb[8].mxu1 %v3021_v39 }
 0x940   : > { %5611 = vmatprep.mubr.msk.f32.mxu1 %vm645_vm6, %v3024_v2 }
 0x943   : > { %3487 = vmatmul.mubr.f32.gmra.mrb[10].mxu1 %v3023_v5  ;;  %v3403_v44 = vpop.permute.xlu0 %3402 }
 0x947   : > { %v3408_v3 = vpop.permute.xlu1 %3407 }
 0xa12   : > { %v3482_v60 = vpop.f32.mrb[8].mxu1 }
 0xa13   : > { %v3483_v1 = vadd.f32 %v3482_v60, %v3403_v44  ;;  %v3484_v14 = vpop.f32.mrb[9].mxu1 }
 0xa14   : > { %v3485_v30 = vadd.f32 %v3484_v14, %v3403_v44 }
 0xa15   : > { %v8694_v54 = vadd.f32 %v3483_v1, %v7887_v11 }
 0xa16   : > { %v8697_v63 = vadd.f32 %v3485_v30, %v7889_v12  ;;  %v3488_v22 = vpop.f32.mrb[10].mxu1 }
 0xa17   : > { %3521 = vst [vmem:[#allocation2 + $0x8] sm:$0xff] %v8694_v54  ;;  %v3489_v55 = vadd.f32 %v3488_v22, %v3408_v3  ;;  %v3490_v20 = vpop.f32.mrb[11].mxu1  ;;  %v3532_v28 = vmul.f32 %v8694_v54, %v7694_v26  ;;  %v3610_v10 = vmul.f32 %v8694_v54, %v7712_v42  ;;  %v3652_v57 = vmul.f32 %v8694_v54, %v7733_v52 }
 0xa18   : > { %3522 = vst [vmem:[#allocation2 + $0x10] sm:$0xff] %v8697_v63  ;;  %v3491_v11 = vadd.f32 %v3490_v20, %v3408_v3  ;;  %v6836_v12 = vpack.i.bf16 %v8697_v63, %v8694_v54  ;;  %v3533_v43 = vmul.f32 %v8697_v63, %v7688_v25  ;;  %v3611_v37 = vmul.f32 %v8697_v63, %v7704_v38 }
 0xa19   : > { %v8714_v56 = vadd.f32 %v3489_v55, %v7897_v23  ;;  %v3653_v29 = vmul.f32 %v8697_v63, %v7723_v48  ;;  %v3701_v41 = vmul.f32 %v8694_v54, %v7743_v58  ;;  %v3743_v39 = vmul.f32 %v8694_v54, %v7765_v4 }
 0xa1a   : > { %v8719_v15 = vadd.f32 %v3491_v11, %v7899_v32  ;;  %6837 = vrot.lane.b32.xlu1 %v6836_v12, %s7420_s17  ;;  %v6841_v21 = vpack.i.bf16 %v3533_v43, %v3532_v28  ;;  %v6846_v35 = vpack.i.bf16 %v3611_v37, %v3610_v10  ;;  %v3702_v44 = vmul.f32 %v8697_v63, %v7756_v0 }
 0xa1b   : > { %v3535_v53 = vmul.f32 %v8714_v56, %v7694_v26  ;;  %v6861_v51 = vpack.i.bf16 %v3653_v29, %v3652_v57  ;;  %v3613_v33 = vmul.f32 %v8714_v56, %v7712_v42  ;;  %v3655_v50 = vmul.f32 %v8714_v56, %v7733_v52  ;;  %v3498_v29 = vld [vmem:[#allocation9 + $0x8] sm:$0xff] }
 0xa1c   : > { %6842 = vrot.lane.b32.xlu0 %v6841_v21, %s7419_s16  ;;  %v3536_v23 = vmul.f32 %v8719_v15, %v7688_v25  ;;  %v6851_v32 = vpack.i.bf16 %v8719_v15, %v8714_v56  ;;  %v3614_v47 = vmul.f32 %v8719_v15, %v7704_v38  ;;  %v3656_v17 = vmul.f32 %v8719_v15, %v7723_v48 }
 0xa1d   : > { %v3704_v40 = vmul.f32 %v8714_v56, %v7743_v58  ;;  %v3746_v2 = vmul.f32 %v8714_v56, %v7765_v4  ;;  %v6921_v5 = vpack.i.bf16 %v8714_v56, %v8694_v54  ;;  %v3821_v1 = vmul.f32 %v8694_v54, %v7798_v27  ;;  %5612 = vmatprep.mubr.msk.f32.mxu0 %vm645_vm6, %v3498_v29 }
 0xa1e   : > { %v6856_v16 = vpack.i.bf16 %v3536_v23, %v3535_v53  ;;  %v6866_v46 = vpack.i.bf16 %v3614_v47, %v3613_v33  ;;  %v6881_v18 = vpack.i.bf16 %v3656_v17, %v3655_v50  ;;  %v3824_v14 = vmul.f32 %v8714_v56, %v7798_v27  ;;  %v3517_v53 = vld [vmem:[%s9333_s6 + $0x20] sm:$0xff]  ;;  %v3516_v33 = vld [vmem:[%s9333_s6 + $0x18] sm:$0xff]  ;;  %v6823_v47 = vpop.permute.xlu0 %6822 }
 0xa1f   : > { %v6886_v36 = vpack.i.bf16 %v3704_v40, %v3701_v41  ;;  %v6901_v60 = vpack.i.bf16 %v3746_v2, %v3743_v39  ;;  %v5863_v30 = vpack.c.bf16 %v8719_v15, %v8697_v63  ;;  %v5865_v3 = vpack.c.bf16 %v8714_v56, %v8694_v54  ;;  %v3513_v23 = vld [vmem:[%s9333_s6] sm:$0xff] }
 0xa20   : > { %6857 = vrot.lane.b32.xlu1 %v6856_v16, %s7419_s16  ;;  %6847 = vrot.lane.b32.xlu0 %v6846_v35, %s7418_s21  ;;  %v6936_v22 = vpack.i.bf16 %v3824_v14, %v3821_v1  ;;  %v6876_v55 = vpack.i.bf16 %v8587_v6, %v3702_v44  ;;  %v3744_v20 = vmul.f32 %v8697_v63, %v7783_v13  ;;  %v3520_v35 = vld [vmem:[%s9333_s6 + $0x38] sm:$0xff]  ;;  %v6824_v39 = vunpack.i.l.bf16 %v6823_v47 }
 0xa21   : > { %v3705_v10 = vmul.f32 %v8719_v15, %v7756_v0  ;;  %v6906_v11 = vpack.i.bf16 %v8435_v7, %v8697_v63  ;;  %v3747_v12 = vmul.f32 %v8719_v15, %v7783_v13  ;;  %v6911_v43 = vpack.i.bf16 %v8435_v7, %v8719_v15  ;;  %v3519_v7 = vld [vmem:[%s9333_s6 + $0x30] sm:$0xff] }
 0xa22   : > { %v6891_v28 = vpack.i.bf16 %v8603_v59, %v3744_v20  ;;  %v3825_v37 = vmul.f32 %v8719_v15, %v7810_v31  ;;  %v6833_v50 = vpop.permute.xlu0 %6832 }
 0xa23   : > { %v6896_v57 = vpack.i.bf16 %v8587_v6, %v3705_v10  ;;  %v3822_v6 = vmul.f32 %v8697_v63, %v7810_v31 }
 0xa24   : > { %6862 = vrot.lane.b32.xlu1 %v6861_v51, %s7417_s12  ;;  %6852 = vrot.lane.b32.xlu0 %v6851_v32, %s7420_s17  ;;  %v6931_v21 = vpack.i.bf16 %v8630_v49, %v3825_v37  ;;  %v3515_v51 = vld [vmem:[%s9333_s6 + $0x10] sm:$0xff]  ;;  %v3514_v32 = vld [vmem:[%s9333_s6 + $0x8] sm:$0xff] }
 0xa28   : > { %6867 = vrot.lane.b32.xlu1 %v6866_v46, %s7418_s21  ;;  %6877 = vrot.lane.b32.xlu0 %v6876_v55, %s7416_s25 }
 0xa2c   : > { %6872 = vrot.lane.b32.xlu1 %v8594_v9, %s7417_s12  ;;  %6882 = vrot.lane.b32.xlu0 %v6881_v18, %s7417_s12  ;;  %v6916_v9 = vpack.i.bf16 %v8603_v59, %v3747_v12  ;;  %v6926_v59 = vpack.i.bf16 %v8630_v49, %v3822_v6  ;;  %v3518_v49 = vld [vmem:[%s9333_s6 + $0x28] sm:$0xff] }
 0xa30   : > { %6892 = vrot.lane.b32.xlu1 %v6891_v28, %s7415_s27  ;;  %6887 = vrot.lane.b32.xlu0 %v6886_v36, %s7416_s25  ;;  %v6825_v36 = vunpack.i.h.bf16 %v6823_v47 }
 0xa34   : > { %6897 = vrot.lane.b32.xlu1 %v6896_v57, %s7416_s25  ;;  %6907 = vrot.lane.b32.xlu0 %v6906_v11, %s7422_s14 }
 0xa38   : > { %6902 = vrot.lane.b32.xlu1 %v6901_v60, %s7415_s27  ;;  %6917 = vrot.lane.b32.xlu0 %v6916_v9, %s7415_s27 }
 0xa3c   : > { %6912 = vrot.lane.b32.xlu1 %v6911_v43, %s7422_s14  ;;  %6922 = vrot.lane.b32.xlu0 %v6921_v5, %s7422_s14 }
 0xa40   : > { %6927 = vrot.lane.b32.xlu1 %v6926_v59, %s7413_s30  ;;  %6932 = vrot.lane.b32.xlu0 %v6931_v21, %s7413_s30  ;;  %v6834_v21 = vunpack.i.l.bf16 %v6833_v50 }
 0xa44   : > { %6937 = vrot.lane.b32.xlu1 %v6936_v22, %s7413_s30  ;;  %3925 = vperm.xlu0 %6099, %v3519_v7  }
 0xa48   : > { %3930 = vperm.xlu1 %6220, %v3520_v35   ;;  %3915 = vperm.xlu0 %6099, %v3517_v53  }
 0xa4c   : > { %3920 = vperm.xlu1 %6220, %v3518_v49   ;;  %3905 = vperm.xlu0 %6099, %v3515_v51   ;;  %v6835_v51 = vunpack.i.h.bf16 %v6833_v50 }
 0xa50   : > { %3910 = vperm.xlu1 %6220, %v3516_v33   ;;  %3895 = vperm.xlu0 %6099, %v3513_v23  }
 0xa54   : > { %3900 = vperm.xlu1 %6220, %v3514_v32   ;;  %6942 = vrot.lane.b32.xlu0 %v7686_v24, %s7419_s16  ;;  %v6828_v24 = vpop.permute.xlu1 %6827 }
 0xa55   : > { %v6830_v10 = vunpack.i.h.bf16 %v6828_v24  ;;  %v6829_v57 = vunpack.i.l.bf16 %v6828_v24 }
 0xa58   : > { %6947 = vrot.lane.b32.xlu1 %v8689_v62, %s7420_s17  ;;  %6952 = vrot.lane.b32.xlu0 %v8689_v62, %s7420_s17 }
 0xa5c   : > { %6957 = vrot.lane.b32.xlu1 %v8689_v62, %s7420_s17  ;;  %6962 = vrot.lane.b32.xlu0 %v8689_v62, %s7420_s17 }
 0xa60   : > { %6967 = vrot.lane.b32.xlu1 %v7716_v45, %s7418_s21  ;;  %6972 = vrot.lane.b32.xlu0 %v7748_v61, %s7417_s12 }
 0xa8c   : > { %v6838_v17 = vpop.permute.xlu1 %6837 }
 0xa8d   : > { %v6840_v62 = vunpack.i.h.bf16 %v6838_v17  ;;  %v6839_v44 = vunpack.i.l.bf16 %v6838_v17 }
 0xa8e   : > { %v6843_v41 = vpop.permute.xlu0 %6842 }
 0xa8f   : > { %v6845_v40 = vunpack.i.h.bf16 %v6843_v41  ;;  %v6844_v16 = vunpack.i.l.bf16 %v6843_v41  ;;  %v3591_v6 = vsel %vm645_vm6, %v6829_v57, %v6839_v44  ;;  %v3592_v29 = vsel %vm645_vm6, %v6839_v44, %v6840_v62 }
 0xa91   : > { %v3555_v45 = vsel %vm608_vm5, %v6824_v39, %v6844_v16  ;;  %v3556_v1 = vsel %vm608_vm5, %v6844_v16, %v6845_v40 }
 0xa92   : > { %v6858_v46 = vpop.permute.xlu1 %6857  ;;  %v6848_v18 = vpop.permute.xlu0 %6847 }
 0xa93   : > { %v6860_v2 = vunpack.i.h.bf16 %v6858_v46  ;;  %v6859_v5 = vunpack.i.l.bf16 %v6858_v46  ;;  %v6850_v9 = vunpack.i.h.bf16 %v6848_v18  ;;  %v6849_v43 = vunpack.i.l.bf16 %v6848_v18 }
 0xa95   : > { %v3557_v60 = vsel %vm608_vm5, %v6825_v36, %v6859_v5  ;;  %v3558_v14 = vsel %vm608_vm5, %v6859_v5, %v6860_v2  ;;  %v3633_v32 = vsel %vm717_vm4, %v6834_v21, %v6849_v43  ;;  %v3634_v47 = vsel %vm717_vm4, %v6849_v43, %v6850_v9 }
 0xa96   : > { %v5849_v22 = vpack.c.bf16 %v3557_v60, %v3555_v45  ;;  %v6863_v55 = vpop.permute.xlu1 %6862  ;;  %v6853_v20 = vpop.permute.xlu0 %6852  ;;  %v5847_v28 = vpack.c.bf16 %v3558_v14, %v3556_v1 }
 0xa97   : > { %v6855_v11 = vunpack.i.h.bf16 %v6853_v20  ;;  %v6854_v12 = vunpack.i.l.bf16 %v6853_v20  ;;  %v6865_v24 = vunpack.i.h.bf16 %v6863_v55  ;;  %v6864_v17 = vunpack.i.l.bf16 %v6863_v55 }
 0xa98   : > { %5848 = vmatprep.subr.bf16.mxu0 %v5847_v28 }
 0xa99   : > { %v3593_v37 = vsel %vm645_vm6, %v6830_v10, %v6854_v12  ;;  %5850 = vmatpush1.bf16.msra.mxu0 %v5849_v22  ;;  %v3594_v59 = vsel %vm645_vm6, %v6854_v12, %v6855_v11  ;;  %v3676_v45 = vsel %vm769_vm3, %v6864_v17, %v6865_v24 }
 0xa9a   : > { %v5853_v7 = vpack.c.bf16 %v3593_v37, %v3591_v6  ;;  %v6868_v35 = vpop.permute.xlu1 %6867  ;;  %v6878_v53 = vpop.permute.xlu0 %6877  ;;  %v5851_v49 = vpack.c.bf16 %v3594_v59, %v3592_v29 }
 0xa9b   : > { %v6870_v33 = vunpack.i.h.bf16 %v6868_v35  ;;  %v6869_v23 = vunpack.i.l.bf16 %v6868_v35  ;;  %v6880_v20 = vunpack.i.h.bf16 %v6878_v53  ;;  %v6879_v28 = vunpack.i.l.bf16 %v6878_v53 }
 0xa9c   : > { %5852 = vmatprep.subr.bf16.mxu0 %v5851_v49 }
 0xa9d   : > { %v3635_v41 = vsel %vm717_vm4, %v6835_v51, %v6869_v23  ;;  %5854 = vmatpush1.bf16.msra.mxu0 %v5853_v7  ;;  %v3636_v40 = vsel %vm717_vm4, %v6869_v23, %v6870_v33  ;;  %v3726_v21 = vsel %vm740_vm2, %v6879_v28, %v6880_v20 }
 0xa9e   : > { %v5857_v16 = vpack.c.bf16 %v3635_v41, %v3633_v32  ;;  %v6873_v46 = vpop.permute.xlu1 %6872  ;;  %v6883_v18 = vpop.permute.xlu0 %6882  ;;  %v5855_v36 = vpack.c.bf16 %v3636_v40, %v3634_v47 }
 0xa9f   : > { %v6875_v39 = vunpack.i.h.bf16 %v6873_v46  ;;  %v6874_v50 = vunpack.i.l.bf16 %v6873_v46  ;;  %v6885_v2 = vunpack.i.h.bf16 %v6883_v18  ;;  %v6884_v5 = vunpack.i.l.bf16 %v6883_v18 }
 0xaa0   : > { %5856 = vmatprep.subr.bf16.mxu0 %v5855_v36 }
 0xaa1   : > { %v3675_v62 = vsel %vm769_vm3, %v6874_v50, %v6864_v17  ;;  %v3677_v44 = vsel %vm769_vm3, %v6875_v39, %v6884_v5  ;;  %5858 = vmatpush1.bf16.msra.mxu0 %v5857_v16  ;;  %v3678_v60 = vsel %vm769_vm3, %v6884_v5, %v6885_v2 }
 0xaa2   : > { %v5861_v1 = vpack.c.bf16 %v3677_v44, %v3675_v62  ;;  %v6893_v14 = vpop.permute.xlu1 %6892  ;;  %v6888_v22 = vpop.permute.xlu0 %6887  ;;  %v5859_v55 = vpack.c.bf16 %v3678_v60, %v3676_v45 }
 0xaa3   : > { %v6889_v10 = vunpack.i.l.bf16 %v6888_v22  ;;  %v6890_v12 = vunpack.i.h.bf16 %v6888_v22  ;;  %v6895_v6 = vunpack.i.h.bf16 %v6893_v14  ;;  %v6894_v37 = vunpack.i.l.bf16 %v6893_v14 }
 0xaa4   : > { %5860 = vmatprep.subr.bf16.mxu0 %v5859_v55 }
 0xaa5   : > { %5862 = vmatpush1.bf16.msra.mxu0 %v5861_v1  ;;  %v3725_v29 = vsel %vm740_vm2, %v6889_v10, %v6879_v28  ;;  %v3768_v32 = vsel %vm688_vm1, %v6894_v37, %v6895_v6 }
 0xaa6   : > { %v6898_v57 = vpop.permute.xlu1 %6897  ;;  %v6908_v11 = vpop.permute.xlu0 %6907  ;;  %5864 = vmatprep.subr.bf16.mxu0 %v5863_v30 }
 0xaa7   : > { %v6900_v9 = vunpack.i.h.bf16 %v6898_v57  ;;  %v6899_v43 = vunpack.i.l.bf16 %v6898_v57  ;;  %v6910_v23 = vunpack.i.h.bf16 %v6908_v11  ;;  %v6909_v47 = vunpack.i.l.bf16 %v6908_v11 }
 0xaa9   : > { %v3727_v59 = vsel %vm740_vm2, %v6890_v12, %v6899_v43  ;;  %5866 = vmatpush1.bf16.msra.mxu0 %v5865_v3  ;;  %v3728_v7 = vsel %vm740_vm2, %v6899_v43, %v6900_v9  ;;  %v3804_v2 = vsel %vm914_vm7, %v6909_v47, %v6910_v23  ;;  %v3512_v23 = vld [vmem:[#allocation9 + $0x78] sm:$0xff] }
 0xaaa   : > { %v5869_v35 = vpack.c.bf16 %v3727_v59, %v3725_v29  ;;  %v6903_v63 = vpop.permute.xlu1 %6902  ;;  %v6918_v15 = vpop.permute.xlu0 %6917  ;;  %v5867_v30 = vpack.c.bf16 %v3728_v7, %v3726_v21  ;;  %v3500_v29 = vld [vmem:[#allocation9 + $0x18] sm:$0xff]  ;;  %v3499_v59 = vld [vmem:[#allocation9 + $0x10] sm:$0xff]  ;;  %v3502_v21 = vld [vmem:[#allocation9 + $0x28] sm:$0xff] }
 0xaab   : > { %v6905_v53 = vunpack.i.h.bf16 %v6903_v63  ;;  %v6904_v49 = vunpack.i.l.bf16 %v6903_v63  ;;  %v6920_v51 = vunpack.i.h.bf16 %v6918_v15  ;;  %v6919_v33 = vunpack.i.l.bf16 %v6918_v15  ;;  %v3501_v7 = vld [vmem:[#allocation9 + $0x20] sm:$0xff]  ;;  %v3503_v63 = vld [vmem:[#allocation9 + $0x30] sm:$0xff]  ;;  %v3506_v15 = vld [vmem:[#allocation9 + $0x48] sm:$0xff] }
 0xaac   : > { %5868 = vmatprep.subr.bf16.mxu0 %v5867_v30  ;;  %v3505_v30 = vld [vmem:[#allocation9 + $0x40] sm:$0xff] }
 0xaad   : > { %v3767_v54 = vsel %vm688_vm1, %v6904_v49, %v6894_v37  ;;  %v3769_v56 = vsel %vm688_vm1, %v6905_v53, %v6919_v33  ;;  %5870 = vmatpush1.bf16.msra.mxu0 %v5869_v35  ;;  %v3770_v3 = vsel %vm688_vm1, %v6919_v33, %v6920_v51  ;;  %v3497_v37 = vld [vmem:[#allocation9] sm:$0xff]  ;;  %v3504_v35 = vld [vmem:[#allocation9 + $0x38] sm:$0xff]  ;;  %v3507_v49 = vld [vmem:[#allocation9 + $0x50] sm:$0xff] }
 0xaae   : > { %v5873_v24 = vpack.c.bf16 %v3769_v56, %v3767_v54  ;;  %v6913_v17 = vpop.permute.xlu1 %6912  ;;  %v6923_v41 = vpop.permute.xlu0 %6922  ;;  %v5871_v40 = vpack.c.bf16 %v3770_v3, %v3768_v32  ;;  %v3508_v53 = vld [vmem:[#allocation9 + $0x58] sm:$0xff]  ;;  %v3510_v51 = vld [vmem:[#allocation9 + $0x68] sm:$0xff]  ;;  %v3509_v33 = vld [vmem:[#allocation9 + $0x60] sm:$0xff] }
 0xaaf   : > { %v6915_v16 = vunpack.i.h.bf16 %v6913_v17  ;;  %v6914_v46 = vunpack.i.l.bf16 %v6913_v17  ;;  %v6925_v18 = vunpack.i.h.bf16 %v6923_v41  ;;  %v6924_v36 = vunpack.i.l.bf16 %v6923_v41  ;;  %v3511_v32 = vld [vmem:[#allocation9 + $0x70] sm:$0xff] }
 0xab0   : > { %5872 = vmatprep.subr.bf16.mxu0 %v5871_v40 }
 0xab1   : > { %v3805_v39 = vsel %vm914_vm7, %v6925_v18, %v6914_v46  ;;  %v3803_v50 = vsel %vm914_vm7, %v6924_v36, %v6909_v47  ;;  %5874 = vmatpush1.bf16.msra.mxu0 %v5873_v24  ;;  %v3806_v5 = vsel %vm914_vm7, %v6914_v46, %v6915_v16 }
 0xab2   : > { %v5877_v62 = vpack.c.bf16 %v3805_v39, %v3803_v50  ;;  %v6928_v44 = vpop.permute.xlu1 %6927  ;;  %v6933_v45 = vpop.permute.xlu0 %6932  ;;  %v5875_v60 = vpack.c.bf16 %v3806_v5, %v3804_v2 }
 0xab3   : > { %v6930_v1 = vunpack.i.h.bf16 %v6928_v44  ;;  %v6929_v14 = vunpack.i.l.bf16 %v6928_v44  ;;  %v6935_v22 = vunpack.i.h.bf16 %v6933_v45  ;;  %v6934_v55 = vunpack.i.l.bf16 %v6933_v45 }
 0xab4   : > { %5876 = vmatprep.subr.bf16.mxu0 %v5875_v60 }
 0xab5   : > { %5878 = vmatpush1.bf16.msra.mxu0 %v5877_v62  ;;  %v3846_v20 = vsel %vm579_vm0, %v6929_v14, %v6930_v1  ;;  %v3848_v28 = vsel %vm579_vm0, %v6934_v55, %v6935_v22 }
 0xab6   : > { %v6938_v10 = vpop.permute.xlu1 %6937  ;;  %v5879_v57 = vpack.c.bf16 %v3848_v28, %v3846_v20 }
 0xab7   : > { %v6940_v11 = vunpack.i.h.bf16 %v6938_v10  ;;  %v6939_v12 = vunpack.i.l.bf16 %v6938_v10 }
 0xab8   : > { %5880 = vmatprep.subr.bf16.mxu0 %v5879_v57 }
 0xab9   : > { %v3845_v9 = vsel %vm579_vm0, %v6939_v12, %v6929_v14  ;;  %v3847_v43 = vsel %vm579_vm0, %v6940_v11, %v6934_v55 }
 0xaba   : > { %v5881_v6 = vpack.c.bf16 %v3847_v43, %v3845_v9 }
 0xabc   : > { %5882 = vmatpush1.bf16.msra.mxu0 %v5881_v6 }
 0xabf   : > { %4022 = vmatmul.mubr.f32.vlgmr.msra.gmra.mrb[12].mxu0 %v3497_v37 }
 0xac0   : > { %5613 = vmatprep.mubr.msk.f32.mxu0 %vm645_vm6, %v3500_v29 }
 0xac3   : > { %4028 = vmatmul.mubr.f32.gmra.mrb[14].mxu0 %v3499_v59  ;;  %v8881_v47 = vpop.permute.xlu0 %3925 }
 0xac4   : > { %5614 = vmatprep.mubr.msk.f32.mxu0 %vm645_vm6, %v3502_v21 }
 0xac7   : > { %4034 = vmatmul.mubr.f32.gmra.mrb[16].mxu0 %v3501_v7  ;;  %v8883_v54 = vpop.permute.xlu1 %3930  ;;  %v3916_v56 = vpop.permute.xlu0 %3915 }
 0xac8   : > { %5615 = vmatprep.mubr.msk.f32.mxu0 %vm645_vm6, %v3504_v35 }
 0xacb   : > { %4040 = vmatmul.mubr.f32.gmra.mrb[18].mxu0 %v3503_v63  ;;  %v3921_v3 = vpop.permute.xlu1 %3920  ;;  %v3906_v24 = vpop.permute.xlu0 %3905 }
 0xacc   : > { %5616 = vmatprep.mubr.msk.f32.mxu0 %vm645_vm6, %v3506_v15 }
 0xacf   : > { %4046 = vmatmul.mubr.f32.gmra.mrb[20].mxu0 %v3505_v30  ;;  %v3911_v17 = vpop.permute.xlu1 %3910  ;;  %v3896_v40 = vpop.permute.xlu0 %3895 }
 0xad0   : > { %5617 = vmatprep.mubr.msk.f32.mxu0 %vm645_vm6, %v3508_v53 }
 0xad3   : > { %4052 = vmatmul.mubr.f32.gmra.mrb[22].mxu0 %v3507_v49  ;;  %v3901_v36 = vpop.permute.xlu1 %3900 }
 0xad4   : > { %5618 = vmatprep.mubr.msk.f32.mxu0 %vm645_vm6, %v3510_v51 }
 0xad7   : > { %4058 = vmatmul.mubr.f32.gmra.mrb[24].mxu0 %v3509_v33 }
 0xad8   : > { %5619 = vmatprep.mubr.msk.f32.mxu0 %vm645_vm6, %v3512_v23 }
 0xadb   : > { %4064 = vmatmul.mubr.f32.gmra.mrb[26].mxu0 %v3511_v32 }
 0xb92   : > { %v4023_v41 = vpop.f32.mrb[12].mxu0 }
 0xb93   : > { %v4025_v16 = vpop.f32.mrb[13].mxu0  ;;  %v4024_v46 = vadd.f32 %v4023_v41, %v3896_v40 }
 0xb94   : > { %v8885_v18 = vadd.f32 %v4025_v16, %v3896_v40 }
 0xb95   : > { %v4575_v45 = vmul.f32 %v4024_v46, %v7743_v58  ;;  %v8896_v60 = vmul.f32 %v4024_v46, %v7798_v27 }
 0xb96   : > { %v4029_v39 = vpop.f32.mrb[14].mxu0  ;;  %v4576_v50 = vmul.f32 %v8885_v18, %v7756_v0 }
 0xb97   : > { %v4030_v2 = vadd.f32 %v4029_v39, %v3901_v36  ;;  %v4031_v5 = vpop.f32.mrb[15].mxu0 }
 0xb98   : > { %v8889_v62 = vadd.f32 %v4031_v5, %v3901_v36  ;;  %v8892_v44 = vpack.i.bf16 %v7773_v8, %v4576_v50 }
 0xb99   : > { %v4578_v1 = vmul.f32 %v4030_v2, %v7743_v58  ;;  %v8899_v14 = vpack.i.bf16 %v4030_v2, %v4024_v46  ;;  %v8902_v22 = vmul.f32 %v4030_v2, %v7798_v27  ;;  %v8922_v6 = vpack.c.bf16 %v4030_v2, %v4024_v46 }
 0xb9a   : > { %v4035_v55 = vpop.f32.mrb[16].mxu0  ;;  %6977 = vrot.lane.b32.xlu1 %v8892_v44, %s7416_s25  ;;  %v4579_v20 = vmul.f32 %v8889_v62, %v7756_v0  ;;  %v8910_v28 = vpack.c.bf16 %v8889_v62, %v8885_v18 }
 0xb9b   : > { %v4036_v10 = vadd.f32 %v4035_v55, %v3906_v24  ;;  %v4037_v57 = vpop.f32.mrb[17].mxu0  ;;  %v8912_v11 = vpack.i.bf16 %v4578_v1, %v4575_v45  ;;  %v7236_v12 = vpack.i.bf16 %v8902_v22, %v8896_v60 }
 0xb9c   : > { %v8916_v27 = vadd.f32 %v4037_v57, %v3906_v24  ;;  %v8919_v9 = vpack.i.bf16 %v7773_v8, %v4579_v20 }
 0xb9d   : > { %v4209_v43 = vmul.f32 %v4036_v10, %v7733_v52  ;;  %v8935_v63 = vmul.f32 %v4036_v10, %v7765_v4 }
 0xb9e   : > { %v4041_v37 = vpop.f32.mrb[18].mxu0  ;;  %6987 = vrot.lane.b32.xlu0 %v8919_v9, %s7416_s25  ;;  %6982 = vrot.lane.b32.xlu1 %v8912_v11, %s7416_s25  ;;  %v4210_v29 = vmul.f32 %v8916_v27, %v7723_v48 }
 0xb9f   : > { %v4042_v59 = vadd.f32 %v4041_v37, %v3911_v17  ;;  %v4043_v21 = vpop.f32.mrb[19].mxu0 }
 0xba0   : > { %v8930_v7 = vadd.f32 %v4043_v21, %v3911_v17  ;;  %v8932_v35 = vpack.i.bf16 %v4210_v29, %v4209_v43 }
 0xba1   : > { %v4212_v15 = vmul.f32 %v4042_v59, %v7733_v52  ;;  %v8939_v30 = vmul.f32 %v4042_v59, %v7765_v4  ;;  %v8941_v53 = vpack.i.bf16 %v4042_v59, %v4036_v10  ;;  %v8953_v4 = vpack.c.bf16 %v4042_v59, %v4036_v10 }
 0xba2   : > { %v4047_v49 = vpop.f32.mrb[20].mxu0  ;;  %6992 = vrot.lane.b32.xlu0 %v8932_v35, %s7417_s12  ;;  %v4213_v51 = vmul.f32 %v8930_v7, %v7723_v48  ;;  %v8949_v33 = vpack.c.bf16 %v8930_v7, %v8916_v27 }
 0xba3   : > { %v4048_v23 = vadd.f32 %v4047_v49, %v3916_v56  ;;  %v4049_v32 = vpop.f32.mrb[21].mxu0  ;;  %v7166_v24 = vpack.i.bf16 %v8939_v30, %v8935_v63  ;;  %v9067_v63 = vpop.permute.xlu0 %6942  ;;  %v5320_v30 = vmul.f32 %v8885_v18, %v7810_v31 }
 0xba4   : > { %v4050_v17 = vadd.f32 %v4049_v32, %v3916_v56  ;;  %v8955_v41 = vpack.i.bf16 %v4213_v51, %v4212_v15 }
 0xba5   : > { %v4518_v40 = vmul.f32 %v4048_v23, %v7712_v42  ;;  %v4633_v55 = vmul.f32 %v4048_v23, %v7743_v58 }
 0xba6   : > { %v4053_v16 = vpop.f32.mrb[22].mxu0  ;;  %6997 = vrot.lane.b32.xlu1 %v8955_v41, %s7417_s12  ;;  %v7001_v46 = vpack.i.bf16 %v4050_v17, %v4048_v23  ;;  %v4519_v36 = vmul.f32 %v4050_v17, %v7704_v38  ;;  %v4634_v39 = vmul.f32 %v4050_v17, %v7756_v0 }
 0xba7   : > { %v4054_v50 = vadd.f32 %v4053_v16, %v3921_v3  ;;  %v4055_v2 = vpop.f32.mrb[23].mxu0 }
 0xba8   : > { %v4056_v5 = vadd.f32 %v4055_v2, %v3921_v3  ;;  %7002 = vrot.lane.b32.xlu0 %v7001_v46, %s7420_s17  ;;  %v7011_v45 = vpack.i.bf16 %v4519_v36, %v4518_v40  ;;  %v8964_v56 = vpack.i.bf16 %v7773_v8, %v4634_v39 }
 0xba9   : > { %v4521_v1 = vmul.f32 %v4054_v50, %v7712_v42  ;;  %v4636_v20 = vmul.f32 %v4054_v50, %v7743_v58  ;;  %v8969_v10 = vpack.c.bf16 %v4054_v50, %v4048_v23 }
 0xbaa   : > { %v4059_v57 = vpop.f32.mrb[24].mxu0  ;;  %v7016_v43 = vpack.i.bf16 %v4056_v5, %v4054_v50  ;;  %v4522_v37 = vmul.f32 %v4056_v5, %v7704_v38  ;;  %v4637_v3 = vmul.f32 %v4056_v5, %v7756_v0  ;;  %v8974_v15 = vpack.c.bf16 %v4056_v5, %v4050_v17 }
 0xbab   : > { %v4060_v29 = vadd.f32 %v4059_v57, %v8881_v47  ;;  %v4061_v59 = vpop.f32.mrb[25].mxu0  ;;  %v7081_v21 = vpack.i.bf16 %v4636_v20, %v4633_v55 }
 0xbac   : > { %v4062_v42 = vadd.f32 %v4061_v59, %v8881_v47  ;;  %7007 = vrot.lane.b32.xlu0 %v7001_v46, %s7420_s17  ;;  %7017 = vrot.lane.b32.xlu1 %v7016_v43, %s7420_s17  ;;  %v7026_v58 = vpack.i.bf16 %v4522_v37, %v4521_v1  ;;  %v7136_v38 = vpack.i.bf16 %v7773_v8, %v4637_v3 }
 0xbad   : > { %v4095_v49 = vmul.f32 %v4060_v29, %v7694_v26  ;;  %v4267_v51 = vmul.f32 %v4060_v29, %v7733_v52 }
 0xbae   : > { %v4065_v0 = vpop.f32.mrb[26].mxu0  ;;  %v7031_v23 = vpack.i.bf16 %v4062_v42, %v4060_v29  ;;  %v4096_v32 = vmul.f32 %v4062_v42, %v7688_v25  ;;  %v4268_v17 = vmul.f32 %v4062_v42, %v7723_v48 }
 0xbaf   : > { %v4066_v40 = vadd.f32 %v4065_v0, %v8883_v54  ;;  %v4067_v47 = vpop.f32.mrb[27].mxu0 }
 0xbb0   : > { %v4068_v16 = vadd.f32 %v4067_v47, %v8883_v54  ;;  %7012 = vrot.lane.b32.xlu0 %v7011_v45, %s7418_s21  ;;  %7022 = vrot.lane.b32.xlu1 %v7016_v43, %s7420_s17  ;;  %v7041_v46 = vpack.i.bf16 %v4096_v32, %v4095_v49  ;;  %v7051_v36 = vpack.i.bf16 %v4268_v17, %v4267_v51 }
 0xbb1   : > { %v4098_v39 = vmul.f32 %v4066_v40, %v7694_v26  ;;  %v4270_v8 = vmul.f32 %v4066_v40, %v7733_v52  ;;  %v8990_v50 = vpack.c.bf16 %v4066_v40, %v4060_v29  ;;  %v4908_v52 = vmul.f32 %v8930_v7, %v7783_v13 }
 0xbb2   : > { %v7056_v2 = vpack.i.bf16 %v4068_v16, %v4066_v40  ;;  %v4099_v5 = vmul.f32 %v4068_v16, %v7688_v25  ;;  %v4271_v1 = vmul.f32 %v4068_v16, %v7723_v48  ;;  %v8994_v55 = vpack.c.bf16 %v4068_v16, %v4062_v42  ;;  %v9018_v25 = vld [vmem:[#allocation10] sm:$0x77] }
 0xbb3   : > { %v9022_v26 = vcombine.high %v9018_v25, %v9018_v25  ;;  %v4905_v48 = vmul.f32 %v8916_v27, %v7783_v13 }
 0xbb4   : > { %7032 = vrot.lane.b32.xlu0 %v7031_v23, %s7420_s17  ;;  %7027 = vrot.lane.b32.xlu1 %v7026_v58, %s7418_s21  ;;  %v7066_v54 = vpack.i.bf16 %v4099_v5, %v4098_v39  ;;  %v7126_v45 = vpack.i.bf16 %v4271_v1, %v4270_v8 }
 0xbb5   : > { %5621 = vmatprep.mubr.msk.f32.mxu0 %vm645_vm6, %v9022_v26  ;;  %5620 = vmatprep.mubr.msk.f32.mxu1 %vm645_vm6, %v9022_v26 }
 0xbb8   : > { %7037 = vrot.lane.b32.xlu0 %v7031_v23, %s7420_s17  ;;  %7057 = vrot.lane.b32.xlu1 %v7056_v2, %s7420_s17 }
 0xbbc   : > { %7042 = vrot.lane.b32.xlu0 %v7041_v46, %s7419_s16  ;;  %7062 = vrot.lane.b32.xlu1 %v7056_v2, %s7420_s17 }
 0xbc0   : > { %7047 = vrot.lane.b32.xlu0 %v7748_v61, %s7417_s12  ;;  %7067 = vrot.lane.b32.xlu1 %v7066_v54, %s7419_s16  ;;  %s9356_s16 = sld [smem:[#allocation17_spill]] }
 0xbc4   : > { %7052 = vrot.lane.b32.xlu0 %v7051_v36, %s7417_s12  ;;  %7072 = vrot.lane.b32.xlu1 %v8964_v56, %s7416_s25 }
 0xbc8   : > { %7077 = vrot.lane.b32.xlu0 %v7136_v38, %s7416_s25  ;;  %7082 = vrot.lane.b32.xlu1 %v7081_v21, %s7416_s25 }
 0xbcc   : > { %7087 = vrot.lane.b32.xlu0 %v8932_v35, %s7417_s12  ;;  %7092 = vrot.lane.b32.xlu1 %v8955_v41, %s7417_s12  ;;  %v9077_v41 = vpop.permute.xlu0 %6952 }
 0xbd0   : > { %7097 = vrot.lane.b32.xlu0 %v7748_v61, %s7417_s12  ;;  %7102 = vrot.lane.b32.xlu1 %v8892_v44, %s7416_s25  ;;  %v7146_v44 = vpack.i.bf16 %v7792_v19, %v4905_v48 }
 0xbd4   : > { %7107 = vrot.lane.b32.xlu0 %v8919_v9, %s7416_s25  ;;  %7112 = vrot.lane.b32.xlu1 %v8912_v11, %s7416_s25  ;;  %v7151_v11 = vpack.i.bf16 %v7792_v19, %v4908_v52 }
 0xbd8   : > { %7117 = vrot.lane.b32.xlu0 %v7051_v36, %s7417_s12  ;;  %7127 = vrot.lane.b32.xlu1 %v7126_v45, %s7417_s12 }
 0xbdc   : > { %7122 = vrot.lane.b32.xlu0 %v7748_v61, %s7417_s12  ;;  %7132 = vrot.lane.b32.xlu1 %v8964_v56, %s7416_s25  ;;  %v7244_v61 = vld [vmem:[#allocation2] sm:$0xff] }
 0xbdd   : > { %v7156_v9 = vpack.i.bf16 %v7244_v61, %v8885_v18  ;;  %v7161_v35 = vpack.i.bf16 %v7244_v61, %v8889_v62  ;;  %v7191_v13 = vpack.i.bf16 %v7244_v61, %v8916_v27  ;;  %v7196_v19 = vpack.i.bf16 %v7244_v61, %v8930_v7  ;;  %v4087_v18 = vld [vmem:[%s9335_s8] sm:$0x7] }
 0xbde   : > { %v7221_v27 = vpack.i.bf16 %v7818_v34, %v5320_v30  ;;  %v5323_v7 = vmul.f32 %v8889_v62, %v7810_v31  ;;  %v9088_v31 = vpop.permute.xlu0 %6962 }
 0xbe0   : > { %7137 = vrot.lane.b32.xlu0 %v7136_v38, %s7416_s25  ;;  %7142 = vrot.lane.b32.xlu1 %v7081_v21, %s7416_s25 }
 0xbe4   : > { %7147 = vrot.lane.b32.xlu0 %v7146_v44, %s7415_s27  ;;  %7152 = vrot.lane.b32.xlu1 %v7151_v11, %s7415_s27 }
 0xbe8   : > { %7157 = vrot.lane.b32.xlu0 %v7156_v9, %s7422_s14  ;;  %7162 = vrot.lane.b32.xlu1 %v7161_v35, %s7422_s14 }
 0xbec   : > { %7167 = vrot.lane.b32.xlu0 %v7166_v24, %s7415_s27  ;;  %7172 = vrot.lane.b32.xlu1 %v8899_v14, %s7422_s14  ;;  %v6948_v24 = vpop.permute.xlu1 %6947 }
 0xbed   : > { %v6950_v22 = vunpack.i.h.bf16 %v6948_v24 }
 0xbf0   : > { %7177 = vrot.lane.b32.xlu0 %v7156_v9, %s7422_s14  ;;  %7182 = vrot.lane.b32.xlu1 %v7126_v45, %s7417_s12  ;;  %v6958_v56 = vpop.permute.xlu1 %6957 }
 0xbf1   : > { %v6960_v2 = vunpack.i.h.bf16 %v6958_v56  ;;  %v6959_v5 = vunpack.i.l.bf16 %v6958_v56 }
 0xbf4   : > { %7192 = vrot.lane.b32.xlu0 %v7191_v13, %s7422_s14  ;;  %7187 = vrot.lane.b32.xlu1 %v7161_v35, %s7422_s14  ;;  %v9094_v62 = vpop.permute.xlu1 %6967 }
 0xbf8   : > { %7202 = vrot.lane.b32.xlu0 %v8899_v14, %s7422_s14  ;;  %7197 = vrot.lane.b32.xlu1 %v7196_v19, %s7422_s14  ;;  %v7226_v14 = vpack.i.bf16 %v7818_v34, %v5323_v7  ;;  %v9096_v34 = vpop.permute.xlu0 %6972 }
 0xbfc   : > { %7212 = vrot.lane.b32.xlu0 %v7191_v13, %s7422_s14  ;;  %7207 = vrot.lane.b32.xlu1 %v8941_v53, %s7422_s14 }
 0xc00   : > { %7222 = vrot.lane.b32.xlu0 %v7221_v27, %s7413_s30  ;;  %7217 = vrot.lane.b32.xlu1 %v7196_v19, %s7422_s14  ;;  %v6970_v19 = vunpack.i.h.bf16 %v9094_v62 }
 0xc04   : > { %7232 = vrot.lane.b32.xlu0 %v8941_v53, %s7422_s14  ;;  %7227 = vrot.lane.b32.xlu1 %v7226_v14, %s7413_s30  ;;  %v6945_v14 = vunpack.i.h.bf16 %v9067_v63 }
 0xc08   : > { %4356 = vperm.xlu0 %6099, %v4087_v18   ;;  %7237 = vrot.lane.b32.xlu1 %v7236_v12, %s7413_s30  ;;  %v6949_v12 = vunpack.i.l.bf16 %v6948_v24  ;;  %v6969_v18 = vunpack.i.l.bf16 %v9094_v62  ;;  %s5630_s30 = sshll.u32 %s9359_s22, 5 }
 0xc09   : > { %s482_s17 = scalar_lea.vmem %s9356_s16, %s5630_s30 }
 0xc0c   : > { %v9098_v53 = vpop.permute.xlu1 %6977 }
 0xc10   : > { %v9100_v20 = vpop.permute.xlu0 %6987  ;;  %v9102_v57 = vpop.permute.xlu1 %6982 }
 0xc11   : > { %v6990_v62 = vunpack.i.h.bf16 %v9100_v20 }
 0xc14   : > { %v9104_v43 = vpop.permute.xlu0 %6992 }
 0xc18   : > { %v9106_v37 = vpop.permute.xlu1 %6997 }
 0xc1a   : > { %v7003_v3 = vpop.permute.xlu0 %7002 }
 0xc1b   : > { %v7005_v29 = vunpack.i.h.bf16 %v7003_v3  ;;  %v7004_v59 = vunpack.i.l.bf16 %v7003_v3 }
 0xc1d   : > { %v4463_v49 = vsel %vm645_vm6, %v6949_v12, %v7004_v59  ;;  %v4464_v38 = vsel %vm645_vm6, %v7004_v59, %v7005_v29  ;;  %v6955_v12 = vunpack.i.h.bf16 %v9077_v41 }
 0xc1e   : > { %v9108_v21 = vpop.permute.xlu0 %7007  ;;  %v7018_v60 = vpop.permute.xlu1 %7017 }
 0xc1f   : > { %v7020_v42 = vunpack.i.h.bf16 %v7018_v60  ;;  %v7019_v58 = vunpack.i.l.bf16 %v7018_v60 }
 0xc21   : > { %v4465_v51 = vsel %vm645_vm6, %v6950_v22, %v7019_v58  ;;  %v4466_v0 = vsel %vm645_vm6, %v7019_v58, %v7020_v42  ;;  %v6944_v22 = vunpack.i.l.bf16 %v9067_v63 }
 0xc22   : > { %v5921_v23 = vpack.c.bf16 %v4465_v51, %v4463_v49  ;;  %v7013_v32 = vpop.permute.xlu0 %7012  ;;  %v9114_v17 = vpop.permute.xlu1 %7022  ;;  %v5919_v40 = vpack.c.bf16 %v4466_v0, %v4464_v38  ;;  %v6980_v49 = vunpack.i.h.bf16 %v9098_v53  ;;  %v7010_v51 = vunpack.i.h.bf16 %v9108_v21 }
 0xc23   : > { %v7015_v45 = vunpack.i.h.bf16 %v7013_v32  ;;  %v7014_v48 = vunpack.i.l.bf16 %v7013_v32  ;;  %v7025_v3 = vunpack.i.h.bf16 %v9114_v17  ;;  %v7024_v29 = vunpack.i.l.bf16 %v9114_v17 }
 0xc24   : > { %5920 = vmatprep.subr.bf16.mxu0 %v5919_v40  ;;  %v7009_v32 = vunpack.i.l.bf16 %v9108_v21 }
 0xc25   : > { %5922 = vmatpush1.bf16.msra.mxu0 %v5921_v23  ;;  %v4542_v56 = vsel %vm717_vm4, %v7014_v48, %v7015_v45  ;;  %v4541_v38 = vsel %vm717_vm4, %v6969_v18, %v7014_v48 }
 0xc26   : > { %v7033_v47 = vpop.permute.xlu0 %7032  ;;  %v7028_v16 = vpop.permute.xlu1 %7027 }
 0xc27   : > { %v7034_v46 = vunpack.i.l.bf16 %v7033_v47  ;;  %v7035_v36 = vunpack.i.h.bf16 %v7033_v47  ;;  %v7030_v39 = vunpack.i.h.bf16 %v7028_v16  ;;  %v7029_v8 = vunpack.i.l.bf16 %v7028_v16 }
 0xc28   : > { %v6989_v47 = vunpack.i.l.bf16 %v9100_v20 }
 0xc29   : > { %v4499_v11 = vsel %vm645_vm6, %v6959_v5, %v7034_v46  ;;  %v4500_v9 = vsel %vm645_vm6, %v7034_v46, %v7035_v36  ;;  %v4544_v13 = vsel %vm717_vm4, %v7029_v8, %v7030_v39  ;;  %v4543_v59 = vsel %vm717_vm4, %v6970_v19, %v7029_v8 }
 0xc2a   : > { %v9116_v1 = vpop.permute.xlu0 %7037  ;;  %v7058_v54 = vpop.permute.xlu1 %7057  ;;  %v5927_v60 = vpack.c.bf16 %v4544_v13, %v4542_v56  ;;  %v5929_v63 = vpack.c.bf16 %v4543_v59, %v4541_v38  ;;  %v4157_v36 = vsel %vm645_vm6, %v7024_v29, %v7025_v3  ;;  %v6979_v5 = vunpack.i.l.bf16 %v9098_v53 }
 0xc2b   : > { %v7060_v52 = vunpack.i.h.bf16 %v7058_v54  ;;  %v7059_v44 = vunpack.i.l.bf16 %v7058_v54  ;;  %v6985_v54 = vunpack.i.h.bf16 %v9102_v57  ;;  %v6965_v53 = vunpack.i.h.bf16 %v9088_v31 }
 0xc2c   : > { %v4156_v13 = vsel %vm645_vm6, %v6955_v12, %v7024_v29  ;;  %v6995_v56 = vunpack.i.h.bf16 %v9104_v43  ;;  %v6994_v3 = vunpack.i.l.bf16 %v9104_v43 }
 0xc2d   : > { %v4501_v61 = vsel %vm645_vm6, %v6960_v2, %v7059_v44  ;;  %v4502_v35 = vsel %vm645_vm6, %v7059_v44, %v7060_v52  ;;  %v6954_v44 = vunpack.i.l.bf16 %v9077_v41 }
 0xc2e   : > { %v5925_v30 = vpack.c.bf16 %v4501_v61, %v4499_v11  ;;  %v7043_v27 = vpop.permute.xlu0 %7042  ;;  %v9124_v7 = vpop.permute.xlu1 %7062  ;;  %v5923_v24 = vpack.c.bf16 %v4502_v35, %v4500_v9  ;;  %v7040_v11 = vunpack.i.h.bf16 %v9116_v1  ;;  %v7039_v61 = vunpack.i.l.bf16 %v9116_v1 }
 0xc2f   : > { %v7045_v42 = vunpack.i.h.bf16 %v7043_v27  ;;  %v7044_v58 = vunpack.i.l.bf16 %v7043_v27  ;;  %v7065_v16 = vunpack.i.h.bf16 %v9124_v7  ;;  %v7064_v46 = vunpack.i.l.bf16 %v9124_v7 }
 0xc30   : > { %5924 = vmatprep.subr.bf16.mxu0 %v5923_v24  ;;  %v4155_v9 = vsel %vm645_vm6, %v7009_v32, %v7010_v51  ;;  %v6984_v35 = vunpack.i.l.bf16 %v9102_v57  ;;  %v6999_v27 = vunpack.i.l.bf16 %v9106_v37  ;;  %v4602_v1 = vsel %vm740_vm2, %v6989_v47, %v6990_v62 }
 0xc31   : > { %5926 = vmatpush1.bf16.msra.mxu0 %v5925_v30  ;;  %v4118_v39 = vsel %vm608_vm5, %v6944_v22, %v7044_v58  ;;  %v4119_v2 = vsel %vm608_vm5, %v7044_v58, %v7045_v42  ;;  %v5887_v19 = vpack.c.bf16 %v4157_v36, %v4155_v9  ;;  %v7000_v30 = vunpack.i.h.bf16 %v9106_v37 }
 0xc32   : > { %v9138_v0 = vpop.permute.xlu0 %7047  ;;  %v7068_v23 = vpop.permute.xlu1 %7067  ;;  %5928 = vmatprep.subr.bf16.mxu0 %v5927_v60  ;;  %v4193_v41 = vsel %vm645_vm6, %v7064_v46, %v7065_v16  ;;  %v6964_v7 = vunpack.i.l.bf16 %v9088_v31  ;;  %v4601_v24 = vsel %vm740_vm2, %v6985_v54, %v6989_v47  ;;  %v4154_v57 = vsel %vm645_vm6, %v6954_v44, %v7009_v32 }
 0xc33   : > { %v7070_v17 = vunpack.i.h.bf16 %v7068_v23  ;;  %v7069_v40 = vunpack.i.l.bf16 %v7068_v23  ;;  %v4600_v37 = vsel %vm740_vm2, %v6979_v5, %v6980_v49  ;;  %v5889_v29 = vpack.c.bf16 %v4156_v13, %v4154_v57 }
 0xc34   : > { %v4191_v59 = vsel %vm645_vm6, %v7039_v61, %v7040_v11  ;;  %v4599_v31 = vsel %vm740_vm2, %v6984_v35, %v6979_v5  ;;  %v4192_v60 = vsel %vm645_vm6, %v6965_v53, %v7064_v46  ;;  %v5939_v12 = vpack.c.bf16 %v4602_v1, %v4600_v37 }
 0xc35   : > { %v4120_v8 = vsel %vm608_vm5, %v6945_v14, %v7069_v40  ;;  %5930 = vmatpush1.bf16.msra.mxu0 %v5929_v63  ;;  %v4121_v21 = vsel %vm608_vm5, %v7069_v40, %v7070_v17  ;;  %v5891_v22 = vpack.c.bf16 %v4193_v41, %v4191_v59  ;;  %v4235_v42 = vsel %vm769_vm3, %v6999_v27, %v7000_v30 }
 0xc36   : > { %v5885_v20 = vpack.c.bf16 %v4120_v8, %v4118_v39  ;;  %v9151_v45 = vpop.permute.xlu0 %7052  ;;  %v9153_v48 = vpop.permute.xlu1 %7072  ;;  %5932 = vmatprep.subr.bf16.mxu0 %v8910_v28  ;;  %v5883_v52 = vpack.c.bf16 %v4121_v21, %v4119_v2  ;;  %v6975_v58 = vunpack.i.h.bf16 %v9096_v34  ;;  %v4190_v49 = vsel %vm645_vm6, %v6964_v7, %v7039_v61 }
 0xc37   : > { %v5941_v51 = vpack.c.bf16 %v4601_v24, %v4599_v31  ;;  %v5893_v38 = vpack.c.bf16 %v4192_v60, %v4190_v49  ;;  %v4233_v23 = vsel %vm769_vm3, %v6994_v3, %v6995_v56  ;;  %v6974_v32 = vunpack.i.l.bf16 %v9096_v34 }
 0xc38   : > { %5884 = vmatprep.subr.bf16.mxu1 %v5883_v52  ;;  %v4234_v63 = vsel %vm769_vm3, %v6975_v58, %v6999_v27  ;;  %v5895_v17 = vpack.c.bf16 %v4235_v42, %v4233_v23  ;;  %v7075_v8 = vunpack.i.h.bf16 %v9153_v48  ;;  %v7074_v34 = vunpack.i.l.bf16 %v9153_v48 }
 0xc39   : > { %5886 = vmatpush1.bf16.msra.mxu1 %v5885_v20  ;;  %5934 = vmatpush1.bf16.msra.mxu0 %v8922_v6  ;;  %v4232_v16 = vsel %vm769_vm3, %v6974_v32, %v6994_v3  ;;  %v7055_v52 = vunpack.i.h.bf16 %v9151_v45  ;;  %v7054_v11 = vunpack.i.l.bf16 %v9151_v45  ;;  %v7049_v53 = vunpack.i.l.bf16 %v9138_v0 }
 0xc3a   : > { %v7078_v14 = vpop.permute.xlu0 %7077  ;;  %v7083_v18 = vpop.permute.xlu1 %7082  ;;  %5888 = vmatprep.subr.bf16.mxu1 %v5887_v19  ;;  %5936 = vmatprep.subr.bf16.mxu0 %v8949_v33  ;;  %v5897_v39 = vpack.c.bf16 %v4234_v63, %v4232_v16  ;;  %v4658_v44 = vsel %vm740_vm2, %v7074_v34, %v7075_v8  ;;  %v7050_v19 = vunpack.i.h.bf16 %v9138_v0 }
 0xc3b   : > { %v7080_v40 = vunpack.i.h.bf16 %v7078_v14  ;;  %v7079_v47 = vunpack.i.l.bf16 %v7078_v14  ;;  %v7085_v2 = vunpack.i.h.bf16 %v7083_v18  ;;  %v7084_v21 = vunpack.i.l.bf16 %v7083_v18 }
 0xc3c   : > { %v4290_v41 = vsel %vm769_vm3, %v7049_v53, %v7054_v11  ;;  %v4291_v1 = vsel %vm769_vm3, %v7054_v11, %v7055_v52 }
 0xc3d   : > { %5890 = vmatpush1.bf16.msra.mxu1 %v5889_v29  ;;  %5938 = vmatpush1.bf16.msra.mxu0 %v8953_v4  ;;  %v4660_v5 = vsel %vm740_vm2, %v7079_v47, %v7080_v40  ;;  %v4659_v48 = vsel %vm740_vm2, %v7085_v2, %v7079_v47  ;;  %v4657_v61 = vsel %vm740_vm2, %v7084_v21, %v7074_v34 }
 0xc3e   : > { %v9182_v62 = vpop.permute.xlu0 %7087  ;;  %v9184_v43 = vpop.permute.xlu1 %7092  ;;  %5892 = vmatprep.subr.bf16.mxu1 %v5891_v22  ;;  %5940 = vmatprep.subr.bf16.mxu0 %v5939_v12  ;;  %v5951_v9 = vpack.c.bf16 %v4660_v5, %v4658_v44  ;;  %v5953_v45 = vpack.c.bf16 %v4659_v48, %v4657_v61 }
 0xc3f   : > { %v7090_v18 = vunpack.i.h.bf16 %v9182_v62  ;;  %v7089_v0 = vunpack.i.l.bf16 %v9182_v62  ;;  %v7095_v59 = vunpack.i.h.bf16 %v9184_v43  ;;  %v7094_v31 = vunpack.i.l.bf16 %v9184_v43 }
 0xc41   : > { %5894 = vmatpush1.bf16.msra.mxu1 %v5893_v38  ;;  %5942 = vmatpush1.bf16.msra.mxu0 %v5941_v51  ;;  %v4813_v38 = vsel %vm769_vm3, %v7089_v0, %v7090_v18  ;;  %v4815_v23 = vsel %vm769_vm3, %v7094_v31, %v7095_v59 }
 0xc42   : > { %v9190_v46 = vpop.permute.xlu0 %7097  ;;  %v9192_v36 = vpop.permute.xlu1 %7102  ;;  %5896 = vmatprep.subr.bf16.mxu1 %v5895_v17  ;;  %5944 = vmatprep.subr.bf16.mxu0 %v8974_v15 }
 0xc43   : > { %v7105_v60 = vunpack.i.h.bf16 %v9192_v36  ;;  %v7104_v22 = vunpack.i.l.bf16 %v9192_v36  ;;  %v7100_v43 = vunpack.i.h.bf16 %v9190_v46  ;;  %v7099_v32 = vunpack.i.l.bf16 %v9190_v46 }
 0xc45   : > { %5898 = vmatpush1.bf16.msra.mxu1 %v5897_v39  ;;  %5946 = vmatpush1.bf16.msra.mxu0 %v8969_v10  ;;  %v5172_v51 = vsel %vm740_vm2, %v7104_v22, %v7105_v60  ;;  %v5955_v39 = vpack.c.bf16 %v4815_v23, %v4813_v38  ;;  %v4812_v46 = vsel %vm769_vm3, %v7099_v32, %v7089_v0 }
 0xc46   : > { %v7108_v54 = vpop.permute.xlu0 %7107  ;;  %v7113_v20 = vpop.permute.xlu1 %7112  ;;  %5900 = vmatprep.subr.bf16.mxu1 %v8910_v28  ;;  %5948 = vmatprep.subr.bf16.mxu0 %v8994_v55  ;;  %v4814_v8 = vsel %vm769_vm3, %v7100_v43, %v7094_v31 }
 0xc47   : > { %v7110_v7 = vunpack.i.h.bf16 %v7108_v54  ;;  %v7109_v24 = vunpack.i.l.bf16 %v7108_v54  ;;  %v7115_v12 = vunpack.i.h.bf16 %v7113_v20  ;;  %v7114_v42 = vunpack.i.l.bf16 %v7113_v20 }
 0xc48   : > { %v5957_v54 = vpack.c.bf16 %v4814_v8, %v4812_v46 }
 0xc49   : > { %5902 = vmatpush1.bf16.msra.mxu1 %v8922_v6  ;;  %5950 = vmatpush1.bf16.msra.mxu0 %v8990_v50  ;;  %v5174_v58 = vsel %vm740_vm2, %v7109_v24, %v7110_v7  ;;  %v5173_v63 = vsel %vm740_vm2, %v7115_v12, %v7109_v24  ;;  %v5171_v17 = vsel %vm740_vm2, %v7114_v42, %v7104_v22 }
 0xc4a   : > { %v9209_v35 = vpop.permute.xlu0 %7117  ;;  %v7128_v13 = vpop.permute.xlu1 %7127  ;;  %5904 = vmatprep.subr.bf16.mxu1 %v8949_v33  ;;  %5952 = vmatprep.subr.bf16.mxu0 %v5951_v9  ;;  %v5999_v40 = vpack.c.bf16 %v5174_v58, %v5172_v51  ;;  %v6001_v36 = vpack.c.bf16 %v5173_v63, %v5171_v17 }
 0xc4b   : > { %v7130_v30 = vunpack.i.h.bf16 %v7128_v13  ;;  %v7129_v27 = vunpack.i.l.bf16 %v7128_v13 }
 0xc4d   : > { %v4292_v57 = vsel %vm769_vm3, %v7050_v19, %v7129_v27  ;;  %5906 = vmatpush1.bf16.msra.mxu1 %v8953_v4  ;;  %5954 = vmatpush1.bf16.msra.mxu0 %v5953_v45  ;;  %v4293_v14 = vsel %vm769_vm3, %v7129_v27, %v7130_v30  ;;  %v7120_v30 = vunpack.i.h.bf16 %v9209_v35  ;;  %v7119_v27 = vunpack.i.l.bf16 %v9209_v35 }
 0xc4e   : > { %v5909_v37 = vpack.c.bf16 %v4292_v57, %v4290_v41  ;;  %v9220_v56 = vpop.permute.xlu0 %7122  ;;  %v9222_v3 = vpop.permute.xlu1 %7132  ;;  %5992 = vmatprep.subr.bf16.mxu0 %v8910_v28  ;;  %v5907_v29 = vpack.c.bf16 %v4293_v14, %v4291_v1 }
 0xc4f   : > { %v7135_v20 = vunpack.i.h.bf16 %v9222_v3  ;;  %v7134_v52 = vunpack.i.l.bf16 %v9222_v3  ;;  %v7124_v1 = vunpack.i.l.bf16 %v9220_v56  ;;  %v4871_v60 = vsel %vm769_vm3, %v7119_v27, %v7120_v30 }
 0xc50   : > { %5908 = vmatprep.subr.bf16.mxu1 %v5907_v29  ;;  %4770 = vmatmul.mubr.f32.vlgmr.msra.gmra.mrb[28].mxu0 %v9018_v25 }
 0xc51   : > { %5910 = vmatpush1.bf16.msra.mxu1 %v5909_v37  ;;  %5994 = vmatpush1.bf16.msra.mxu0 %v8922_v6  ;;  %v5230_v41 = vsel %vm740_vm2, %v7134_v52, %v7135_v20  ;;  %v7125_v37 = vunpack.i.h.bf16 %v9220_v56  ;;  %v4870_v59 = vsel %vm769_vm3, %v7124_v1, %v7119_v27 }
 0xc52   : > { %v7138_v49 = vpop.permute.xlu0 %7137  ;;  %v7143_v62 = vpop.permute.xlu1 %7142  ;;  %5912 = vmatprep.subr.bf16.mxu1 %v8974_v15  ;;  %5996 = vmatprep.subr.bf16.mxu0 %v8949_v33 }
 0xc53   : > { %5625 = vmatprep.mubr.msk.f32.mxu0 %vm645_vm6, %v9022_v26  ;;  %v7140_v34 = vunpack.i.h.bf16 %v7138_v49  ;;  %v7139_v2 = vunpack.i.l.bf16 %v7138_v49  ;;  %v7145_v44 = vunpack.i.h.bf16 %v7143_v62  ;;  %v7144_v11 = vunpack.i.l.bf16 %v7143_v62 }
 0xc55   : > { %5914 = vmatpush1.bf16.msra.mxu1 %v8969_v10  ;;  %5998 = vmatpush1.bf16.msra.mxu0 %v8953_v4  ;;  %v5232_v48 = vsel %vm740_vm2, %v7139_v2, %v7140_v34  ;;  %v5231_v7 = vsel %vm740_vm2, %v7145_v44, %v7139_v2  ;;  %v5229_v24 = vsel %vm740_vm2, %v7144_v11, %v7134_v52 }
 0xc56   : > { %v9245_v47 = vpop.permute.xlu0 %7147  ;;  %v9247_v16 = vpop.permute.xlu1 %7152  ;;  %5916 = vmatprep.subr.bf16.mxu1 %v8994_v55  ;;  %6000 = vmatprep.subr.bf16.mxu0 %v5999_v40  ;;  %v6011_v57 = vpack.c.bf16 %v5232_v48, %v5230_v41  ;;  %v6013_v31 = vpack.c.bf16 %v5231_v7, %v5229_v24 }
 0xc57   : > { %v7150_v43 = vunpack.i.h.bf16 %v9245_v47  ;;  %v7149_v51 = vunpack.i.l.bf16 %v9245_v47  ;;  %v7155_v38 = vunpack.i.h.bf16 %v9247_v16  ;;  %v7154_v23 = vunpack.i.l.bf16 %v9247_v16 }
 0xc59   : > { %5918 = vmatpush1.bf16.msra.mxu1 %v8990_v50  ;;  %6002 = vmatpush1.bf16.msra.mxu0 %v6001_v36  ;;  %v4929_v16 = vsel %vm688_vm1, %v7149_v51, %v7150_v43  ;;  %v4931_v34 = vsel %vm688_vm1, %v7154_v23, %v7155_v38 }
 0xc5a   : > { %v7158_v21 = vpop.permute.xlu0 %7157  ;;  %v7163_v5 = vpop.permute.xlu1 %7162  ;;  %5956 = vmatprep.subr.bf16.mxu1 %v5955_v39  ;;  %6004 = vmatprep.subr.bf16.mxu0 %v8974_v15 }
 0xc5b   : > { %v7160_v61 = vunpack.i.h.bf16 %v7158_v21  ;;  %v7159_v9 = vunpack.i.l.bf16 %v7158_v21  ;;  %v7165_v53 = vunpack.i.h.bf16 %v7163_v5  ;;  %v7164_v13 = vunpack.i.l.bf16 %v7163_v5 }
 0xc5c   : > { %4428 = vmatmul.mubr.f32.vlgmr.msra.gmra.mrb[12].mxu1 %v9018_v25 }
 0xc5d   : > { %5958 = vmatpush1.bf16.msra.mxu1 %v5957_v54  ;;  %6006 = vmatpush1.bf16.msra.mxu0 %v8969_v10  ;;  %v5266_v18 = vsel %vm914_vm7, %v7159_v9, %v7160_v61  ;;  %v5268_v35 = vsel %vm914_vm7, %v7164_v13, %v7165_v53 }
 0xc5e   : > { %v9259_v19 = vpop.permute.xlu0 %7167  ;;  %v7173_v45 = vpop.permute.xlu1 %7172  ;;  %5960 = vmatprep.subr.bf16.mxu1 %v8910_v28  ;;  %6008 = vmatprep.subr.bf16.mxu0 %v8994_v55 }
 0xc5f   : > { %5623 = vmatprep.mubr.msk.f32.mxu1 %vm645_vm6, %v9022_v26  ;;  %v7175_v14 = vunpack.i.h.bf16 %v7173_v45  ;;  %v7174_v28 = vunpack.i.l.bf16 %v7173_v45  ;;  %v7169_v32 = vunpack.i.l.bf16 %v9259_v19  ;;  %v7170_v40 = vunpack.i.h.bf16 %v9259_v19 }
 0xc61   : > { %5962 = vmatpush1.bf16.msra.mxu1 %v8922_v6  ;;  %6010 = vmatpush1.bf16.msra.mxu0 %v8990_v50  ;;  %v6015_v6 = vpack.c.bf16 %v5268_v35, %v5266_v18  ;;  %v5265_v22 = vsel %vm914_vm7, %v7174_v28, %v7159_v9  ;;  %v5267_v12 = vsel %vm914_vm7, %v7175_v14, %v7164_v13 }
 0xc62   : > { %v9275_v0 = vpop.permute.xlu0 %7177  ;;  %v7183_v26 = vpop.permute.xlu1 %7182  ;;  %5964 = vmatprep.subr.bf16.mxu1 %v8949_v33  ;;  %6012 = vmatprep.subr.bf16.mxu0 %v6011_v57  ;;  %v6017_v63 = vpack.c.bf16 %v5267_v12, %v5265_v22  ;;  %v4928_v8 = vsel %vm688_vm1, %v7169_v32, %v7149_v51  ;;  %v4930_v20 = vsel %vm688_vm1, %v7170_v40, %v7154_v23 }
 0xc63   : > { %v7185_v3 = vunpack.i.h.bf16 %v7183_v26  ;;  %v7184_v29 = vunpack.i.l.bf16 %v7183_v26  ;;  %v7179_v52 = vunpack.i.l.bf16 %v9275_v0  ;;  %v5981_v19 = vpack.c.bf16 %v4930_v20, %v4928_v8 }
 0xc65   : > { %v4872_v42 = vsel %vm769_vm3, %v7125_v37, %v7184_v29  ;;  %5966 = vmatpush1.bf16.msra.mxu1 %v8953_v4  ;;  %v4873_v33 = vsel %vm769_vm3, %v7184_v29, %v7185_v3  ;;  %6014 = vmatpush1.bf16.msra.mxu0 %v6013_v31 }
 0xc66   : > { %v5969_v56 = vpack.c.bf16 %v4872_v42, %v4870_v59  ;;  %v7193_v58 = vpop.permute.xlu0 %7192  ;;  %v7188_v49 = vpop.permute.xlu1 %7187  ;;  %v5967_v62 = vpack.c.bf16 %v4873_v33, %v4871_v60  ;;  %6016 = vmatprep.subr.bf16.mxu0 %v6015_v6 }
 0xc67   : > { %v7195_v4 = vunpack.i.h.bf16 %v7193_v58  ;;  %v7194_v17 = vunpack.i.l.bf16 %v7193_v58  ;;  %v7190_v2 = vunpack.i.h.bf16 %v7188_v49  ;;  %v7189_v21 = vunpack.i.l.bf16 %v7188_v49 }
 0xc68   : > { %5968 = vmatprep.subr.bf16.mxu1 %v5967_v62 }
 0xc69   : > { %5970 = vmatpush1.bf16.msra.mxu1 %v5969_v56  ;;  %6018 = vmatpush1.bf16.msra.mxu0 %v6017_v63  ;;  %v5302_v5 = vsel %vm914_vm7, %v7194_v17, %v7195_v4  ;;  %v4967_v27 = vsel %vm914_vm7, %v7189_v21, %v7190_v2 }
 0xc6a   : > { %v7203_v36 = vpop.permute.xlu0 %7202  ;;  %v7198_v39 = vpop.permute.xlu1 %7197  ;;  %5972 = vmatprep.subr.bf16.mxu1 %v8974_v15  ;;  %v7180_v15 = vunpack.i.h.bf16 %v9275_v0 }
 0xc6b   : > { %v7200_v47 = vunpack.i.h.bf16 %v7198_v39  ;;  %v7199_v46 = vunpack.i.l.bf16 %v7198_v39  ;;  %v7205_v61 = vunpack.i.h.bf16 %v7203_v36  ;;  %v7204_v9 = vunpack.i.l.bf16 %v7203_v36 }
 0xc6c   : > { %v4965_v57 = vsel %vm914_vm7, %v7179_v52, %v7180_v15 }
 0xc6d   : > { %5974 = vmatpush1.bf16.msra.mxu1 %v8969_v10  ;;  %v5304_v54 = vsel %vm914_vm7, %v7199_v46, %v7200_v47  ;;  %v5979_v10 = vpack.c.bf16 %v4931_v34, %v4929_v16  ;;  %v4964_v14 = vsel %vm914_vm7, %v7204_v9, %v7179_v52  ;;  %v4966_v28 = vsel %vm914_vm7, %v7205_v61, %v7189_v21 }
 0xc6e   : > { %v7213_v44 = vpop.permute.xlu0 %7212  ;;  %v7208_v11 = vpop.permute.xlu1 %7207  ;;  %5976 = vmatprep.subr.bf16.mxu1 %v8994_v55  ;;  %v6019_v48 = vpack.c.bf16 %v5304_v54, %v5302_v5  ;;  %v5983_v0 = vpack.c.bf16 %v4967_v27, %v4965_v57  ;;  %v5985_v3 = vpack.c.bf16 %v4966_v28, %v4964_v14 }
 0xc6f   : > { %v7210_v53 = vunpack.i.h.bf16 %v7208_v11  ;;  %v7209_v13 = vunpack.i.l.bf16 %v7208_v11  ;;  %v7215_v41 = vunpack.i.h.bf16 %v7213_v44  ;;  %v7214_v1 = vunpack.i.l.bf16 %v7213_v44 }
 0xc70   : > { %6020 = vmatprep.subr.bf16.mxu0 %v6019_v48 }
 0xc71   : > { %v5301_v45 = vsel %vm914_vm7, %v7209_v13, %v7194_v17  ;;  %v5303_v30 = vsel %vm914_vm7, %v7210_v53, %v7199_v46  ;;  %5978 = vmatpush1.bf16.msra.mxu1 %v8990_v50  ;;  %v5001_v31 = vsel %vm914_vm7, %v7214_v1, %v7215_v41 }
 0xc72   : > { %v6021_v7 = vpack.c.bf16 %v5303_v30, %v5301_v45  ;;  %v7223_v55 = vpop.permute.xlu0 %7222  ;;  %v7218_v24 = vpop.permute.xlu1 %7217  ;;  %5980 = vmatprep.subr.bf16.mxu1 %v5979_v10 }
 0xc73   : > { %v7220_v18 = vunpack.i.h.bf16 %v7218_v24  ;;  %v7219_v35 = vunpack.i.l.bf16 %v7218_v24  ;;  %v7225_v26 = vunpack.i.h.bf16 %v7223_v55  ;;  %v7224_v50 = vunpack.i.l.bf16 %v7223_v55 }
 0xc74   : > { %6022 = vmatpush1.bf16.msra.mxu0 %v6021_v7 }
 0xc75   : > { %5982 = vmatpush1.bf16.msra.mxu1 %v5981_v19  ;;  %v5003_v37 = vsel %vm914_vm7, %v7219_v35, %v7220_v18  ;;  %v5344_v58 = vsel %vm579_vm0, %v7224_v50, %v7225_v26 }
 0xc76   : > { %v7233_v29 = vpop.permute.xlu0 %7232  ;;  %v7228_v59 = vpop.permute.xlu1 %7227  ;;  %5984 = vmatprep.subr.bf16.mxu1 %v5983_v0  ;;  %v5987_v42 = vpack.c.bf16 %v5003_v37, %v5001_v31 }
 0xc77   : > { %v7235_v6 = vunpack.i.h.bf16 %v7233_v29  ;;  %v7234_v60 = vunpack.i.l.bf16 %v7233_v29  ;;  %v7230_v22 = vunpack.i.h.bf16 %v7228_v59  ;;  %v7229_v12 = vunpack.i.l.bf16 %v7228_v59 }
 0xc79   : > { %v5000_v33 = vsel %vm914_vm7, %v7234_v60, %v7214_v1  ;;  %v5002_v56 = vsel %vm914_vm7, %v7235_v6, %v7219_v35  ;;  %5986 = vmatpush1.bf16.msra.mxu1 %v5985_v3  ;;  %v5346_v49 = vsel %vm579_vm0, %v7229_v12, %v7230_v22 }
 0xc7a   : > { %v5989_v62 = vpack.c.bf16 %v5002_v56, %v5000_v33  ;;  %v7238_v43 = vpop.permute.xlu1 %7237  ;;  %5988 = vmatprep.subr.bf16.mxu1 %v5987_v42  ;;  %v6023_v51 = vpack.c.bf16 %v5346_v49, %v5344_v58 }
 0xc7b   : > { %v7240_v38 = vunpack.i.h.bf16 %v7238_v43  ;;  %v7239_v23 = vunpack.i.l.bf16 %v7238_v43 }
 0xc7c   : > { %6024 = vmatprep.subr.bf16.mxu0 %v6023_v51 }
 0xc7d   : > { %v5343_v32 = vsel %vm579_vm0, %v7239_v23, %v7224_v50  ;;  %v5345_v63 = vsel %vm579_vm0, %v7240_v38, %v7229_v12  ;;  %5990 = vmatpush1.bf16.msra.mxu1 %v5989_v62 }
 0xc7e   : > { %v6025_v4 = vpack.c.bf16 %v5345_v63, %v5343_v32 }
 0xc80   : > { %5113 = vmatmul.mubr.f32.vlgmr.msra.gmra.mrb[14].mxu1 %v9018_v25  ;;  %6026 = vmatpush1.bf16.msra.mxu0 %v6025_v4 }
 0xc83   : > { %5456 = vmatmul.mubr.f32.vlgmr.msra.gmra.mrb[30].mxu0 %v9018_v25 }
 0xc87   : > { %v4357_v17 = vpop.permute.xlu0 %4356 }
 0xd23   : > { %v4771_v40 = vpop.f32.mrb[28].mxu0 }
 0xd24   : > { %v4772_v36 = vadd.f32 %v4771_v40, %v4357_v17  ;;  %v4773_v39 = vpop.f32.mrb[29].mxu0 }
 0xd25   : > { %v4774_v47 = vadd.f32 %v4773_v39, %v4357_v17 }
 0xd27   : > { %v4778_v46 = vcombine.low %v4772_v36, %v4774_v47 }
 0xd29   : > { %5622 = vst [vmem:[%s482_s17 + $0x8] sm:$0x77] %v4778_v46 }
 0xd2f   : > { %v4429_v8 = vpop.f32.mrb[12].mxu1 }
 0xd30   : > { %v4430_v16 = vadd.f32 %v4429_v8, %v4357_v17  ;;  %v4431_v34 = vpop.f32.mrb[13].mxu1 }
 0xd31   : > { %v4432_v2 = vadd.f32 %v4431_v34, %v4357_v17 }
 0xd33   : > { %v4436_v21 = vcombine.low %v4430_v16, %v4432_v2 }
 0xd35   : > { %4438 = vst [vmem:[%s482_s17] sm:$0x77] %v4436_v21 }
 0xd53   : > { %v5114_v5 = vpop.f32.mrb[14].mxu1 }
 0xd54   : > { %v5115_v25 = vadd.f32 %v5114_v5, %v4357_v17  ;;  %v5116_v54 = vpop.f32.mrb[15].mxu1 }
 0xd55   : > { %v5117_v20 = vadd.f32 %v5116_v54, %v4357_v17 }
 0xd56   : > { %v5457_v15 = vpop.f32.mrb[30].mxu0 }
 0xd57   : > { %v5121_v52 = vcombine.low %v5115_v25, %v5117_v20  ;;  %v5458_v44 = vadd.f32 %v5457_v15, %v4357_v17  ;;  %v5459_v11 = vpop.f32.mrb[31].mxu0 }
 0xd58   : > { %v5460_v48 = vadd.f32 %v5459_v11, %v4357_v17 }
 0xd59   : > { %5624 = vst [vmem:[%s482_s17 + $0x10] sm:$0x77] %v5121_v52 }
 0xd5a   : > { %v5464_v61 = vcombine.low %v5458_v44, %v5460_v48 }
 0xd5c   : > { %5626 = vst [vmem:[%s482_s17 + $0x18] sm:$0x77] %v5464_v61 }
 0xd5d PF: > { %s9357_s22 = sld [smem:[#allocation16_spill]] }
 0xd63   : > { %s25_s21 = sadd.s32 1, %s9357_s22  }
 0xd64   : > { %p22_p6 = scmp.ge.s32.totalorder %s25_s21, 4  }
 0xd66   :  { %24 = sbr.rel (!%p22_p6) target bundleno = 5 (0x5), region = 130 }
 0xd6d   :  { %5489 = vsyncpa [#allocation6], 1 }
 0xd6e   :  { %5491 = vsyncpa [#allocation6 + $0x1], 1 }
 0xd6f   :  { %5492 = vsyncpa [#allocation8], 1 }
 0xd70   :  { %5493 = vsyncpa [#allocation11], 1 }

</bundles_post_ra>
